<compile_context>
chip_gen: v6e
topology: v6e:2x2x1
jax: 0.10.0
libtpu: 0.0.40
codegen_flags: <defaults>
</compile_context>

<pallas_src>
import jax
import jax.numpy as jnp
from jax.experimental import pallas as pl
from jax.experimental.pallas import tpu as pltpu

INPUT_DIM = 80 * 80          # 6400, matches prepro(flatten=True)
HIDDEN = 256
NUM_ACTIONS = 6
OUT_PAD = 128                # lane-dense padded action dim


def _round_up(x, m):
    return ((x + m - 1) // m) * m


def _dqn_mlp_kernel(x_ref, w1_ref, b1_ref, w2_ref, b2_ref, o_ref):
    # x_ref: (tile_b, INPUT_DIM) int8 {0,1}; w1_ref resident (INPUT_DIM, HIDDEN) bf16.
    xb = x_ref[...].astype(jnp.bfloat16)
    h = jnp.dot(xb, w1_ref[...], preferred_element_type=jnp.float32) + b1_ref[...]
    h = jnp.maximum(h, 0.0)                                   # fc1 bias + ReLU (f32)
    # fc2: bf16 x bf16 on the MXU, f32 accumulation + f32 bias.
    o_ref[...] = (
        jnp.dot(h.astype(jnp.bfloat16), w2_ref[...], preferred_element_type=jnp.float32)
        + b2_ref[...]
    )


def _prepro_binarize(frames):
    """Crop rows 35:195, stride-2 downsample, binarize (144/109/0 -> 0, else 1) -> int8."""
    B = frames.shape[0]
    x = frames[:, 35:195, :][:, ::2, ::2].reshape(B, INPUT_DIM)
    zero_mask = (x == 144) | (x == 109) | (x == 0)
    return jnp.where(zero_mask, 0, 1).astype(jnp.int8)


def dqn_mlp_forward(frames, w1_t, b1, w2_t, b2, num_actions=NUM_ACTIONS):
    """frames: (B, 210, 160) raw grayscale pixel codes. Returns (B, num_actions) f32."""
    B = frames.shape[0]
    x = _prepro_binarize(frames)                               # (B, 6400) int8 {0,1}

    # Generation-aware batch tiling (w1 is VMEM-resident, so footprint is small):
    #   large B  -> 512-row tiles (long, efficient DMAs; ~10 MiB total footprint)
    #   mid B    -> 256-row tiles
    #   small B  -> round up to the int8-native 32-sublane tile (no masked vld/vst)
    if B >= 512:
        tile_b = 512
    elif B >= 256:
        tile_b = 256
    else:
        tile_b = _round_up(B, 32)
    b_pad = _round_up(B, tile_b)
    if b_pad != B:
        x = jnp.pad(x, ((0, b_pad - B), (0, 0)))               # zero rows -> sliced off below

    grid = (b_pad // tile_b,)

    out = pl.pallas_call(
        _dqn_mlp_kernel,
        out_shape=jax.ShapeDtypeStruct((b_pad, OUT_PAD), jnp.float32),
        grid_spec=pltpu.PrefetchScalarGridSpec(
            num_scalar_prefetch=0,
            grid=grid,
            in_specs=[
                pl.BlockSpec((tile_b, INPUT_DIM), lambda i: (i, 0)),    # x tile (int8)
                pl.BlockSpec((INPUT_DIM, HIDDEN), lambda i: (0, 0)),    # W1^T resident (bf16)
                pl.BlockSpec((1, HIDDEN), lambda i: (0, 0)),            # b1 resident (f32)
                pl.BlockSpec((HIDDEN, OUT_PAD), lambda i: (0, 0)),      # W2^T padded, resident (bf16)
                pl.BlockSpec((1, OUT_PAD), lambda i: (0, 0)),           # b2 padded, resident (f32)
            ],
            out_specs=pl.BlockSpec((tile_b, OUT_PAD), lambda i: (i, 0)),
        ),
        compiler_params=pltpu.CompilerParams(
            dimension_semantics=("parallel",),
            vmem_limit_bytes=32 << 20,
        ),
    )(x, w1_t, b1, w2_t, b2)

    return out[:B, :num_actions]


def init_params(key, input_dim=INPUT_DIM, hidden=HIDDEN, num_actions=NUM_ACTIONS):
    """PyTorch-style uniform(-1/sqrt(fan_in), 1/sqrt(fan_in)) init.

    w1 and w2 are stored pre-transposed (in, out) in bf16 (deliberate, flagged
    numerics change; MXU-native dtype, halves w1 HBM bytes).  Biases stay f32.
    w2 / b2 are zero-padded to OUT_PAD lanes for a lane-dense output store.
    """
    k1, k2, k3, k4 = jax.random.split(key, 4)
    bound1 = 1.0 / jnp.sqrt(jnp.float32(input_dim))
    bound2 = 1.0 / jnp.sqrt(jnp.float32(hidden))
    w1_t = jax.random.uniform(k1, (input_dim, hidden), jnp.float32, -bound1, bound1)
    b1 = jax.random.uniform(k2, (1, hidden), jnp.float32, -bound1, bound1)
    w2_t = jax.random.uniform(k3, (hidden, num_actions), jnp.float32, -bound2, bound2)
    b2 = jax.random.uniform(k4, (1, num_actions), jnp.float32, -bound2, bound2)

    w1_t = w1_t.astype(jnp.bfloat16)
    w2_t = jnp.pad(w2_t, ((0, 0), (0, OUT_PAD - num_actions))).astype(jnp.bfloat16)
    b2 = jnp.pad(b2, ((0, 0), (0, OUT_PAD - num_actions)))
    return w1_t, b1, w2_t, b2


def _reference_forward(frames, w1_t, b1, w2_t, b2, num_actions=NUM_ACTIONS):
    """Pure-JAX reference mirroring the PyTorch forward (same stored dtypes as the kernel)."""
    xb = _prepro_binarize(frames).astype(jnp.bfloat16)
    h = jnp.dot(xb, w1_t, preferred_element_type=jnp.float32) + b1
    h = jnp.maximum(h, 0.0)
    out = jnp.dot(h.astype(jnp.bfloat16), w2_t, preferred_element_type=jnp.float32) + b2
    return out[:, :num_actions]


if __name__ == "__main__":
    key = jax.random.PRNGKey(0)
    k_params, k_frames = jax.random.split(key)

    w1_t, b1, w2_t, b2 = init_params(k_params)

    # Small batch of synthetic 210x160 grayscale frames with integer pixel codes
    # that include the special 144 / 109 / 0 values prepro zeroes out.
    B = 2
    frames = jax.random.randint(
        k_frames, (B, 210, 160), minval=0, maxval=256, dtype=jnp.int32
    ).astype(jnp.float32)

    out = dqn_mlp_forward(frames, w1_t, b1, w2_t, b2)
    out = jax.block_until_ready(out)

    ref = _reference_forward(frames, w1_t, b1, w2_t, b2)
    assert out.shape == (B, NUM_ACTIONS)
    assert jnp.allclose(out, ref, atol=1e-3, rtol=1e-3), (
        f"max abs err {jnp.max(jnp.abs(out - ref))}"
    )

    print("KERNEL_OK")
</pallas_src>

<mosaic_0001>
module attributes {stable_mosaic.version = 11 : i64} {
  func.func @_dqn_mlp_kernel(%arg0: i32, %arg1: memref<32x6400xi8, #tpu.memory_space<vmem>>, %arg2: memref<6400x256xbf16, #tpu.memory_space<vmem>>, %arg3: memref<1x256xf32, #tpu.memory_space<vmem>>, %arg4: memref<256x128xbf16, #tpu.memory_space<vmem>>, %arg5: memref<1x128xf32, #tpu.memory_space<vmem>>, %arg6: memref<32x128xf32, #tpu.memory_space<vmem>>) attributes {dimension_semantics = [#tpu.dimension_semantics<parallel>], iteration_bounds = array<i64: 1>, scalar_prefetch = 0 : i64, scratch_operands = 0 : i64, tpu.core_type = #tpu.core_type<tc>, window_params = [{transform_indices = @transform_0, window_bounds = array<i64: 32, 6400>}, {pipeline_mode = #tpu.pipeline_mode<synchronous>, transform_indices = @transform_1, window_bounds = array<i64: 6400, 256>}, {pipeline_mode = #tpu.pipeline_mode<synchronous>, transform_indices = @transform_2, window_bounds = array<i64: 1, 256>}, {pipeline_mode = #tpu.pipeline_mode<synchronous>, transform_indices = @transform_3, window_bounds = array<i64: 256, 128>}, {pipeline_mode = #tpu.pipeline_mode<synchronous>, transform_indices = @transform_4, window_bounds = array<i64: 1, 128>}, {transform_indices = @transform_5, window_bounds = array<i64: 32, 128>}]} {
    %c0 = arith.constant 0 : index
    %c0_0 = arith.constant 0 : index
    %0 = vector.load %arg1[%c0, %c0_0] : memref<32x6400xi8, #tpu.memory_space<vmem>>, vector<32x6400xi8>
    %1 = arith.sitofp %0 : vector<32x6400xi8> to vector<32x6400xbf16>
    %c0_1 = arith.constant 0 : index
    %c0_2 = arith.constant 0 : index
    %2 = vector.load %arg2[%c0_1, %c0_2] : memref<6400x256xbf16, #tpu.memory_space<vmem>>, vector<6400x256xbf16>
    %cst = arith.constant dense<0.000000e+00> : vector<32x256xf32>
    %3 = tpu.matmul %1, %2, %cst {dimension_numbers = #tpu.dot_dimension_numbers<[1], [0], [0], [1], [0, 0, 1, 1], [], []>} : vector<32x6400xbf16>, vector<6400x256xbf16>, vector<32x256xf32> -> vector<32x256xf32>
    %c0_3 = arith.constant 0 : index
    %c0_4 = arith.constant 0 : index
    %4 = vector.load %arg3[%c0_3, %c0_4] : memref<1x256xf32, #tpu.memory_space<vmem>>, vector<1x256xf32>
    %5 = vector.broadcast %4 : vector<1x256xf32> to vector<32x256xf32>
    %6 = arith.addf %3, %5 : vector<32x256xf32>
    %cst_5 = arith.constant 0.000000e+00 : f32
    %7 = vector.broadcast %cst_5 : f32 to vector<32x256xf32>
    %8 = arith.maximumf %6, %7 : vector<32x256xf32>
    %9 = arith.truncf %8 : vector<32x256xf32> to vector<32x256xbf16>
    %c0_6 = arith.constant 0 : index
    %c0_7 = arith.constant 0 : index
    %10 = vector.load %arg4[%c0_6, %c0_7] : memref<256x128xbf16, #tpu.memory_space<vmem>>, vector<256x128xbf16>
    %cst_8 = arith.constant dense<0.000000e+00> : vector<32x128xf32>
    %11 = tpu.matmul %9, %10, %cst_8 {dimension_numbers = #tpu.dot_dimension_numbers<[1], [0], [0], [1], [0, 0, 1, 1], [], []>} : vector<32x256xbf16>, vector<256x128xbf16>, vector<32x128xf32> -> vector<32x128xf32>
    %c0_9 = arith.constant 0 : index
    %c0_10 = arith.constant 0 : index
    %12 = vector.load %arg5[%c0_9, %c0_10] : memref<1x128xf32, #tpu.memory_space<vmem>>, vector<1x128xf32>
    %13 = vector.broadcast %12 : vector<1x128xf32> to vector<32x128xf32>
    %14 = arith.addf %11, %13 : vector<32x128xf32>
    %c0_11 = arith.constant 0 : index
    %c0_12 = arith.constant 0 : index
    %15 = vector.load %arg6[%c0_11, %c0_12] : memref<32x128xf32, #tpu.memory_space<vmem>>, vector<32x128xf32>
    tpu.vector_store %arg6[%c0_11, %c0_12], %14 {strides = array<i32>} : memref<32x128xf32, #tpu.memory_space<vmem>>, vector<32x128xf32>,
    return
  }
  func.func @transform_0(%arg0: i32) -> (i32, i32) {
    %c0_i32 = arith.constant 0 : i32
    %c0_i32_0 = arith.constant 0 : i32
    return %arg0, %c0_i32 : i32, i32
  }
  func.func @transform_1(%arg0: i32) -> (i32, i32) {
    %c0_i32 = arith.constant 0 : i32
    %c0_i32_0 = arith.constant 0 : i32
    %c0_i32_1 = arith.constant 0 : i32
    return %c0_i32, %c0_i32_0 : i32, i32
  }
  func.func @transform_2(%arg0: i32) -> (i32, i32) {
    %c0_i32 = arith.constant 0 : i32
    %c0_i32_0 = arith.constant 0 : i32
    %c0_i32_1 = arith.constant 0 : i32
    return %c0_i32, %c0_i32_0 : i32, i32
  }
  func.func @transform_3(%arg0: i32) -> (i32, i32) {
    %c0_i32 = arith.constant 0 : i32
    %c0_i32_0 = arith.constant 0 : i32
    %c0_i32_1 = arith.constant 0 : i32
    return %c0_i32, %c0_i32_0 : i32, i32
  }
  func.func @transform_4(%arg0: i32) -> (i32, i32) {
    %c0_i32 = arith.constant 0 : i32
    %c0_i32_0 = arith.constant 0 : i32
    %c0_i32_1 = arith.constant 0 : i32
    return %c0_i32, %c0_i32_0 : i32, i32
  }
  func.func @transform_5(%arg0: i32) -> (i32, i32) {
    %c0_i32 = arith.constant 0 : i32
    %c0_i32_0 = arith.constant 0 : i32
    return %arg0, %c0_i32 : i32, i32
  }
}

</mosaic_0001>

<bundles_post_ra>
// kernel: tpu_custom_call.1
= control target key start
LH: loop header
LB: loop body
LE: loop exit
PB: predicated region body
PF: predicated region fallthrough
CT: control target
= control target key end

     0   :  { %10 = vsyncpa [#allocation3], 0  ;;  %s9365_s0 = inlined_call_operand.hbm [shape: s8[32,6400], index: 0, kind: input, shape index: {}]   ;;  %s9366_s1 = inlined_call_operand.hbm [shape: bf16[6400,256], index: 1, kind: input, shape index: {}]   ;;  %s9367_s2 = inlined_call_operand.hbm [shape: f32[1,256], index: 2, kind: input, shape index: {}]   ;;  %s9368_s3 = inlined_call_operand.hbm [shape: bf16[256,128], index: 3, kind: input, shape index: {}]   ;;  %s9369_s4 = inlined_call_operand.hbm [shape: f32[1,128], index: 4, kind: input, shape index: {}]   ;;  %s9370_s5 = inlined_call_operand.hbm [shape: f32[32,128], index: 5, kind: output, shape index: {}]  }
   0x1   :  { %11 = vsyncpa [#allocation6], 0 }
   0x2   :  { %12 = vsyncpa [#allocation9], 0 }
   0x3   :  { %13 = vsyncpa [#allocation4], 0  ;;  %s8789_s18 = smov [#allocation5]  }
   0x4   :  { %s29_s19 = sshll.u32 %s8789_s18, 4  ;;  %s30_s19 = int_to_ptr.vmem [resolvable:$true] %s29_s19 }
   0x5   :  { %s8669_s20 = scalar_lea.vmem %s30_s19, 102400  ;;  %p8674_p1 = scmp.lt.s32.totalorder %s30_s19, %s30_s19 }
   0x6   :  { %p8670_p0 = scmp.ne.s32.totalorder %s30_s19, %s8669_s20  ;;  %p8675_p2 = scmp.lt.s32.totalorder %s8669_s20, %s8669_s20 }
   0x8   :  { %p8676_p3 = por %p8675_p2, %p8674_p1 }
   0xa   :  { %p8677_p4 = pnand %p8676_p3, %p8670_p0 }
   0xc   :  { %8680 = shalt.err (!%p8677_p4)
}
   0xd   :  { %s8790_s21 = smov 128   ;;  %s8791_s22 = smov 8  }
   0xe   :  { %35 = dma.hbm_to_vmem [thread:$0]  %s9366_s1, 102400, %s30_s19, [#allocation6], %s8790_s21, %s8790_s21, %s8791_s22  }
   0xf   :  { %s8792_s25 = smov [#allocation8]  }
  0x10   :  { %s51_s26 = sshll.u32 %s8792_s25, 4  ;;  %s52_s26 = int_to_ptr.vmem [resolvable:$true] %s51_s26 }
  0x11   :  { %s8689_s27 = scalar_lea.vmem %s52_s26, 2048  ;;  %p8694_p6 = scmp.lt.s32.totalorder %s52_s26, %s52_s26 }
  0x12   :  { %p8690_p5 = scmp.ne.s32.totalorder %s52_s26, %s8689_s27  ;;  %p8695_p7 = scmp.lt.s32.totalorder %s8689_s27, %s8689_s27 }
  0x14   :  { %p8696_p8 = por %p8695_p7, %p8694_p6 }
  0x16   :  { %p8697_p9 = pnand %p8696_p8, %p8690_p5 }
  0x18   :  { %8700 = shalt.err (!%p8697_p9)
}
  0x19   :  { %s8793_s28 = smov 64   ;;  %s8794_s29 = smov 4  }
  0x1a   :  { %57 = dma.hbm_to_vmem [thread:$0]  %s9368_s3, 2048, %s52_s26, [#allocation9], %s8793_s28, %s8793_s28, %s8794_s29  }
  0x1b   :  { %s8795_s7 = smov [#allocation2]   ;;  %s8796_s9 = smov [#allocation7]  }
  0x1c   :  { %s20_s8 = sshll.u32 %s8795_s7, 4  ;;  %s42_s1 = sshll.u32 %s8796_s9, 4  ;;  %s21_s8 = int_to_ptr.vmem [resolvable:$true] %s20_s8  ;;  %s43_s1 = int_to_ptr.vmem [resolvable:$true] %s42_s1 }
  0x1d   :  { %s8709_s10 = scalar_lea.vmem %s21_s8, 6400  ;;  %p8714_p11 = scmp.lt.s32.totalorder %s21_s8, %s21_s8 }
  0x1e   :  { %p8710_p10 = scmp.ne.s32.totalorder %s21_s8, %s8709_s10  ;;  %p8715_p12 = scmp.lt.s32.totalorder %s8709_s10, %s8709_s10 }
  0x20   :  { %p8716_p13 = por %p8715_p12, %p8714_p11 }
  0x22   :  { %p8717_p0 = pnand %p8716_p13, %p8710_p10 }
  0x24   :  { %8720 = shalt.err (!%p8717_p0)
}
  0x25   :  { %23 = dma.hbm_to_vmem [thread:$0]  %s9365_s0, 6400, %s21_s8, [#allocation3]  }
  0x26   :  { %s8729_s13 = scalar_lea.vmem %s43_s1, 32  ;;  %p8734_p2 = scmp.lt.s32.totalorder %s43_s1, %s43_s1 }
  0x27   :  { %p8730_p1 = scmp.ne.s32.totalorder %s43_s1, %s8729_s13  ;;  %p8735_p3 = scmp.lt.s32.totalorder %s8729_s13, %s8729_s13 }
  0x29   :  { %p8736_p4 = por %p8735_p3, %p8734_p2 }
  0x2b   :  { %p8737_p5 = pnand %p8736_p4, %p8730_p1 }
  0x2d   :  { %8740 = shalt.err (!%p8737_p5)
}
  0x2e   :  { %45 = dma.hbm_to_vmem [thread:$0]  %s9367_s2, 32, %s43_s1, [#allocation6]  }
  0x2f   :  { %s8797_s15 = smov [#allocation10]  }
  0x30   :  { %s64_s16 = sshll.u32 %s8797_s15, 4  ;;  %s65_s16 = int_to_ptr.vmem [resolvable:$true] %s64_s16 }
  0x31   :  { %s8749_s17 = scalar_lea.vmem %s65_s16, 16  ;;  %s8753_s18 = scalar_lea.vmem %s65_s16, 32 }
  0x32   :  { %p8750_p6 = scmp.ne.s32.totalorder %s65_s16, %s8749_s17  ;;  %p8754_p7 = scmp.lt.s32.totalorder %s65_s16, %s65_s16 }
  0x33   :  { %p8755_p8 = scmp.lt.s32.totalorder %s8753_s18, %s8749_s17 }
  0x35   :  { %p8756_p9 = por %p8755_p8, %p8754_p7 }
  0x37   :  { %p8757_p10 = pnand %p8756_p9, %p8750_p6 }
  0x39   :  { %8760 = shalt.err (!%p8757_p10)
}
  0x3a   :  { %67 = dma.hbm_to_vmem [thread:$0]  %s9369_s4, 16, %s65_s16, [#allocation9]  }
  0x3b   :  { %8781 = dma.done.wait [#allocation3], 6400  }
  0x3c   :  { %8782 = vsyncadd [#allocation3], 4294960896 }
  0x3d   :  { %8783 = dma.done.wait [#allocation6], 102432  }
  0x3e   :  { %8784 = vsyncadd [#allocation6], 4294864864 }
  0x3f   :  { %8785 = dma.done.wait [#allocation9], 2064  }
  0x40   :  { %8786 = vsyncadd [#allocation9], 4294965232  ;;  %v7445_v0 = vld [vmem:[#allocation5 + $0x74] ss:$8 sps:$4 sm:$0xff]   ;;  %v7447_v1 = vld [vmem:[#allocation5 + $0x70] ss:$8 sps:$4 sm:$0xff]  }
  0x41   :  { %5046 = vmatprep.subr.bf16.mxu0 %v7445_v0  ;;  %v7448_v2 = vld [vmem:[#allocation5 + $0x174] ss:$8 sps:$4 sm:$0xff]   ;;  %v7450_v3 = vld [vmem:[#allocation5 + $0x170] ss:$8 sps:$4 sm:$0xff]   ;;  %v7451_v4 = vld [vmem:[#allocation5 + $0x64] ss:$8 sps:$4 sm:$0xff]  }
  0x42   :  { %5047 = vmatpush1.bf16.msra.mxu0 %v7447_v1  ;;  %v7453_v5 = vld [vmem:[#allocation5 + $0x60] ss:$8 sps:$4 sm:$0xff]   ;;  %5099 = vmatprep.subr.bf16.mxu1 %v7448_v2  ;;  %v7454_v6 = vld [vmem:[#allocation5 + $0x164] ss:$8 sps:$4 sm:$0xff]   ;;  %v7457_v8 = vld [vmem:[#allocation5 + $0x54] ss:$8 sps:$4 sm:$0xff]  }
  0x43   :  { %5100 = vmatpush1.bf16.msra.mxu1 %v7450_v3  ;;  %5048 = vmatprep.subr.bf16.mxu0 %v7451_v4  ;;  %v7456_v7 = vld [vmem:[#allocation5 + $0x160] ss:$8 sps:$4 sm:$0xff]   ;;  %v7459_v9 = vld [vmem:[#allocation5 + $0x50] ss:$8 sps:$4 sm:$0xff]   ;;  %v7460_v10 = vld [vmem:[#allocation5 + $0x154] ss:$8 sps:$4 sm:$0xff]  }
  0x44   :  { %5101 = vmatprep.subr.bf16.mxu1 %v7454_v6  ;;  %v7463_v11 = vld [vmem:[#allocation5 + $0x44] ss:$8 sps:$4 sm:$0xff]   ;;  %v7462_v12 = vld [vmem:[#allocation5 + $0x150] ss:$8 sps:$4 sm:$0xff]   ;;  %v7465_v14 = vld [vmem:[#allocation5 + $0x40] ss:$8 sps:$4 sm:$0xff]  }
  0x45   :  { %v7466_v13 = vld [vmem:[#allocation5 + $0x144] ss:$8 sps:$4 sm:$0xff]   ;;  %v7469_v15 = vld [vmem:[#allocation5 + $0x34] ss:$8 sps:$4 sm:$0xff]   ;;  %v7468_v16 = vld [vmem:[#allocation5 + $0x140] ss:$8 sps:$4 sm:$0xff]  }
  0x46   :  { %5049 = vmatpush1.bf16.msra.mxu0 %v7453_v5  ;;  %v7472_v17 = vld [vmem:[#allocation5 + $0x134] ss:$8 sps:$4 sm:$0xff]   ;;  %v7471_v18 = vld [vmem:[#allocation5 + $0x30] ss:$8 sps:$4 sm:$0xff]   ;;  %v7475_v19 = vld [vmem:[#allocation5 + $0x24] ss:$8 sps:$4 sm:$0xff]  }
  0x47   :  { %5050 = vmatprep.subr.bf16.mxu0 %v7457_v8  ;;  %5102 = vmatpush1.bf16.msra.mxu1 %v7456_v7  ;;  %v7474_v20 = vld [vmem:[#allocation5 + $0x130] ss:$8 sps:$4 sm:$0xff]   ;;  %v7478_v21 = vld [vmem:[#allocation5 + $0x124] ss:$8 sps:$4 sm:$0xff]   ;;  %v7477_v22 = vld [vmem:[#allocation5 + $0x20] ss:$8 sps:$4 sm:$0xff]  }
  0x48   :  { %5103 = vmatprep.subr.bf16.mxu1 %v7460_v10  ;;  %v7481_v23 = vld [vmem:[#allocation5 + $0x14] ss:$8 sps:$4 sm:$0xff]   ;;  %v7480_v24 = vld [vmem:[#allocation5 + $0x120] ss:$8 sps:$4 sm:$0xff]   ;;  %v7483_v26 = vld [vmem:[#allocation5 + $0x10] ss:$8 sps:$4 sm:$0xff]  }
  0x49   :  { %v7484_v25 = vld [vmem:[#allocation5 + $0x114] ss:$8 sps:$4 sm:$0xff]   ;;  %v7487_v27 = vld [vmem:[#allocation5 + $0x4] ss:$8 sps:$4 sm:$0xff]   ;;  %v7486_v28 = vld [vmem:[#allocation5 + $0x110] ss:$8 sps:$4 sm:$0xff]  }
  0x4a   :  { %5051 = vmatpush1.bf16.msra.mxu0 %v7459_v9  ;;  %v7490_v29 = vld [vmem:[#allocation5 + $0x104] ss:$8 sps:$4 sm:$0xff]   ;;  %v7489_v30 = vld [vmem:[#allocation5] ss:$8 sps:$4 sm:$0xff]   ;;  %v7493_v31 = vld [vmem:[#allocation5 + $0xf4] ss:$8 sps:$4 sm:$0xff]  }
  0x4b   :  { %5052 = vmatprep.subr.bf16.mxu0 %v7463_v11  ;;  %5104 = vmatpush1.bf16.msra.mxu1 %v7462_v12  ;;  %v7492_v32 = vld [vmem:[#allocation5 + $0x100] ss:$8 sps:$4 sm:$0xff]   ;;  %v7496_v33 = vld [vmem:[#allocation5 + $0x1f4] ss:$8 sps:$4 sm:$0xff]   ;;  %v7495_v34 = vld [vmem:[#allocation5 + $0xf0] ss:$8 sps:$4 sm:$0xff]  }
  0x4c   :  { %5105 = vmatprep.subr.bf16.mxu1 %v7466_v13  ;;  %v7499_v35 = vld [vmem:[#allocation5 + $0xe4] ss:$8 sps:$4 sm:$0xff]   ;;  %v7498_v36 = vld [vmem:[#allocation5 + $0x1f0] ss:$8 sps:$4 sm:$0xff]   ;;  %v7501_v38 = vld [vmem:[#allocation5 + $0xe0] ss:$8 sps:$4 sm:$0xff]  }
  0x4d   :  { %v7502_v37 = vld [vmem:[#allocation5 + $0x1e4] ss:$8 sps:$4 sm:$0xff]   ;;  %v7505_v39 = vld [vmem:[#allocation5 + $0xd4] ss:$8 sps:$4 sm:$0xff]   ;;  %v7504_v40 = vld [vmem:[#allocation5 + $0x1e0] ss:$8 sps:$4 sm:$0xff]  }
  0x4e   :  { %5053 = vmatpush1.bf16.msra.mxu0 %v7465_v14  ;;  %v7508_v41 = vld [vmem:[#allocation5 + $0x1d4] ss:$8 sps:$4 sm:$0xff]   ;;  %v7507_v42 = vld [vmem:[#allocation5 + $0xd0] ss:$8 sps:$4 sm:$0xff]   ;;  %v7511_v43 = vld [vmem:[#allocation5 + $0xc4] ss:$8 sps:$4 sm:$0xff]  }
  0x4f   :  { %5054 = vmatprep.subr.bf16.mxu0 %v7469_v15  ;;  %5106 = vmatpush1.bf16.msra.mxu1 %v7468_v16  ;;  %v7510_v44 = vld [vmem:[#allocation5 + $0x1d0] ss:$8 sps:$4 sm:$0xff]   ;;  %v7514_v45 = vld [vmem:[#allocation5 + $0x1c4] ss:$8 sps:$4 sm:$0xff]   ;;  %v7513_v47 = vld [vmem:[#allocation5 + $0xc0] ss:$8 sps:$4 sm:$0xff]  }
  0x50   :  { %5107 = vmatprep.subr.bf16.mxu1 %v7472_v17  ;;  %v8847_v46 = vld [vmem:[#allocation2 + $0x8] sm:$0xff]  ;;  %v8850_v50 = vld [vmem:[#allocation2 + $0x18] sm:$0xff]  ;;  %v84_v4 = vld [vmem:[#allocation2] sm:$0xff]  ;;  %s8798_s2 = smov [#allocation11]  }
  0x51   :  { %v135_v48 = vunpack.c.l.s8.bf16 %v8847_v46  ;;  %v7517_v49 = vld [vmem:[#allocation5 + $0xb4] ss:$8 sps:$4 sm:$0xff]   ;;  %v7516_v51 = vld [vmem:[#allocation5 + $0x1c0] ss:$8 sps:$4 sm:$0xff]   ;;  %v137_v52 = vunpack.c.l.s8.bf16 %v8850_v50  ;;  %v7519_v54 = vld [vmem:[#allocation5 + $0xb0] ss:$8 sps:$4 sm:$0xff]   ;;  %v134_v7 = vunpack.c.l.s8.bf16 %v84_v4  ;;  %v185_v9 = vunpack.c.h.s8.bf16 %v8847_v46 }
  0x52   :  { %5055 = vmatpush1.bf16.msra.mxu0 %v7471_v18  ;;  %v7520_v53 = vld [vmem:[#allocation5 + $0x1b4] ss:$8 sps:$4 sm:$0xff]   ;;  %v7523_v55 = vld [vmem:[#allocation5 + $0xa4] ss:$8 sps:$4 sm:$0xff]   ;;  %v7522_v56 = vld [vmem:[#allocation5 + $0x1b0] ss:$8 sps:$4 sm:$0xff]   ;;  %v187_v13 = vunpack.c.h.s8.bf16 %v8850_v50 }
  0x53   :  { %5056 = vmatprep.subr.bf16.mxu0 %v7475_v19  ;;  %5108 = vmatpush1.bf16.msra.mxu1 %v7474_v20  ;;  %v7526_v57 = vld [vmem:[#allocation5 + $0x1a4] ss:$8 sps:$4 sm:$0xff]   ;;  %v7525_v58 = vld [vmem:[#allocation5 + $0xa0] ss:$8 sps:$4 sm:$0xff]   ;;  %v7529_v59 = vld [vmem:[#allocation5 + $0x94] ss:$8 sps:$4 sm:$0xff]   ;;  %v184_v20 = vunpack.c.h.s8.bf16 %v84_v4 }
  0x54   :  { %5109 = vmatprep.subr.bf16.mxu1 %v7478_v21  ;;  %5078 = vmatprep.mubr.bf16.mxu0 %v135_v48  ;;  %v7528_v60 = vld [vmem:[#allocation5 + $0x1a0] ss:$8 sps:$4 sm:$0xff]   ;;  %v7532_v61 = vld [vmem:[#allocation5 + $0x194] ss:$8 sps:$4 sm:$0xff]   ;;  %v7531_v62 = vld [vmem:[#allocation5 + $0x90] ss:$8 sps:$4 sm:$0xff]  }
  0x55   :  { %5131 = vmatprep.mubr.bf16.mxu1 %v137_v52  ;;  %v7535_v63 = vld [vmem:[#allocation5 + $0x84] ss:$8 sps:$4 sm:$0xff]   ;;  %v7534_v0 = vld [vmem:[#allocation5 + $0x190] ss:$8 sps:$4 sm:$0xff]   ;;  %v7537_v1 = vld [vmem:[#allocation5 + $0x80] ss:$8 sps:$4 sm:$0xff]  }
  0x56   :  { %5057 = vmatpush1.bf16.msra.mxu0 %v7477_v22  ;;  %v7538_v2 = vld [vmem:[#allocation5 + $0x184] ss:$8 sps:$4 sm:$0xff]   ;;  %v7540_v3 = vld [vmem:[#allocation5 + $0x180] ss:$8 sps:$4 sm:$0xff]   ;;  %v7543_v5 = vld [vmem:[#allocation5 + $0x274] ss:$8 sps:$4 sm:$0xff]  }
  0x57   :  { %5058 = vmatprep.subr.bf16.mxu0 %v7481_v23  ;;  %5110 = vmatpush1.bf16.msra.mxu1 %v7480_v24  ;;  %v86_v6 = vld [vmem:[#allocation2 + $0x10] sm:$0xff]  ;;  %v7546_v8 = vld [vmem:[#allocation5 + $0x374] ss:$8 sps:$4 sm:$0xff]   ;;  %v7541_v10 = vld [vmem:[#allocation5 + $0x270] ss:$8 sps:$4 sm:$0xff]   ;;  %s6576_s4 = sshll.u32 %s8798_s2, 4  ;;  %s6577_s4 = int_to_ptr.vmem [resolvable:$true] %s6576_s4 }
  0x58   :  { %5111 = vmatprep.subr.bf16.mxu1 %v7484_v25  ;;  %v136_v11 = vunpack.c.l.s8.bf16 %v86_v6  ;;  %v7549_v12 = vld [vmem:[#allocation5 + $0x264] ss:$8 sps:$4 sm:$0xff]   ;;  %v7544_v14 = vld [vmem:[#allocation5 + $0x370] ss:$8 sps:$4 sm:$0xff]   ;;  %v7547_v16 = vld [vmem:[#allocation5 + $0x260] ss:$8 sps:$4 sm:$0xff]   ;;  %v186_v23 = vunpack.c.h.s8.bf16 %v86_v6  ;;  %p8766_p12 = scmp.lt.s32.totalorder %s6577_s4, %s6577_s4 }
  0x59   :  { %v7552_v15 = vld [vmem:[#allocation5 + $0x364] ss:$8 sps:$4 sm:$0xff]   ;;  %v7555_v17 = vld [vmem:[#allocation5 + $0x254] ss:$8 sps:$4 sm:$0xff]   ;;  %v7550_v18 = vld [vmem:[#allocation5 + $0x360] ss:$8 sps:$4 sm:$0xff]  }
  0x5a   :  { %5059 = vmatpush1.bf16.msra.mxu0 %v7483_v26  ;;  %v7558_v19 = vld [vmem:[#allocation5 + $0x354] ss:$8 sps:$4 sm:$0xff]   ;;  %v7553_v21 = vld [vmem:[#allocation5 + $0x250] ss:$8 sps:$4 sm:$0xff]   ;;  %v7561_v22 = vld [vmem:[#allocation5 + $0x244] ss:$8 sps:$4 sm:$0xff]  }
  0x5b   :  { %5060 = vmatprep.subr.bf16.mxu0 %v7487_v27  ;;  %5112 = vmatpush1.bf16.msra.mxu1 %v7486_v28  ;;  %v7556_v24 = vld [vmem:[#allocation5 + $0x350] ss:$8 sps:$4 sm:$0xff]   ;;  %v7564_v25 = vld [vmem:[#allocation5 + $0x344] ss:$8 sps:$4 sm:$0xff]   ;;  %v7559_v26 = vld [vmem:[#allocation5 + $0x240] ss:$8 sps:$4 sm:$0xff]  }
  0x5c   :  { %5113 = vmatprep.subr.bf16.mxu1 %v7490_v29  ;;  %v7567_v27 = vld [vmem:[#allocation5 + $0x234] ss:$8 sps:$4 sm:$0xff]   ;;  %v7562_v28 = vld [vmem:[#allocation5 + $0x340] ss:$8 sps:$4 sm:$0xff]   ;;  %v7589_v50 = vld [vmem:[#allocation5 + $0x2f0] ss:$8 sps:$4 sm:$0xff]  }
  0x5d   :  { %v7570_v29 = vld [vmem:[#allocation5 + $0x334] ss:$8 sps:$4 sm:$0xff]   ;;  %v7583_v46 = vld [vmem:[#allocation5 + $0x200] ss:$8 sps:$4 sm:$0xff]   ;;  %v7592_v52 = vld [vmem:[#allocation5 + $0x3f0] ss:$8 sps:$4 sm:$0xff]  }
  0x5e   :  { %5061 = vmatpush1.bf16.msra.mxu0 %v7489_v30  ;;  %v7565_v30 = vld [vmem:[#allocation5 + $0x230] ss:$8 sps:$4 sm:$0xff]   ;;  %v7586_v48 = vld [vmem:[#allocation5 + $0x300] ss:$8 sps:$4 sm:$0xff]   ;;  %s8761_s20 = scalar_lea.vmem %s6577_s4, 512 }
  0x5f   :  { %5062 = vmatprep.subr.bf16.mxu0 %v7493_v31  ;;  %5114 = vmatpush1.bf16.msra.mxu1 %v7492_v32  ;;  %v7573_v31 = vld [vmem:[#allocation5 + $0x224] ss:$8 sps:$4 sm:$0xff]   ;;  %v7568_v32 = vld [vmem:[#allocation5 + $0x330] ss:$8 sps:$4 sm:$0xff]   ;;  %v7619_v6 = vld [vmem:[#allocation5 + $0x2a0] ss:$8 sps:$4 sm:$0xff]   ;;  %p8762_p11 = scmp.ne.s32.totalorder %s6577_s4, %s8761_s20  ;;  %p8767_p13 = scmp.lt.s32.totalorder %s8761_s20, %s8761_s20 }
  0x60   :  { %5115 = vmatprep.subr.bf16.mxu1 %v7496_v33  ;;  %v7576_v33 = vld [vmem:[#allocation5 + $0x324] ss:$8 sps:$4 sm:$0xff]   ;;  %v7616_v4 = vld [vmem:[#allocation5 + $0x3b0] ss:$8 sps:$4 sm:$0xff]  }
  0x61   :  { %p8768_p0 = por %p8767_p13, %p8766_p12 }
  0x62   :  { %5063 = vmatpush2.bf16.msra.mxu0 %v7495_v34  ;;  %v7571_v34 = vld [vmem:[#allocation5 + $0x220] ss:$8 sps:$4 sm:$0xff]  }
  0x63   :  { %5064 = vmatprep.subr.bf16.mxu0 %v7499_v35  ;;  %5116 = vmatpush2.bf16.msra.mxu1 %v7498_v36  ;;  %v7579_v35 = vld [vmem:[#allocation5 + $0x214] ss:$8 sps:$4 sm:$0xff]   ;;  %v7574_v36 = vld [vmem:[#allocation5 + $0x320] ss:$8 sps:$4 sm:$0xff]   ;;  %p8769_p1 = pnand %p8768_p0, %p8762_p11 }
  0x64   :  { %5117 = vmatprep.subr.bf16.mxu1 %v7502_v37  ;;  %v7582_v37 = vld [vmem:[#allocation5 + $0x314] ss:$8 sps:$4 sm:$0xff]  }
  0x66   :  { %5065 = vmatpush2.bf16.msra.mxu0 %v7501_v38  ;;  %v8855_v38 = vld [vmem:[#allocation2 + $0x28] sm:$0xff] }
  0x67   :  { %5066 = vmatprep.subr.bf16.mxu0 %v7505_v39  ;;  %5118 = vmatpush2.bf16.msra.mxu1 %v7504_v40  ;;  %v7577_v39 = vld [vmem:[#allocation5 + $0x210] ss:$8 sps:$4 sm:$0xff]   ;;  %v139_v40 = vunpack.c.l.s8.bf16 %v8855_v38 }
  0x68   :  { %5119 = vmatprep.subr.bf16.mxu1 %v7508_v41  ;;  %v7585_v41 = vld [vmem:[#allocation5 + $0x204] ss:$8 sps:$4 sm:$0xff]  }
  0x6a   :  { %5067 = vmatpush2.bf16.msra.mxu0 %v7507_v42  ;;  %v8858_v42 = vld [vmem:[#allocation2 + $0x38] sm:$0xff] }
  0x6b   :  { %5068 = vmatprep.subr.bf16.mxu0 %v7511_v43  ;;  %5120 = vmatpush2.bf16.msra.mxu1 %v7510_v44  ;;  %v7580_v43 = vld [vmem:[#allocation5 + $0x310] ss:$8 sps:$4 sm:$0xff]   ;;  %v141_v44 = vunpack.c.l.s8.bf16 %v8858_v42 }
  0x6c   :  { %5121 = vmatprep.subr.bf16.mxu1 %v7514_v45  ;;  %v7588_v45 = vld [vmem:[#allocation5 + $0x304] ss:$8 sps:$4 sm:$0xff]  }
  0x6e   :  { %5069 = vmatpush2.bf16.msra.mxu0 %v7513_v47  ;;  %v7591_v47 = vld [vmem:[#allocation5 + $0x2f4] ss:$8 sps:$4 sm:$0xff]  }
  0x6f   :  { %5070 = vmatprep.subr.bf16.mxu0 %v7517_v49  ;;  %5122 = vmatpush2.bf16.msra.mxu1 %v7516_v51  ;;  %v7594_v49 = vld [vmem:[#allocation5 + $0x3f4] ss:$8 sps:$4 sm:$0xff]   ;;  %v7597_v51 = vld [vmem:[#allocation5 + $0x2e4] ss:$8 sps:$4 sm:$0xff]  }
  0x70   :  { %5123 = vmatprep.subr.bf16.mxu1 %v7520_v53  ;;  %v7600_v53 = vld [vmem:[#allocation5 + $0x3e4] ss:$8 sps:$4 sm:$0xff]  }
  0x72   :  { %5071 = vmatpush2.bf16.msra.mxu0 %v7519_v54  ;;  %v7595_v54 = vld [vmem:[#allocation5 + $0x2e0] ss:$8 sps:$4 sm:$0xff]  }
  0x73   :  { %5072 = vmatprep.subr.bf16.mxu0 %v7523_v55  ;;  %5124 = vmatpush2.bf16.msra.mxu1 %v7522_v56  ;;  %v7603_v55 = vld [vmem:[#allocation5 + $0x2d4] ss:$8 sps:$4 sm:$0xff]   ;;  %v7598_v56 = vld [vmem:[#allocation5 + $0x3e0] ss:$8 sps:$4 sm:$0xff]  }
  0x74   :  { %5125 = vmatprep.subr.bf16.mxu1 %v7526_v57  ;;  %v7606_v57 = vld [vmem:[#allocation5 + $0x3d4] ss:$8 sps:$4 sm:$0xff]  }
  0x76   :  { %5073 = vmatpush2.bf16.msra.mxu0 %v7525_v58  ;;  %v7601_v58 = vld [vmem:[#allocation5 + $0x2d0] ss:$8 sps:$4 sm:$0xff]  }
  0x77   :  { %5074 = vmatprep.subr.bf16.mxu0 %v7529_v59  ;;  %5126 = vmatpush2.bf16.msra.mxu1 %v7528_v60  ;;  %v7609_v59 = vld [vmem:[#allocation5 + $0x2c4] ss:$8 sps:$4 sm:$0xff]   ;;  %v7604_v60 = vld [vmem:[#allocation5 + $0x3d0] ss:$8 sps:$4 sm:$0xff]  }
  0x78   :  { %5127 = vmatprep.subr.bf16.mxu1 %v7532_v61  ;;  %v7612_v61 = vld [vmem:[#allocation5 + $0x3c4] ss:$8 sps:$4 sm:$0xff]  }
  0x7a   :  { %5075 = vmatpush2.bf16.msra.mxu0 %v7531_v62  ;;  %v7607_v62 = vld [vmem:[#allocation5 + $0x2c0] ss:$8 sps:$4 sm:$0xff]  }
  0x7b   :  { %5076 = vmatprep.subr.bf16.mxu0 %v7535_v63  ;;  %5128 = vmatpush2.bf16.msra.mxu1 %v7534_v0  ;;  %v7615_v63 = vld [vmem:[#allocation5 + $0x2b4] ss:$8 sps:$4 sm:$0xff]   ;;  %v7610_v0 = vld [vmem:[#allocation5 + $0x3c0] ss:$8 sps:$4 sm:$0xff]  }
  0x7c   :  { %5129 = vmatprep.subr.bf16.mxu1 %v7538_v2  ;;  %v7613_v2 = vld [vmem:[#allocation5 + $0x2b0] ss:$8 sps:$4 sm:$0xff]  }
  0x7e   :  { %5077 = vmatpush2.bf16.msra.mxu0 %v7537_v1  ;;  %v7618_v1 = vld [vmem:[#allocation5 + $0x3b4] ss:$8 sps:$4 sm:$0xff]  }
  0x7f   :  { %5152 = vmatprep.subr.bf16.mxu0 %v7543_v5  ;;  %5130 = vmatpush2.bf16.msra.mxu1 %v7540_v3  ;;  %v7621_v3 = vld [vmem:[#allocation5 + $0x2a4] ss:$8 sps:$4 sm:$0xff]  }
  0x80   :  { %5205 = vmatprep.subr.bf16.mxu1 %v7546_v8  ;;  %v7624_v5 = vld [vmem:[#allocation5 + $0x3a4] ss:$8 sps:$4 sm:$0xff]   ;;  %v7622_v8 = vld [vmem:[#allocation5 + $0x3a0] ss:$8 sps:$4 sm:$0xff]  }
  0x81   :  { %5079 = vmatmul.mubr.bf16.vlgmr.msra.gmra.mxu0 %v134_v7  ;;  %v7627_v7 = vld [vmem:[#allocation5 + $0x294] ss:$8 sps:$4 sm:$0xff]  }
  0x82   :  { %5153 = vmatpush1.bf16.msra.mxu0 %v7541_v10  ;;  %5088 = vmatprep.mubr.bf16.mxu0 %v185_v9  ;;  %v7630_v9 = vld [vmem:[#allocation5 + $0x394] ss:$8 sps:$4 sm:$0xff]   ;;  %v7625_v10 = vld [vmem:[#allocation5 + $0x290] ss:$8 sps:$4 sm:$0xff]  }
  0x83   :  { %5132 = vmatmul.mubr.bf16.vlgmr.msra.gmra.mxu1 %v136_v11  ;;  %5154 = vmatprep.subr.bf16.mxu0 %v7549_v12  ;;  %v7633_v11 = vld [vmem:[#allocation5 + $0x284] ss:$8 sps:$4 sm:$0xff]   ;;  %v7628_v12 = vld [vmem:[#allocation5 + $0x390] ss:$8 sps:$4 sm:$0xff]  }
  0x84   :  { %5206 = vmatpush1.bf16.msra.mxu1 %v7544_v14  ;;  %5141 = vmatprep.mubr.bf16.mxu1 %v187_v13  ;;  %v7631_v13 = vld [vmem:[#allocation5 + $0x280] ss:$8 sps:$4 sm:$0xff]   ;;  %v7636_v14 = vld [vmem:[#allocation5 + $0x384] ss:$8 sps:$4 sm:$0xff]  }
  0x85   :  { %5207 = vmatprep.subr.bf16.mxu1 %v7552_v15  ;;  %v7634_v15 = vld [vmem:[#allocation5 + $0x380] ss:$8 sps:$4 sm:$0xff]  }
  0x86   :  { %5155 = vmatpush1.bf16.msra.mxu0 %v7547_v16  ;;  %v88_v16 = vld [vmem:[#allocation2 + $0x20] sm:$0xff] }
  0x87   :  { %5156 = vmatprep.subr.bf16.mxu0 %v7555_v17  ;;  %v7639_v17 = vld [vmem:[#allocation5 + $0x474] ss:$8 sps:$4 sm:$0xff]  }
  0x88   :  { %5208 = vmatpush1.bf16.msra.mxu1 %v7550_v18  ;;  %v90_v18 = vld [vmem:[#allocation2 + $0x30] sm:$0xff] }
  0x89   :  { %5209 = vmatprep.subr.bf16.mxu1 %v7558_v19  ;;  %5089 = vmatmul.mubr.bf16.gmra.mxu0 %v184_v20  ;;  %v138_v19 = vunpack.c.l.s8.bf16 %v88_v16  ;;  %v7642_v20 = vld [vmem:[#allocation5 + $0x574] ss:$8 sps:$4 sm:$0xff]  }
  0x8a   :  { %5157 = vmatpush1.bf16.msra.mxu0 %v7553_v21  ;;  %5184 = vmatprep.mubr.bf16.mxu0 %v139_v40  ;;  %v7637_v21 = vld [vmem:[#allocation5 + $0x470] ss:$8 sps:$4 sm:$0xff]  }
  0x8b   :  { %5158 = vmatprep.subr.bf16.mxu0 %v7561_v22  ;;  %5142 = vmatmul.mubr.bf16.gmra.mxu1 %v186_v23  ;;  %v189_v22 = vunpack.c.h.s8.bf16 %v8855_v38  ;;  %v140_v23 = vunpack.c.l.s8.bf16 %v90_v18  ;;  %v7657_v38 = vld [vmem:[#allocation5 + $0x444] ss:$8 sps:$4 sm:$0xff]  }
  0x8c   :  { %5210 = vmatpush1.bf16.msra.mxu1 %v7556_v24  ;;  %5237 = vmatprep.mubr.bf16.mxu1 %v141_v44  ;;  %v7645_v24 = vld [vmem:[#allocation5 + $0x464] ss:$8 sps:$4 sm:$0xff]   ;;  %v7658_v44 = vld [vmem:[#allocation5 + $0x540] ss:$8 sps:$4 sm:$0xff]  }
  0x8d   :  { %5211 = vmatprep.subr.bf16.mxu1 %v7564_v25  ;;  %v7640_v25 = vld [vmem:[#allocation5 + $0x570] ss:$8 sps:$4 sm:$0xff]  }
  0x8e   :  { %5159 = vmatpush1.bf16.msra.mxu0 %v7559_v26  ;;  %v191_v26 = vunpack.c.h.s8.bf16 %v8858_v42  ;;  %v7655_v42 = vld [vmem:[#allocation5 + $0x440] ss:$8 sps:$4 sm:$0xff]  }
  0x8f   :  { %5160 = vmatprep.subr.bf16.mxu0 %v7567_v27  ;;  %v7648_v27 = vld [vmem:[#allocation5 + $0x564] ss:$8 sps:$4 sm:$0xff]  }
  0x90   :  { %5212 = vmatpush1.bf16.msra.mxu1 %v7562_v28  ;;  %v7643_v28 = vld [vmem:[#allocation5 + $0x460] ss:$8 sps:$4 sm:$0xff]  }
  0x91   :  { %5213 = vmatprep.subr.bf16.mxu1 %v7570_v29  ;;  %v7651_v29 = vld [vmem:[#allocation5 + $0x454] ss:$8 sps:$4 sm:$0xff]  }
  0x92   :  { %5161 = vmatpush1.bf16.msra.mxu0 %v7565_v30  ;;  %v8863_v30 = vld [vmem:[#allocation2 + $0x48] sm:$0xff] }
  0x93   :  { %5162 = vmatprep.subr.bf16.mxu0 %v7573_v31  ;;  %v7646_v31 = vld [vmem:[#allocation5 + $0x560] ss:$8 sps:$4 sm:$0xff]  }
  0x94   :  { %5214 = vmatpush1.bf16.msra.mxu1 %v7568_v32  ;;  %v188_v32 = vunpack.c.h.s8.bf16 %v88_v16  ;;  %v7712_v16 = vld [vmem:[#allocation5 + $0x5b0] ss:$8 sps:$4 sm:$0xff]  }
  0x95   :  { %5215 = vmatprep.subr.bf16.mxu1 %v7576_v33  ;;  %v7654_v33 = vld [vmem:[#allocation5 + $0x554] ss:$8 sps:$4 sm:$0xff]  }
  0x96   :  { %5163 = vmatpush1.bf16.msra.mxu0 %v7571_v34  ;;  %v8865_v34 = vld [vmem:[#allocation2 + $0x58] sm:$0xff] }
  0x97   :  { %5164 = vmatprep.subr.bf16.mxu0 %v7579_v35  ;;  %v7649_v35 = vld [vmem:[#allocation5 + $0x450] ss:$8 sps:$4 sm:$0xff]   ;;  %v145_v40 = vunpack.c.l.s8.bf16 %v8865_v34 }
  0x98   :  { %5216 = vmatpush1.bf16.msra.mxu1 %v7574_v36  ;;  %v143_v36 = vunpack.c.l.s8.bf16 %v8863_v30 }
  0x99   :  { %5217 = vmatprep.subr.bf16.mxu1 %v7582_v37  ;;  %v190_v37 = vunpack.c.h.s8.bf16 %v90_v18  ;;  %v7715_v18 = vld [vmem:[#allocation5 + $0x4a0] ss:$8 sps:$4 sm:$0xff]  }
  0x9a   :  { %5165 = vmatpush1.bf16.msra.mxu0 %v7577_v39  ;;  %v7652_v39 = vld [vmem:[#allocation5 + $0x550] ss:$8 sps:$4 sm:$0xff]  }
  0x9b   :  { %5166 = vmatprep.subr.bf16.mxu0 %v7585_v41  ;;  %v7660_v41 = vld [vmem:[#allocation5 + $0x544] ss:$8 sps:$4 sm:$0xff]  }
  0x9c   :  { %5218 = vmatpush1.bf16.msra.mxu1 %v7580_v43  ;;  %v7663_v43 = vld [vmem:[#allocation5 + $0x434] ss:$8 sps:$4 sm:$0xff]  }
  0x9d   :  { %5219 = vmatprep.subr.bf16.mxu1 %v7588_v45  ;;  %v7666_v45 = vld [vmem:[#allocation5 + $0x534] ss:$8 sps:$4 sm:$0xff]  }
  0x9e   :  { %5167 = vmatpush1.bf16.msra.mxu0 %v7583_v46  ;;  %v7661_v46 = vld [vmem:[#allocation5 + $0x430] ss:$8 sps:$4 sm:$0xff]  }
  0x9f   :  { %5168 = vmatprep.subr.bf16.mxu0 %v7591_v47  ;;  %v7669_v47 = vld [vmem:[#allocation5 + $0x424] ss:$8 sps:$4 sm:$0xff]  }
  0xa0   :  { %5220 = vmatpush1.bf16.msra.mxu1 %v7586_v48  ;;  %v7664_v48 = vld [vmem:[#allocation5 + $0x530] ss:$8 sps:$4 sm:$0xff]  }
  0xa1   :  { %5221 = vmatprep.subr.bf16.mxu1 %v7594_v49  ;;  %v7672_v49 = vld [vmem:[#allocation5 + $0x524] ss:$8 sps:$4 sm:$0xff]  }
  0xa2   :  { %5169 = vmatpush2.bf16.msra.mxu0 %v7589_v50  ;;  %v7667_v50 = vld [vmem:[#allocation5 + $0x420] ss:$8 sps:$4 sm:$0xff]  }
  0xa3   :  { %5170 = vmatprep.subr.bf16.mxu0 %v7597_v51  ;;  %v7675_v51 = vld [vmem:[#allocation5 + $0x414] ss:$8 sps:$4 sm:$0xff]  }
  0xa4   :  { %5222 = vmatpush2.bf16.msra.mxu1 %v7592_v52  ;;  %v7670_v52 = vld [vmem:[#allocation5 + $0x520] ss:$8 sps:$4 sm:$0xff]  }
  0xa5   :  { %5223 = vmatprep.subr.bf16.mxu1 %v7600_v53  ;;  %v7678_v53 = vld [vmem:[#allocation5 + $0x514] ss:$8 sps:$4 sm:$0xff]  }
  0xa6   :  { %5171 = vmatpush2.bf16.msra.mxu0 %v7595_v54  ;;  %v7673_v54 = vld [vmem:[#allocation5 + $0x410] ss:$8 sps:$4 sm:$0xff]  }
  0xa7   :  { %5172 = vmatprep.subr.bf16.mxu0 %v7603_v55  ;;  %v7681_v55 = vld [vmem:[#allocation5 + $0x404] ss:$8 sps:$4 sm:$0xff]  }
  0xa8   :  { %5224 = vmatpush2.bf16.msra.mxu1 %v7598_v56  ;;  %v7676_v56 = vld [vmem:[#allocation5 + $0x510] ss:$8 sps:$4 sm:$0xff]  }
  0xa9   :  { %5225 = vmatprep.subr.bf16.mxu1 %v7606_v57  ;;  %v7684_v57 = vld [vmem:[#allocation5 + $0x504] ss:$8 sps:$4 sm:$0xff]  }
  0xaa   :  { %5173 = vmatpush2.bf16.msra.mxu0 %v7601_v58  ;;  %v7679_v58 = vld [vmem:[#allocation5 + $0x400] ss:$8 sps:$4 sm:$0xff]  }
  0xab   :  { %5174 = vmatprep.subr.bf16.mxu0 %v7609_v59  ;;  %v7687_v59 = vld [vmem:[#allocation5 + $0x4f4] ss:$8 sps:$4 sm:$0xff]  }
  0xac   :  { %5226 = vmatpush2.bf16.msra.mxu1 %v7604_v60  ;;  %v7682_v60 = vld [vmem:[#allocation5 + $0x500] ss:$8 sps:$4 sm:$0xff]  }
  0xad   :  { %5227 = vmatprep.subr.bf16.mxu1 %v7612_v61  ;;  %v7690_v61 = vld [vmem:[#allocation5 + $0x5f4] ss:$8 sps:$4 sm:$0xff]  }
  0xae   :  { %5175 = vmatpush2.bf16.msra.mxu0 %v7607_v62  ;;  %v7685_v62 = vld [vmem:[#allocation5 + $0x4f0] ss:$8 sps:$4 sm:$0xff]  }
  0xaf   :  { %5176 = vmatprep.subr.bf16.mxu0 %v7615_v63  ;;  %v7693_v63 = vld [vmem:[#allocation5 + $0x4e4] ss:$8 sps:$4 sm:$0xff]  }
  0xb0   :  { %5228 = vmatpush2.bf16.msra.mxu1 %v7610_v0  ;;  %v7688_v0 = vld [vmem:[#allocation5 + $0x5f0] ss:$8 sps:$4 sm:$0xff]  }
  0xb1   :  { %5229 = vmatprep.subr.bf16.mxu1 %v7618_v1  ;;  %v7696_v1 = vld [vmem:[#allocation5 + $0x5e4] ss:$8 sps:$4 sm:$0xff]  }
  0xb2   :  { %5177 = vmatpush2.bf16.msra.mxu0 %v7613_v2  ;;  %v7691_v2 = vld [vmem:[#allocation5 + $0x4e0] ss:$8 sps:$4 sm:$0xff]  }
  0xb3   :  { %5178 = vmatprep.subr.bf16.mxu0 %v7621_v3  ;;  %v7699_v3 = vld [vmem:[#allocation5 + $0x4d4] ss:$8 sps:$4 sm:$0xff]  }
  0xb4   :  { %5230 = vmatpush2.bf16.msra.mxu1 %v7616_v4  ;;  %v7694_v4 = vld [vmem:[#allocation5 + $0x5e0] ss:$8 sps:$4 sm:$0xff]  }
  0xb5   :  { %5231 = vmatprep.subr.bf16.mxu1 %v7624_v5  ;;  %v7702_v5 = vld [vmem:[#allocation5 + $0x5d4] ss:$8 sps:$4 sm:$0xff]  }
  0xb6   :  { %5179 = vmatpush2.bf16.msra.mxu0 %v7619_v6  ;;  %v7697_v6 = vld [vmem:[#allocation5 + $0x4d0] ss:$8 sps:$4 sm:$0xff]  }
  0xb7   :  { %5180 = vmatprep.subr.bf16.mxu0 %v7627_v7  ;;  %v7705_v7 = vld [vmem:[#allocation5 + $0x4c4] ss:$8 sps:$4 sm:$0xff]  }
  0xb8   :  { %5232 = vmatpush2.bf16.msra.mxu1 %v7622_v8  ;;  %v7700_v8 = vld [vmem:[#allocation5 + $0x5d0] ss:$8 sps:$4 sm:$0xff]  }
  0xb9   :  { %5233 = vmatprep.subr.bf16.mxu1 %v7630_v9  ;;  %v7708_v9 = vld [vmem:[#allocation5 + $0x5c4] ss:$8 sps:$4 sm:$0xff]  }
  0xba   :  { %5181 = vmatpush2.bf16.msra.mxu0 %v7625_v10  ;;  %v7703_v10 = vld [vmem:[#allocation5 + $0x4c0] ss:$8 sps:$4 sm:$0xff]  }
  0xbb   :  { %5182 = vmatprep.subr.bf16.mxu0 %v7633_v11  ;;  %v7711_v11 = vld [vmem:[#allocation5 + $0x4b4] ss:$8 sps:$4 sm:$0xff]  }
  0xbc   :  { %5234 = vmatpush2.bf16.msra.mxu1 %v7628_v12  ;;  %v7706_v12 = vld [vmem:[#allocation5 + $0x5c0] ss:$8 sps:$4 sm:$0xff]  }
  0xbd   :  { %5235 = vmatprep.subr.bf16.mxu1 %v7636_v14  ;;  %v7709_v14 = vld [vmem:[#allocation5 + $0x4b0] ss:$8 sps:$4 sm:$0xff]  }
  0xbe   :  { %5183 = vmatpush2.bf16.msra.mxu0 %v7631_v13  ;;  %v7714_v13 = vld [vmem:[#allocation5 + $0x5b4] ss:$8 sps:$4 sm:$0xff]  }
  0xbf   :  { %5258 = vmatprep.subr.bf16.mxu0 %v7639_v17  ;;  %v7720_v17 = vld [vmem:[#allocation5 + $0x5a4] ss:$8 sps:$4 sm:$0xff]  }
  0xc0   :  { %5236 = vmatpush2.bf16.msra.mxu1 %v7634_v15  ;;  %v7717_v15 = vld [vmem:[#allocation5 + $0x4a4] ss:$8 sps:$4 sm:$0xff]  }
  0xc1   :  { %5185 = vmatmul.mubr.bf16.vlgmr.msra.gmra.mxu0 %v138_v19  ;;  %5311 = vmatprep.subr.bf16.mxu1 %v7642_v20  ;;  %v7723_v19 = vld [vmem:[#allocation5 + $0x494] ss:$8 sps:$4 sm:$0xff]   ;;  %v7718_v20 = vld [vmem:[#allocation5 + $0x5a0] ss:$8 sps:$4 sm:$0xff]  }
  0xc2   :  { %5259 = vmatpush1.bf16.msra.mxu0 %v7637_v21  ;;  %5194 = vmatprep.mubr.bf16.mxu0 %v189_v22  ;;  %v7726_v21 = vld [vmem:[#allocation5 + $0x594] ss:$8 sps:$4 sm:$0xff]   ;;  %v7721_v22 = vld [vmem:[#allocation5 + $0x490] ss:$8 sps:$4 sm:$0xff]  }
  0xc3   :  { %5238 = vmatmul.mubr.bf16.vlgmr.msra.gmra.mxu1 %v140_v23  ;;  %5260 = vmatprep.subr.bf16.mxu0 %v7645_v24  ;;  %v7729_v23 = vld [vmem:[#allocation5 + $0x484] ss:$8 sps:$4 sm:$0xff]   ;;  %v7724_v24 = vld [vmem:[#allocation5 + $0x590] ss:$8 sps:$4 sm:$0xff]  }
  0xc4   :  { %5312 = vmatpush1.bf16.msra.mxu1 %v7640_v25  ;;  %5247 = vmatprep.mubr.bf16.mxu1 %v191_v26  ;;  %v7727_v25 = vld [vmem:[#allocation5 + $0x480] ss:$8 sps:$4 sm:$0xff]   ;;  %v7732_v26 = vld [vmem:[#allocation5 + $0x584] ss:$8 sps:$4 sm:$0xff]  }
  0xc5   :  { %5313 = vmatprep.subr.bf16.mxu1 %v7648_v27  ;;  %v92_v27 = vld [vmem:[#allocation2 + $0x40] sm:$0xff] }
  0xc6   :  { %5261 = vmatpush1.bf16.msra.mxu0 %v7643_v28  ;;  %v7735_v28 = vld [vmem:[#allocation5 + $0x674] ss:$8 sps:$4 sm:$0xff]  }
  0xc7   :  { %5262 = vmatprep.subr.bf16.mxu0 %v7651_v29  ;;  %v7730_v29 = vld [vmem:[#allocation5 + $0x580] ss:$8 sps:$4 sm:$0xff]  }
  0xc8   :  { %5314 = vmatpush1.bf16.msra.mxu1 %v7646_v31  ;;  %v94_v31 = vld [vmem:[#allocation2 + $0x50] sm:$0xff] }
  0xc9   :  { %5195 = vmatmul.mubr.bf16.gmra.mxu0 %v188_v32  ;;  %5315 = vmatprep.subr.bf16.mxu1 %v7654_v33  ;;  %v142_v32 = vunpack.c.l.s8.bf16 %v92_v27  ;;  %v7738_v33 = vld [vmem:[#allocation5 + $0x774] ss:$8 sps:$4 sm:$0xff]  }
  0xca   :  { %5263 = vmatpush1.bf16.msra.mxu0 %v7649_v35  ;;  %5290 = vmatprep.mubr.bf16.mxu0 %v143_v36  ;;  %v7733_v35 = vld [vmem:[#allocation5 + $0x670] ss:$8 sps:$4 sm:$0xff]   ;;  %v193_v36 = vunpack.c.h.s8.bf16 %v8863_v30  ;;  %v7742_v30 = vld [vmem:[#allocation5 + $0x760] ss:$8 sps:$4 sm:$0xff]  }
  0xcb   :  { %5248 = vmatmul.mubr.bf16.gmra.mxu1 %v190_v37  ;;  %5264 = vmatprep.subr.bf16.mxu0 %v7657_v38  ;;  %v144_v37 = vunpack.c.l.s8.bf16 %v94_v31  ;;  %v7741_v38 = vld [vmem:[#allocation5 + $0x664] ss:$8 sps:$4 sm:$0xff]  }
  0xcc   :  { %5316 = vmatpush1.bf16.msra.mxu1 %v7652_v39  ;;  %5343 = vmatprep.mubr.bf16.mxu1 %v145_v40  ;;  %v7736_v39 = vld [vmem:[#allocation5 + $0x770] ss:$8 sps:$4 sm:$0xff]   ;;  %v195_v40 = vunpack.c.h.s8.bf16 %v8865_v34 }
  0xcd   :  { %5317 = vmatprep.subr.bf16.mxu1 %v7660_v41  ;;  %v7739_v41 = vld [vmem:[#allocation5 + $0x660] ss:$8 sps:$4 sm:$0xff]   ;;  %v7745_v34 = vld [vmem:[#allocation5 + $0x650] ss:$8 sps:$4 sm:$0xff]  }
  0xce   :  { %5265 = vmatpush1.bf16.msra.mxu0 %v7655_v42  ;;  %v7744_v42 = vld [vmem:[#allocation5 + $0x764] ss:$8 sps:$4 sm:$0xff]  }
  0xcf   :  { %5266 = vmatprep.subr.bf16.mxu0 %v7663_v43  ;;  %v7747_v43 = vld [vmem:[#allocation5 + $0x654] ss:$8 sps:$4 sm:$0xff]  }
  0xd0   :  { %5318 = vmatpush1.bf16.msra.mxu1 %v7658_v44  ;;  %v8871_v44 = vld [vmem:[#allocation2 + $0x68] sm:$0xff] }
  0xd1   :  { %5319 = vmatprep.subr.bf16.mxu1 %v7666_v45  ;;  %v192_v45 = vunpack.c.h.s8.bf16 %v92_v27  ;;  %v7813_v27 = vld [vmem:[#allocation5 + $0x6a4] ss:$8 sps:$4 sm:$0xff]  }
  0xd2   :  { %5267 = vmatpush1.bf16.msra.mxu0 %v7661_v46  ;;  %v7750_v46 = vld [vmem:[#allocation5 + $0x754] ss:$8 sps:$4 sm:$0xff]  }
  0xd3   :  { %5268 = vmatprep.subr.bf16.mxu0 %v7669_v47  ;;  %v8873_v47 = vld [vmem:[#allocation2 + $0x78] sm:$0xff] }
  0xd4   :  { %5320 = vmatpush1.bf16.msra.mxu1 %v7664_v48  ;;  %v147_v48 = vunpack.c.l.s8.bf16 %v8871_v44 }
  0xd5   :  { %5321 = vmatprep.subr.bf16.mxu1 %v7672_v49  ;;  %v194_v49 = vunpack.c.h.s8.bf16 %v94_v31  ;;  %v7811_v31 = vld [vmem:[#allocation5 + $0x6a0] ss:$8 sps:$4 sm:$0xff]  }
  0xd6   :  { %5269 = vmatpush1.bf16.msra.mxu0 %v7667_v50  ;;  %v7753_v50 = vld [vmem:[#allocation5 + $0x644] ss:$8 sps:$4 sm:$0xff]  }
  0xd7   :  { %5270 = vmatprep.subr.bf16.mxu0 %v7675_v51  ;;  %v7748_v51 = vld [vmem:[#allocation5 + $0x750] ss:$8 sps:$4 sm:$0xff]  }
  0xd8   :  { %5322 = vmatpush1.bf16.msra.mxu1 %v7670_v52  ;;  %v149_v52 = vunpack.c.l.s8.bf16 %v8873_v47 }
  0xd9   :  { %5323 = vmatprep.subr.bf16.mxu1 %v7678_v53  ;;  %v7756_v53 = vld [vmem:[#allocation5 + $0x744] ss:$8 sps:$4 sm:$0xff]  }
  0xda   :  { %5271 = vmatpush1.bf16.msra.mxu0 %v7673_v54  ;;  %v7751_v54 = vld [vmem:[#allocation5 + $0x640] ss:$8 sps:$4 sm:$0xff]  }
  0xdb   :  { %5272 = vmatprep.subr.bf16.mxu0 %v7681_v55  ;;  %v7759_v55 = vld [vmem:[#allocation5 + $0x634] ss:$8 sps:$4 sm:$0xff]  }
  0xdc   :  { %5324 = vmatpush1.bf16.msra.mxu1 %v7676_v56  ;;  %v7754_v56 = vld [vmem:[#allocation5 + $0x740] ss:$8 sps:$4 sm:$0xff]  }
  0xdd   :  { %5325 = vmatprep.subr.bf16.mxu1 %v7684_v57  ;;  %v7762_v57 = vld [vmem:[#allocation5 + $0x734] ss:$8 sps:$4 sm:$0xff]  }
  0xde   :  { %5273 = vmatpush1.bf16.msra.mxu0 %v7679_v58  ;;  %v7757_v58 = vld [vmem:[#allocation5 + $0x630] ss:$8 sps:$4 sm:$0xff]  }
  0xdf   :  { %5274 = vmatprep.subr.bf16.mxu0 %v7687_v59  ;;  %v7765_v59 = vld [vmem:[#allocation5 + $0x624] ss:$8 sps:$4 sm:$0xff]  }
  0xe0   :  { %5326 = vmatpush1.bf16.msra.mxu1 %v7682_v60  ;;  %v7760_v60 = vld [vmem:[#allocation5 + $0x730] ss:$8 sps:$4 sm:$0xff]  }
  0xe1   :  { %5327 = vmatprep.subr.bf16.mxu1 %v7690_v61  ;;  %v7768_v61 = vld [vmem:[#allocation5 + $0x724] ss:$8 sps:$4 sm:$0xff]  }
  0xe2   :  { %5275 = vmatpush2.bf16.msra.mxu0 %v7685_v62  ;;  %v7763_v62 = vld [vmem:[#allocation5 + $0x620] ss:$8 sps:$4 sm:$0xff]  }
  0xe3   :  { %5276 = vmatprep.subr.bf16.mxu0 %v7693_v63  ;;  %v7771_v63 = vld [vmem:[#allocation5 + $0x614] ss:$8 sps:$4 sm:$0xff]  }
  0xe4   :  { %5328 = vmatpush2.bf16.msra.mxu1 %v7688_v0  ;;  %v7766_v0 = vld [vmem:[#allocation5 + $0x720] ss:$8 sps:$4 sm:$0xff]  }
  0xe5   :  { %5329 = vmatprep.subr.bf16.mxu1 %v7696_v1  ;;  %v7774_v1 = vld [vmem:[#allocation5 + $0x714] ss:$8 sps:$4 sm:$0xff]  }
  0xe6   :  { %5277 = vmatpush2.bf16.msra.mxu0 %v7691_v2  ;;  %v7769_v2 = vld [vmem:[#allocation5 + $0x610] ss:$8 sps:$4 sm:$0xff]  }
  0xe7   :  { %5278 = vmatprep.subr.bf16.mxu0 %v7699_v3  ;;  %v7777_v3 = vld [vmem:[#allocation5 + $0x604] ss:$8 sps:$4 sm:$0xff]  }
  0xe8   :  { %5330 = vmatpush2.bf16.msra.mxu1 %v7694_v4  ;;  %v7772_v4 = vld [vmem:[#allocation5 + $0x710] ss:$8 sps:$4 sm:$0xff]  }
  0xe9   :  { %5331 = vmatprep.subr.bf16.mxu1 %v7702_v5  ;;  %v7780_v5 = vld [vmem:[#allocation5 + $0x704] ss:$8 sps:$4 sm:$0xff]  }
  0xea   :  { %5279 = vmatpush2.bf16.msra.mxu0 %v7697_v6  ;;  %v7775_v6 = vld [vmem:[#allocation5 + $0x600] ss:$8 sps:$4 sm:$0xff]  }
  0xeb   :  { %5280 = vmatprep.subr.bf16.mxu0 %v7705_v7  ;;  %v7783_v7 = vld [vmem:[#allocation5 + $0x6f4] ss:$8 sps:$4 sm:$0xff]  }
  0xec   :  { %5332 = vmatpush2.bf16.msra.mxu1 %v7700_v8  ;;  %v7778_v8 = vld [vmem:[#allocation5 + $0x700] ss:$8 sps:$4 sm:$0xff]  }
  0xed   :  { %5333 = vmatprep.subr.bf16.mxu1 %v7708_v9  ;;  %v7786_v9 = vld [vmem:[#allocation5 + $0x7f4] ss:$8 sps:$4 sm:$0xff]  }
  0xee   :  { %5281 = vmatpush2.bf16.msra.mxu0 %v7703_v10  ;;  %v7781_v10 = vld [vmem:[#allocation5 + $0x6f0] ss:$8 sps:$4 sm:$0xff]  }
  0xef   :  { %5282 = vmatprep.subr.bf16.mxu0 %v7711_v11  ;;  %v7789_v11 = vld [vmem:[#allocation5 + $0x6e4] ss:$8 sps:$4 sm:$0xff]  }
  0xf0   :  { %5334 = vmatpush2.bf16.msra.mxu1 %v7706_v12  ;;  %v7784_v12 = vld [vmem:[#allocation5 + $0x7f0] ss:$8 sps:$4 sm:$0xff]  }
  0xf1   :  { %5335 = vmatprep.subr.bf16.mxu1 %v7714_v13  ;;  %v7792_v13 = vld [vmem:[#allocation5 + $0x7e4] ss:$8 sps:$4 sm:$0xff]  }
  0xf2   :  { %5283 = vmatpush2.bf16.msra.mxu0 %v7709_v14  ;;  %v7787_v14 = vld [vmem:[#allocation5 + $0x6e0] ss:$8 sps:$4 sm:$0xff]  }
  0xf3   :  { %5284 = vmatprep.subr.bf16.mxu0 %v7717_v15  ;;  %v7795_v15 = vld [vmem:[#allocation5 + $0x6d4] ss:$8 sps:$4 sm:$0xff]  }
  0xf4   :  { %5336 = vmatpush2.bf16.msra.mxu1 %v7712_v16  ;;  %v7790_v16 = vld [vmem:[#allocation5 + $0x7e0] ss:$8 sps:$4 sm:$0xff]  }
  0xf5   :  { %5337 = vmatprep.subr.bf16.mxu1 %v7720_v17  ;;  %v7798_v17 = vld [vmem:[#allocation5 + $0x7d4] ss:$8 sps:$4 sm:$0xff]  }
  0xf6   :  { %5285 = vmatpush2.bf16.msra.mxu0 %v7715_v18  ;;  %v7793_v18 = vld [vmem:[#allocation5 + $0x6d0] ss:$8 sps:$4 sm:$0xff]  }
  0xf7   :  { %5286 = vmatprep.subr.bf16.mxu0 %v7723_v19  ;;  %v7801_v19 = vld [vmem:[#allocation5 + $0x6c4] ss:$8 sps:$4 sm:$0xff]  }
  0xf8   :  { %5338 = vmatpush2.bf16.msra.mxu1 %v7718_v20  ;;  %v7796_v20 = vld [vmem:[#allocation5 + $0x7d0] ss:$8 sps:$4 sm:$0xff]  }
  0xf9   :  { %5339 = vmatprep.subr.bf16.mxu1 %v7726_v21  ;;  %v7804_v21 = vld [vmem:[#allocation5 + $0x7c4] ss:$8 sps:$4 sm:$0xff]  }
  0xfa   :  { %5287 = vmatpush2.bf16.msra.mxu0 %v7721_v22  ;;  %v7799_v22 = vld [vmem:[#allocation5 + $0x6c0] ss:$8 sps:$4 sm:$0xff]  }
  0xfb   :  { %5288 = vmatprep.subr.bf16.mxu0 %v7729_v23  ;;  %v7807_v23 = vld [vmem:[#allocation5 + $0x6b4] ss:$8 sps:$4 sm:$0xff]  }
  0xfc   :  { %5340 = vmatpush2.bf16.msra.mxu1 %v7724_v24  ;;  %v7802_v24 = vld [vmem:[#allocation5 + $0x7c0] ss:$8 sps:$4 sm:$0xff]  }
  0xfd   :  { %5341 = vmatprep.subr.bf16.mxu1 %v7732_v26  ;;  %v7805_v26 = vld [vmem:[#allocation5 + $0x6b0] ss:$8 sps:$4 sm:$0xff]  }
  0xfe   :  { %5289 = vmatpush2.bf16.msra.mxu0 %v7727_v25  ;;  %v7810_v25 = vld [vmem:[#allocation5 + $0x7b4] ss:$8 sps:$4 sm:$0xff]  }
  0xff   :  { %5364 = vmatprep.subr.bf16.mxu0 %v7735_v28  ;;  %v7808_v28 = vld [vmem:[#allocation5 + $0x7b0] ss:$8 sps:$4 sm:$0xff]  }
 0x100   :  { %5342 = vmatpush2.bf16.msra.mxu1 %v7730_v29  ;;  %v7816_v29 = vld [vmem:[#allocation5 + $0x7a4] ss:$8 sps:$4 sm:$0xff]  }
 0x101   :  { %5291 = vmatmul.mubr.bf16.vlgmr.msra.gmra.mxu0 %v142_v32  ;;  %5417 = vmatprep.subr.bf16.mxu1 %v7738_v33  ;;  %v1036_v32 = vlaneseq  ;;  %v7819_v33 = vld [vmem:[#allocation5 + $0x694] ss:$8 sps:$4 sm:$0xff]  }
 0x102   :  { %5365 = vmatpush1.bf16.msra.mxu0 %v7733_v35  ;;  %5300 = vmatprep.mubr.bf16.mxu0 %v193_v36  ;;  %v7814_v35 = vld [vmem:[#allocation5 + $0x7a0] ss:$8 sps:$4 sm:$0xff]   ;;  %v7822_v36 = vld [vmem:[#allocation5 + $0x794] ss:$8 sps:$4 sm:$0xff]  }
 0x103   :  { %5344 = vmatmul.mubr.bf16.vlgmr.msra.gmra.mxu1 %v144_v37  ;;  %5366 = vmatprep.subr.bf16.mxu0 %v7741_v38  ;;  %v7817_v37 = vld [vmem:[#allocation5 + $0x690] ss:$8 sps:$4 sm:$0xff]   ;;  %v1037_v38 = vshrl.u32 %v1036_v32, 7  ;;  %v7850_v32 = vld [vmem:[#allocation5 + $0x940] ss:$8 sps:$4 sm:$0xff]  }
 0x104   :  { %5418 = vmatpush1.bf16.msra.mxu1 %v7736_v39  ;;  %5353 = vmatprep.mubr.bf16.mxu1 %v195_v40  ;;  %v7825_v39 = vld [vmem:[#allocation5 + $0x684] ss:$8 sps:$4 sm:$0xff]   ;;  %v7820_v40 = vld [vmem:[#allocation5 + $0x790] ss:$8 sps:$4 sm:$0xff]  }
 0x105   :  { %5419 = vmatprep.subr.bf16.mxu1 %v7744_v42  ;;  %v7828_v42 = vld [vmem:[#allocation5 + $0x784] ss:$8 sps:$4 sm:$0xff]  }
 0x106   :  { %5367 = vmatpush1.bf16.msra.mxu0 %v7739_v41  ;;  %v7823_v41 = vld [vmem:[#allocation5 + $0x680] ss:$8 sps:$4 sm:$0xff]  }
 0x107   :  { %5368 = vmatprep.subr.bf16.mxu0 %v7747_v43  ;;  %v1034_v43 = vld [vmem:[#allocation7] sm:$0x3] }
 0x108   :  { %5420 = vmatpush1.bf16.msra.mxu1 %v7742_v30  ;;  %v1038_v30 = vsub.s32 0, %v1037_v38 }
 0x109   :  { %5301 = vmatmul.mubr.bf16.gmra.mxu0 %v192_v45  ;;  %5421 = vmatprep.subr.bf16.mxu1 %v7750_v46  ;;  %v96_v45 = vld [vmem:[#allocation2 + $0x60] sm:$0xff] }
 0x10a   :  { %5369 = vmatpush1.bf16.msra.mxu0 %v7745_v34  ;;  %5396 = vmatprep.mubr.bf16.mxu0 %v147_v48  ;;  %v7831_v46 = vld [vmem:[#allocation5 + $0x874] ss:$8 sps:$4 sm:$0xff]   ;;  %v7826_v34 = vld [vmem:[#allocation5 + $0x780] ss:$8 sps:$4 sm:$0xff]   ;;  %v1042_v48 = vsub.s32 1, %v1037_v38 }
 0x10b   :  { %5354 = vmatmul.mubr.bf16.gmra.mxu1 %v194_v49  ;;  %5370 = vmatprep.subr.bf16.mxu0 %v7753_v50  ;;  %v8877_v49 = vld [vmem:[#allocation2 + $0x70] sm:$0xff]  ;;  %v146_v50 = vunpack.c.l.s8.bf16 %v96_v45 }
 0x10c   :  { %5422 = vmatpush1.bf16.msra.mxu1 %v7748_v51  ;;  %5449 = vmatprep.mubr.bf16.mxu1 %v149_v52  ;;  %v7834_v51 = vld [vmem:[#allocation5 + $0x974] ss:$8 sps:$4 sm:$0xff]   ;;  %v8879_v52 = vrot.slane %v1034_v43, %v1038_v30 }
 0x10d   :  { %5423 = vmatprep.subr.bf16.mxu1 %v7756_v53  ;;  %v7829_v53 = vld [vmem:[#allocation5 + $0x870] ss:$8 sps:$4 sm:$0xff]  }
 0x10e   :  { %5371 = vmatpush1.bf16.msra.mxu0 %v7751_v54  ;;  %v197_v54 = vunpack.c.h.s8.bf16 %v8871_v44  ;;  %v7843_v44 = vld [vmem:[#allocation5 + $0x854] ss:$8 sps:$4 sm:$0xff]  }
 0x10f   :  { %5372 = vmatprep.subr.bf16.mxu0 %v7759_v55  ;;  %v148_v55 = vunpack.c.l.s8.bf16 %v8877_v49 }
 0x110   :  { %5424 = vmatpush1.bf16.msra.mxu1 %v7754_v56  ;;  %v7837_v56 = vld [vmem:[#allocation5 + $0x864] ss:$8 sps:$4 sm:$0xff]  }
 0x111   :  { %5425 = vmatprep.subr.bf16.mxu1 %v7762_v57  ;;  %v8883_v57 = vrot.slane %v1034_v43, %v1042_v48  ;;  %v7864_v48 = vld [vmem:[#allocation5 + $0x924] ss:$8 sps:$4 sm:$0xff]  }
 0x112   :  { %5373 = vmatpush1.bf16.msra.mxu0 %v7757_v58  ;;  %v7832_v58 = vld [vmem:[#allocation5 + $0x970] ss:$8 sps:$4 sm:$0xff]  }
 0x113   :  { %5374 = vmatprep.subr.bf16.mxu0 %v7765_v59  ;;  %v199_v59 = vunpack.c.h.s8.bf16 %v8873_v47  ;;  %v7838_v47 = vld [vmem:[#allocation5 + $0x960] ss:$8 sps:$4 sm:$0xff]  }
 0x114   :  { %5426 = vmatpush1.bf16.msra.mxu1 %v7760_v60 }
 0x115   :  { %5427 = vmatprep.subr.bf16.mxu1 %v7768_v61  ;;  %v7835_v61 = vld [vmem:[#allocation5 + $0x860] ss:$8 sps:$4 sm:$0xff]  }
 0x116   :  { %5375 = vmatpush1.bf16.msra.mxu0 %v7763_v62  ;;  %v7840_v62 = vld [vmem:[#allocation5 + $0x964] ss:$8 sps:$4 sm:$0xff]  }
 0x117   :  { %5376 = vmatprep.subr.bf16.mxu0 %v7771_v63 }
 0x118   :  { %5428 = vmatpush1.bf16.msra.mxu1 %v7766_v0 }
 0x119   :  { %5429 = vmatprep.subr.bf16.mxu1 %v7774_v1 }
 0x11a   :  { %5377 = vmatpush1.bf16.msra.mxu0 %v7769_v2  ;;  %v8887_v2 = vld [vmem:[#allocation2 + $0x88] sm:$0xff] }
 0x11b   :  { %5378 = vmatprep.subr.bf16.mxu0 %v7777_v3 }
 0x11c   :  { %5430 = vmatpush1.bf16.msra.mxu1 %v7772_v4 }
 0x11d   :  { %5431 = vmatprep.subr.bf16.mxu1 %v7780_v5 }
 0x11e   :  { %5379 = vmatpush1.bf16.msra.mxu0 %v7775_v6 }
 0x11f   :  { %5380 = vmatprep.subr.bf16.mxu0 %v7783_v7  ;;  %v196_v7 = vunpack.c.h.s8.bf16 %v96_v45  ;;  %v7856_v45 = vld [vmem:[#allocation5 + $0x930] ss:$8 sps:$4 sm:$0xff]  }
 0x120   :  { %5432 = vmatpush1.bf16.msra.mxu1 %v7778_v8  ;;  %v7846_v8 = vld [vmem:[#allocation5 + $0x954] ss:$8 sps:$4 sm:$0xff]  }
 0x121   :  { %5433 = vmatprep.subr.bf16.mxu1 %v7786_v9  ;;  %v8892_v9 = vld [vmem:[#allocation2 + $0x98] sm:$0xff] }
 0x122   :  { %5381 = vmatpush2.bf16.msra.mxu0 %v7781_v10 }
 0x123   :  { %5382 = vmatprep.subr.bf16.mxu0 %v7789_v11 }
 0x124   :  { %5434 = vmatpush2.bf16.msra.mxu1 %v7784_v12  ;;  %v7841_v12 = vld [vmem:[#allocation5 + $0x850] ss:$8 sps:$4 sm:$0xff]  }
 0x125   :  { %5435 = vmatprep.subr.bf16.mxu1 %v7792_v13  ;;  %v151_v13 = vunpack.c.l.s8.bf16 %v8887_v2 }
 0x126   :  { %5383 = vmatpush2.bf16.msra.mxu0 %v7787_v14 }
 0x127   :  { %5384 = vmatprep.subr.bf16.mxu0 %v7795_v15 }
 0x128   :  { %5436 = vmatpush2.bf16.msra.mxu1 %v7790_v16  ;;  %v198_v16 = vunpack.c.h.s8.bf16 %v8877_v49 }
 0x129   :  { %5437 = vmatprep.subr.bf16.mxu1 %v7798_v17  ;;  %v7849_v17 = vld [vmem:[#allocation5 + $0x844] ss:$8 sps:$4 sm:$0xff]  }
 0x12a   :  { %5385 = vmatpush2.bf16.msra.mxu0 %v7793_v18 }
 0x12b   :  { %5386 = vmatprep.subr.bf16.mxu0 %v7801_v19 }
 0x12c   :  { %5438 = vmatpush2.bf16.msra.mxu1 %v7796_v20  ;;  %v7844_v20 = vld [vmem:[#allocation5 + $0x950] ss:$8 sps:$4 sm:$0xff]  }
 0x12d   :  { %5439 = vmatprep.subr.bf16.mxu1 %v7804_v21  ;;  %v153_v21 = vunpack.c.l.s8.bf16 %v8892_v9 }
 0x12e   :  { %5387 = vmatpush2.bf16.msra.mxu0 %v7799_v22 }
 0x12f   :  { %5388 = vmatprep.subr.bf16.mxu0 %v7807_v23  ;;  %v7852_v23 = vld [vmem:[#allocation5 + $0x944] ss:$8 sps:$4 sm:$0xff]  }
 0x130   :  { %5440 = vmatpush2.bf16.msra.mxu1 %v7802_v24 }
 0x131   :  { %5441 = vmatprep.subr.bf16.mxu1 %v7810_v25 }
 0x132   :  { %5389 = vmatpush2.bf16.msra.mxu0 %v7805_v26  ;;  %v7847_v26 = vld [vmem:[#allocation5 + $0x840] ss:$8 sps:$4 sm:$0xff]  }
 0x133   :  { %5390 = vmatprep.subr.bf16.mxu0 %v7813_v27 }
 0x134   :  { %5442 = vmatpush2.bf16.msra.mxu1 %v7808_v28  ;;  %v7855_v28 = vld [vmem:[#allocation5 + $0x834] ss:$8 sps:$4 sm:$0xff]  }
 0x135   :  { %5443 = vmatprep.subr.bf16.mxu1 %v7816_v29 }
 0x136   :  { %5391 = vmatpush2.bf16.msra.mxu0 %v7811_v31 }
 0x137   :  { %5392 = vmatprep.subr.bf16.mxu0 %v7819_v33 }
 0x138   :  { %5444 = vmatpush2.bf16.msra.mxu1 %v7814_v35 }
 0x139   :  { %5445 = vmatprep.subr.bf16.mxu1 %v7822_v36  ;;  %v7858_v36 = vld [vmem:[#allocation5 + $0x934] ss:$8 sps:$4 sm:$0xff]  }
 0x13a   :  { %5393 = vmatpush2.bf16.msra.mxu0 %v7817_v37 }
 0x13b   :  { %5394 = vmatprep.subr.bf16.mxu0 %v7825_v39  ;;  %v7853_v39 = vld [vmem:[#allocation5 + $0x830] ss:$8 sps:$4 sm:$0xff]  }
 0x13c   :  { %5446 = vmatpush2.bf16.msra.mxu1 %v7820_v40 }
 0x13d   :  { %5447 = vmatprep.subr.bf16.mxu1 %v7828_v42  ;;  %v7861_v42 = vld [vmem:[#allocation5 + $0x824] ss:$8 sps:$4 sm:$0xff]  }
 0x13e   :  { %5395 = vmatpush2.bf16.msra.mxu0 %v7823_v41 }
 0x13f   :  { %5470 = vmatprep.subr.bf16.mxu0 %v7831_v46 }
 0x140   :  { %5448 = vmatpush2.bf16.msra.mxu1 %v7826_v34 }
 0x141   :  { %v5080_v60 = vpop.f32.mrf.mxu0  ;;  %5397 = vmatmul.mubr.bf16.vlgmr.msra.gmra.mxu0 %v146_v50  ;;  %5523 = vmatprep.subr.bf16.mxu1 %v7834_v51  ;;  %v7859_v50 = vld [vmem:[#allocation5 + $0x820] ss:$8 sps:$4 sm:$0xff]  }
 0x142   :  { %v5081_v63 = vadd.f32 %v5080_v60, %v8879_v52  ;;  %5471 = vmatpush1.bf16.msra.mxu0 %v7829_v53  ;;  %5406 = vmatprep.mubr.bf16.mxu0 %v197_v54  ;;  %v7862_v53 = vld [vmem:[#allocation5 + $0x920] ss:$8 sps:$4 sm:$0xff]   ;;  %v7870_v54 = vld [vmem:[#allocation5 + $0x914] ss:$8 sps:$4 sm:$0xff]  }
 0x143   :  { %v5082_v0 = vpop.f32.mrf.mxu0  ;;  %v5133_v1 = vpop.f32.mrf.mxu1  ;;  %5450 = vmatmul.mubr.bf16.vlgmr.msra.gmra.mxu1 %v148_v55  ;;  %5472 = vmatprep.subr.bf16.mxu0 %v7837_v56  ;;  %v7865_v55 = vld [vmem:[#allocation5 + $0x810] ss:$8 sps:$4 sm:$0xff]   ;;  %v7873_v56 = vld [vmem:[#allocation5 + $0x804] ss:$8 sps:$4 sm:$0xff]   ;;  %v7874_v60 = vld [vmem:[#allocation5 + $0x900] ss:$8 sps:$4 sm:$0xff]  }
 0x144   :  { %v5083_v3 = vadd.f32 %v5082_v0, %v8883_v57  ;;  %v8890_v4 = vadd.f32 %v5133_v1, %v5081_v63  ;;  %5524 = vmatpush1.bf16.msra.mxu1 %v7832_v58  ;;  %5459 = vmatprep.mubr.bf16.mxu1 %v199_v59  ;;  %v7871_v58 = vld [vmem:[#allocation5 + $0x800] ss:$8 sps:$4 sm:$0xff]   ;;  %v7876_v59 = vld [vmem:[#allocation5 + $0x904] ss:$8 sps:$4 sm:$0xff]   ;;  %v7882_v63 = vld [vmem:[#allocation5 + $0x9f4] ss:$8 sps:$4 sm:$0xff]  }
 0x145   :  { %v5084_v5 = vpop.f32.mrf.mxu0  ;;  %v5135_v6 = vpop.f32.mrf.mxu1  ;;  %5525 = vmatprep.subr.bf16.mxu1 %v7840_v62  ;;  %v7877_v62 = vld [vmem:[#allocation5 + $0x8f0] ss:$8 sps:$4 sm:$0xff]   ;;  %v7885_v0 = vld [vmem:[#allocation5 + $0x8e4] ss:$8 sps:$4 sm:$0xff]   ;;  %v7883_v1 = vld [vmem:[#allocation5 + $0x8e0] ss:$8 sps:$4 sm:$0xff]  }
 0x146   :  { %v5085_v10 = vadd.f32 %v5084_v5, %v8879_v52  ;;  %v8895_v11 = vadd.f32 %v5135_v6, %v5083_v3  ;;  %5473 = vmatpush1.bf16.msra.mxu0 %v7835_v61  ;;  %v7879_v61 = vld [vmem:[#allocation5 + $0x8f4] ss:$8 sps:$4 sm:$0xff]   ;;  %v7888_v3 = vld [vmem:[#allocation5 + $0x9e4] ss:$8 sps:$4 sm:$0xff]   ;;  %v7889_v6 = vld [vmem:[#allocation5 + $0x8d0] ss:$8 sps:$4 sm:$0xff]  }
 0x147   :  { %v5086_v14 = vpop.f32.mrf.mxu0  ;;  %v5137_v15 = vpop.f32.mrf.mxu1  ;;  %5474 = vmatprep.subr.bf16.mxu0 %v7843_v44  ;;  %v7880_v44 = vld [vmem:[#allocation5 + $0x9f0] ss:$8 sps:$4 sm:$0xff]   ;;  %v7891_v5 = vld [vmem:[#allocation5 + $0x8d4] ss:$8 sps:$4 sm:$0xff]  }
 0x148   :  { %v5087_v18 = vadd.f32 %v5086_v14, %v8883_v57  ;;  %v8900_v19 = vadd.f32 %v5137_v15, %v5085_v10  ;;  %5526 = vmatpush1.bf16.msra.mxu1 %v7838_v47  ;;  %v7886_v47 = vld [vmem:[#allocation5 + $0x9e0] ss:$8 sps:$4 sm:$0xff]   ;;  %v7897_v10 = vld [vmem:[#allocation5 + $0x8c4] ss:$8 sps:$4 sm:$0xff]   ;;  %v7903_v15 = vld [vmem:[#allocation5 + $0x8b4] ss:$8 sps:$4 sm:$0xff]  }
 0x149   :  { %v5139_v22 = vpop.f32.mrf.mxu1  ;;  %5407 = vmatmul.mubr.bf16.gmra.mxu0 %v196_v7  ;;  %5527 = vmatprep.subr.bf16.mxu1 %v7846_v8  ;;  %v5090_v24 = vpop.f32.mrf.mxu0  ;;  %v7894_v7 = vld [vmem:[#allocation5 + $0x9d4] ss:$8 sps:$4 sm:$0xff]   ;;  %v7892_v8 = vld [vmem:[#allocation5 + $0x9d0] ss:$8 sps:$4 sm:$0xff]   ;;  %v7898_v14 = vld [vmem:[#allocation5 + $0x9c0] ss:$8 sps:$4 sm:$0xff]  }
 0x14a   :  { %v8903_v25 = vadd.f32 %v5139_v22, %v5087_v18  ;;  %5475 = vmatpush1.bf16.msra.mxu0 %v7841_v12  ;;  %v5091_v27 = vadd.f32 %v5090_v24, %v8879_v52  ;;  %5502 = vmatprep.mubr.bf16.mxu0 %v151_v13  ;;  %v7895_v12 = vld [vmem:[#allocation5 + $0x8c0] ss:$8 sps:$4 sm:$0xff]   ;;  %v7900_v13 = vld [vmem:[#allocation5 + $0x9c4] ss:$8 sps:$4 sm:$0xff]   ;;  %v7904_v18 = vld [vmem:[#allocation5 + $0x9b0] ss:$8 sps:$4 sm:$0xff]  }
 0x14b   :  { %5460 = vmatmul.mubr.bf16.gmra.mxu1 %v198_v16  ;;  %5476 = vmatprep.subr.bf16.mxu0 %v7849_v17  ;;  %v5092_v29 = vpop.f32.mrf.mxu0  ;;  %v5143_v31 = vpop.f32.mrf.mxu1  ;;  %v7901_v16 = vld [vmem:[#allocation5 + $0x8b0] ss:$8 sps:$4 sm:$0xff]   ;;  %v7906_v17 = vld [vmem:[#allocation5 + $0x9b4] ss:$8 sps:$4 sm:$0xff]   ;;  %v7912_v22 = vld [vmem:[#allocation5 + $0x9a4] ss:$8 sps:$4 sm:$0xff]  }
 0x14c   :  { %5528 = vmatpush1.bf16.msra.mxu1 %v7844_v20  ;;  %v5093_v33 = vadd.f32 %v5092_v29, %v8883_v57  ;;  %v8907_v35 = vadd.f32 %v5143_v31, %v5091_v27  ;;  %5555 = vmatprep.mubr.bf16.mxu1 %v153_v21  ;;  %v7909_v20 = vld [vmem:[#allocation5 + $0x8a4] ss:$8 sps:$4 sm:$0xff]   ;;  %v7907_v21 = vld [vmem:[#allocation5 + $0x8a0] ss:$8 sps:$4 sm:$0xff]   ;;  %v7915_v24 = vld [vmem:[#allocation5 + $0x894] ss:$8 sps:$4 sm:$0xff]  }
 0x14d   :  { %5529 = vmatprep.subr.bf16.mxu1 %v7852_v23  ;;  %v5094_v37 = vpop.f32.mrf.mxu0  ;;  %v5145_v38 = vpop.f32.mrf.mxu1  ;;  %v7910_v23 = vld [vmem:[#allocation5 + $0x9a0] ss:$8 sps:$4 sm:$0xff]   ;;  %v7918_v27 = vld [vmem:[#allocation5 + $0x994] ss:$8 sps:$4 sm:$0xff]   ;;  %v7921_v29 = vld [vmem:[#allocation5 + $0x884] ss:$8 sps:$4 sm:$0xff]  }
 0x14e   :  { %5477 = vmatpush1.bf16.msra.mxu0 %v7847_v26  ;;  %v5095_v40 = vadd.f32 %v5094_v37, %v8879_v52  ;;  %v8910_v41 = vadd.f32 %v5145_v38, %v5093_v33  ;;  %v7867_v52 = vld [vmem:[#allocation5 + $0x814] ss:$8 sps:$4 sm:$0xff]   ;;  %v7913_v26 = vld [vmem:[#allocation5 + $0x890] ss:$8 sps:$4 sm:$0xff]   ;;  %v7919_v31 = vld [vmem:[#allocation5 + $0x880] ss:$8 sps:$4 sm:$0xff]  }
 0x14f   :  { %5478 = vmatprep.subr.bf16.mxu0 %v7855_v28  ;;  %v5096_v43 = vpop.f32.mrf.mxu0  ;;  %v5147_v30 = vpop.f32.mrf.mxu1  ;;  %v7916_v28 = vld [vmem:[#allocation5 + $0x990] ss:$8 sps:$4 sm:$0xff]   ;;  %v7922_v33 = vld [vmem:[#allocation5 + $0x980] ss:$8 sps:$4 sm:$0xff]   ;;  %v7927_v37 = vld [vmem:[#allocation5 + $0xa74] ss:$8 sps:$4 sm:$0xff]  }
 0x150   :  { %5530 = vmatpush1.bf16.msra.mxu1 %v7850_v32  ;;  %v5097_v46 = vadd.f32 %v5096_v43, %v8883_v57  ;;  %v8913_v34 = vadd.f32 %v5147_v30, %v5095_v40  ;;  %v7868_v57 = vld [vmem:[#allocation5 + $0x910] ss:$8 sps:$4 sm:$0xff]   ;;  %v7924_v32 = vld [vmem:[#allocation5 + $0x984] ss:$8 sps:$4 sm:$0xff]   ;;  %v7930_v40 = vld [vmem:[#allocation5 + $0xb74] ss:$8 sps:$4 sm:$0xff]   ;;  %v201_v43 = vunpack.c.h.s8.bf16 %v8887_v2 }
 0x151   :  { %5531 = vmatprep.subr.bf16.mxu1 %v7858_v36  ;;  %v5149_v49 = vpop.f32.mrf.mxu1  ;;  %v100_v36 = vld [vmem:[#allocation2 + $0x80] sm:$0xff]  ;;  %v8917_v38 = vld [vmem:[#allocation2 + $0x90] sm:$0xff] }
 0x152   :  { %5479 = vmatpush1.bf16.msra.mxu0 %v7853_v39  ;;  %v8915_v51 = vadd.f32 %v5149_v49, %v5097_v46  ;;  %v150_v39 = vunpack.c.l.s8.bf16 %v100_v36  ;;  %v152_v30 = vunpack.c.l.s8.bf16 %v8917_v38  ;;  %v7928_v46 = vld [vmem:[#allocation5 + $0xb70] ss:$8 sps:$4 sm:$0xff]   ;;  %v203_v49 = vunpack.c.h.s8.bf16 %v8892_v9 }
 0x153   :  { %5480 = vmatprep.subr.bf16.mxu0 %v7861_v42  ;;  %v7925_v42 = vld [vmem:[#allocation5 + $0xa70] ss:$8 sps:$4 sm:$0xff]  }
 0x154   :  { %5532 = vmatpush1.bf16.msra.mxu1 %v7856_v45  ;;  %v7933_v45 = vld [vmem:[#allocation5 + $0xa64] ss:$8 sps:$4 sm:$0xff]   ;;  %v7937_v9 = vld [vmem:[#allocation5 + $0xa50] ss:$8 sps:$4 sm:$0xff]  }
 0x155   :  { %5533 = vmatprep.subr.bf16.mxu1 %v7864_v48  ;;  %v7931_v48 = vld [vmem:[#allocation5 + $0xa60] ss:$8 sps:$4 sm:$0xff]  }
 0x156   :  { %5481 = vmatpush1.bf16.msra.mxu0 %v7859_v50 }
 0x157   :  { %5482 = vmatprep.subr.bf16.mxu0 %v7867_v52  ;;  %v7936_v52 = vld [vmem:[#allocation5 + $0xb64] ss:$8 sps:$4 sm:$0xff]  }
 0x158   :  { %5534 = vmatpush1.bf16.msra.mxu1 %v7862_v53 }
 0x159   :  { %5535 = vmatprep.subr.bf16.mxu1 %v7870_v54  ;;  %v7934_v54 = vld [vmem:[#allocation5 + $0xb60] ss:$8 sps:$4 sm:$0xff]  }
 0x15a   :  { %5483 = vmatpush1.bf16.msra.mxu0 %v7865_v55  ;;  %v7939_v55 = vld [vmem:[#allocation5 + $0xa54] ss:$8 sps:$4 sm:$0xff]  }
 0x15b   :  { %5484 = vmatprep.subr.bf16.mxu0 %v7873_v56 }
 0x15c   :  { %5536 = vmatpush1.bf16.msra.mxu1 %v7868_v57  ;;  %v8923_v57 = vld [vmem:[#allocation2 + $0xa8] sm:$0xff] }
 0x15d   :  { %5537 = vmatprep.subr.bf16.mxu1 %v7876_v59 }
 0x15e   :  { %5485 = vmatpush1.bf16.msra.mxu0 %v7871_v58 }
 0x15f   :  { %5486 = vmatprep.subr.bf16.mxu0 %v7879_v61 }
 0x160   :  { %5538 = vmatpush1.bf16.msra.mxu1 %v7874_v60  ;;  %v7942_v60 = vld [vmem:[#allocation5 + $0xb54] ss:$8 sps:$4 sm:$0xff]  }
 0x161   :  { %5539 = vmatprep.subr.bf16.mxu1 %v7882_v63  ;;  %v8928_v63 = vld [vmem:[#allocation2 + $0xb8] sm:$0xff] }
 0x162   :  { %5487 = vmatpush2.bf16.msra.mxu0 %v7877_v62  ;;  %v200_v62 = vunpack.c.h.s8.bf16 %v100_v36 }
 0x163   :  { %5488 = vmatprep.subr.bf16.mxu0 %v7885_v0 }
 0x164   :  { %5540 = vmatpush2.bf16.msra.mxu1 %v7880_v44 }
 0x165   :  { %5541 = vmatprep.subr.bf16.mxu1 %v7888_v3 }
 0x166   :  { %5489 = vmatpush2.bf16.msra.mxu0 %v7883_v1  ;;  %v7940_v1 = vld [vmem:[#allocation5 + $0xb50] ss:$8 sps:$4 sm:$0xff]  }
 0x167   :  { %5490 = vmatprep.subr.bf16.mxu0 %v7891_v5  ;;  %v202_v5 = vunpack.c.h.s8.bf16 %v8917_v38 }
 0x168   :  { %5542 = vmatpush2.bf16.msra.mxu1 %v7886_v47 }
 0x169   :  { %5543 = vmatprep.subr.bf16.mxu1 %v7894_v7 }
 0x16a   :  { %5491 = vmatpush2.bf16.msra.mxu0 %v7889_v6  ;;  %v7945_v6 = vld [vmem:[#allocation5 + $0xa44] ss:$8 sps:$4 sm:$0xff]  }
 0x16b   :  { %5492 = vmatprep.subr.bf16.mxu0 %v7897_v10  ;;  %v7943_v10 = vld [vmem:[#allocation5 + $0xa40] ss:$8 sps:$4 sm:$0xff]  }
 0x16c   :  { %5544 = vmatpush2.bf16.msra.mxu1 %v7892_v8 }
 0x16d   :  { %5545 = vmatprep.subr.bf16.mxu1 %v7900_v13 }
 0x16e   :  { %5493 = vmatpush2.bf16.msra.mxu0 %v7895_v12 }
 0x16f   :  { %5494 = vmatprep.subr.bf16.mxu0 %v7903_v15 }
 0x170   :  { %5546 = vmatpush2.bf16.msra.mxu1 %v7898_v14  ;;  %v7948_v14 = vld [vmem:[#allocation5 + $0xb44] ss:$8 sps:$4 sm:$0xff]  }
 0x171   :  { %5547 = vmatprep.subr.bf16.mxu1 %v7906_v17  ;;  %v7946_v17 = vld [vmem:[#allocation5 + $0xb40] ss:$8 sps:$4 sm:$0xff]  }
 0x172   :  { %5495 = vmatpush2.bf16.msra.mxu0 %v7901_v16 }
 0x173   :  { %5496 = vmatprep.subr.bf16.mxu0 %v7909_v20  ;;  %v7951_v20 = vld [vmem:[#allocation5 + $0xa34] ss:$8 sps:$4 sm:$0xff]  }
 0x174   :  { %5548 = vmatpush2.bf16.msra.mxu1 %v7904_v18 }
 0x175   :  { %5549 = vmatprep.subr.bf16.mxu1 %v7912_v22 }
 0x176   :  { %5497 = vmatpush2.bf16.msra.mxu0 %v7907_v21 }
 0x177   :  { %5498 = vmatprep.subr.bf16.mxu0 %v7915_v24 }
 0x178   :  { %5550 = vmatpush2.bf16.msra.mxu1 %v7910_v23  ;;  %v7949_v23 = vld [vmem:[#allocation5 + $0xa30] ss:$8 sps:$4 sm:$0xff]  }
 0x179   :  { %5551 = vmatprep.subr.bf16.mxu1 %v7918_v27 }
 0x17a   :  { %5499 = vmatpush2.bf16.msra.mxu0 %v7913_v26 }
 0x17b   :  { %5500 = vmatprep.subr.bf16.mxu0 %v7921_v29  ;;  %v7952_v29 = vld [vmem:[#allocation5 + $0xb30] ss:$8 sps:$4 sm:$0xff]  }
 0x17c   :  { %5552 = vmatpush2.bf16.msra.mxu1 %v7916_v28 }
 0x17d   :  { %5553 = vmatprep.subr.bf16.mxu1 %v7924_v32 }
 0x17e   :  { %5501 = vmatpush2.bf16.msra.mxu0 %v7919_v31 }
 0x17f   :  { %5576 = vmatprep.subr.bf16.mxu0 %v7927_v37  ;;  %v7955_v37 = vld [vmem:[#allocation5 + $0xa20] ss:$8 sps:$4 sm:$0xff]  }
 0x180   :  { %5554 = vmatpush2.bf16.msra.mxu1 %v7922_v33  ;;  %v7957_v33 = vld [vmem:[#allocation5 + $0xa24] ss:$8 sps:$4 sm:$0xff]  }
 0x181   :  { %v5186_v50 = vpop.f32.mrf.mxu0  ;;  %5503 = vmatmul.mubr.bf16.vlgmr.msra.gmra.mxu0 %v150_v39  ;;  %5629 = vmatprep.subr.bf16.mxu1 %v7930_v40  ;;  %v7960_v39 = vld [vmem:[#allocation5 + $0xb24] ss:$8 sps:$4 sm:$0xff]  }
 0x182   :  { %v5187_v53 = vadd.f32 %v5186_v50, %v8890_v4  ;;  %5577 = vmatpush1.bf16.msra.mxu0 %v7925_v42  ;;  %5512 = vmatprep.mubr.bf16.mxu0 %v201_v43  ;;  %v7963_v42 = vld [vmem:[#allocation5 + $0xa14] ss:$8 sps:$4 sm:$0xff]   ;;  %v7961_v43 = vld [vmem:[#allocation5 + $0xa10] ss:$8 sps:$4 sm:$0xff]  }
 0x183   :  { %v5188_v2 = vpop.f32.mrf.mxu0  ;;  %v5239_v56 = vpop.f32.mrf.mxu1  ;;  %5556 = vmatmul.mubr.bf16.vlgmr.msra.gmra.mxu1 %v152_v30  ;;  %5578 = vmatprep.subr.bf16.mxu0 %v7933_v45  ;;  %v7966_v30 = vld [vmem:[#allocation5 + $0xb14] ss:$8 sps:$4 sm:$0xff]   ;;  %v7964_v45 = vld [vmem:[#allocation5 + $0xb10] ss:$8 sps:$4 sm:$0xff]  }
 0x184   :  { %v5189_v58 = vadd.f32 %v5188_v2, %v8895_v11  ;;  %v8926_v59 = vadd.f32 %v5239_v56, %v5187_v53  ;;  %5630 = vmatpush1.bf16.msra.mxu1 %v7928_v46  ;;  %5565 = vmatprep.mubr.bf16.mxu1 %v203_v49  ;;  %v155_v11 = vunpack.c.l.s8.bf16 %v8923_v57  ;;  %v7967_v46 = vld [vmem:[#allocation5 + $0xa00] ss:$8 sps:$4 sm:$0xff]   ;;  %v7975_v50 = vld [vmem:[#allocation5 + $0xaf4] ss:$8 sps:$4 sm:$0xff]   ;;  %v7984_v56 = vld [vmem:[#allocation5 + $0xbe4] ss:$8 sps:$4 sm:$0xff]  }
 0x185   :  { %v5190_v61 = vpop.f32.mrf.mxu0  ;;  %v5241_v4 = vpop.f32.mrf.mxu1  ;;  %5631 = vmatprep.subr.bf16.mxu1 %v7936_v52  ;;  %v7970_v49 = vld [vmem:[#allocation5 + $0xb00] ss:$8 sps:$4 sm:$0xff]   ;;  %v7973_v52 = vld [vmem:[#allocation5 + $0xaf0] ss:$8 sps:$4 sm:$0xff]   ;;  %v7978_v53 = vld [vmem:[#allocation5 + $0xbf4] ss:$8 sps:$4 sm:$0xff]  }
 0x186   :  { %v5191_v44 = vadd.f32 %v5190_v61, %v8900_v19  ;;  %v8931_v0 = vadd.f32 %v5241_v4, %v5189_v58  ;;  %5579 = vmatpush1.bf16.msra.mxu0 %v7931_v48  ;;  %v157_v19 = vunpack.c.l.s8.bf16 %v8928_v63  ;;  %v7972_v48 = vld [vmem:[#allocation5 + $0xb04] ss:$8 sps:$4 sm:$0xff]   ;;  %v7979_v2 = vld [vmem:[#allocation5 + $0xae0] ss:$8 sps:$4 sm:$0xff]   ;;  %v7990_v61 = vld [vmem:[#allocation5 + $0xbd4] ss:$8 sps:$4 sm:$0xff]  }
 0x187   :  { %v5192_v3 = vpop.f32.mrf.mxu0  ;;  %v5243_v47 = vpop.f32.mrf.mxu1  ;;  %5580 = vmatprep.subr.bf16.mxu0 %v7939_v55  ;;  %v7981_v55 = vld [vmem:[#allocation5 + $0xae4] ss:$8 sps:$4 sm:$0xff]   ;;  %v7982_v58 = vld [vmem:[#allocation5 + $0xbe0] ss:$8 sps:$4 sm:$0xff]   ;;  %v7988_v4 = vld [vmem:[#allocation5 + $0xbd0] ss:$8 sps:$4 sm:$0xff]  }
 0x188   :  { %v5193_v7 = vadd.f32 %v5192_v3, %v8903_v25  ;;  %v8936_v8 = vadd.f32 %v5243_v47, %v5191_v44  ;;  %5632 = vmatpush1.bf16.msra.mxu1 %v7934_v54  ;;  %v7976_v54 = vld [vmem:[#allocation5 + $0xbf0] ss:$8 sps:$4 sm:$0xff]   ;;  %v7991_v44 = vld [vmem:[#allocation5 + $0xac0] ss:$8 sps:$4 sm:$0xff]   ;;  %v7999_v3 = vld [vmem:[#allocation5 + $0xab4] ss:$8 sps:$4 sm:$0xff]  }
 0x189   :  { %v5196_v12 = vpop.f32.mrf.mxu0  ;;  %v5245_v13 = vpop.f32.mrf.mxu1  ;;  %5513 = vmatmul.mubr.bf16.gmra.mxu0 %v200_v62  ;;  %5633 = vmatprep.subr.bf16.mxu1 %v7942_v60  ;;  %v7985_v60 = vld [vmem:[#allocation5 + $0xad0] ss:$8 sps:$4 sm:$0xff]   ;;  %v7993_v62 = vld [vmem:[#allocation5 + $0xac4] ss:$8 sps:$4 sm:$0xff]  }
 0x18a   :  { %v5197_v15 = vadd.f32 %v5196_v12, %v8907_v35  ;;  %v8940_v16 = vadd.f32 %v5245_v13, %v5193_v7  ;;  %5581 = vmatpush1.bf16.msra.mxu0 %v7937_v9  ;;  %5608 = vmatprep.mubr.bf16.mxu0 %v155_v11  ;;  %v7954_v35 = vld [vmem:[#allocation5 + $0xb34] ss:$8 sps:$4 sm:$0xff]   ;;  %v7994_v11 = vld [vmem:[#allocation5 + $0xbc0] ss:$8 sps:$4 sm:$0xff]   ;;  %v7997_v47 = vld [vmem:[#allocation5 + $0xab0] ss:$8 sps:$4 sm:$0xff]  }
 0x18b   :  { %v5198_v18 = vpop.f32.mrf.mxu0  ;;  %v5249_v25 = vpop.f32.mrf.mxu1  ;;  %5566 = vmatmul.mubr.bf16.gmra.mxu1 %v202_v5  ;;  %5582 = vmatprep.subr.bf16.mxu0 %v7945_v6  ;;  %v7987_v9 = vld [vmem:[#allocation5 + $0xad4] ss:$8 sps:$4 sm:$0xff]   ;;  %v8000_v6 = vld [vmem:[#allocation5 + $0xbb0] ss:$8 sps:$4 sm:$0xff]   ;;  %v8005_v7 = vld [vmem:[#allocation5 + $0xaa4] ss:$8 sps:$4 sm:$0xff]  }
 0x18c   :  { %v5199_v21 = vadd.f32 %v5198_v18, %v8910_v41  ;;  %v8943_v22 = vadd.f32 %v5249_v25, %v5197_v15  ;;  %5634 = vmatpush1.bf16.msra.mxu1 %v7940_v1  ;;  %5661 = vmatprep.mubr.bf16.mxu1 %v157_v19  ;;  %v7996_v1 = vld [vmem:[#allocation5 + $0xbc4] ss:$8 sps:$4 sm:$0xff]   ;;  %v8002_v5 = vld [vmem:[#allocation5 + $0xbb4] ss:$8 sps:$4 sm:$0xff]   ;;  %v8006_v12 = vld [vmem:[#allocation5 + $0xba0] ss:$8 sps:$4 sm:$0xff]  }
 0x18d   :  { %v5200_v24 = vpop.f32.mrf.mxu0  ;;  %v5251_v26 = vpop.f32.mrf.mxu1  ;;  %5635 = vmatprep.subr.bf16.mxu1 %v7948_v14  ;;  %v8008_v19 = vld [vmem:[#allocation5 + $0xba4] ss:$8 sps:$4 sm:$0xff]   ;;  %v8011_v13 = vld [vmem:[#allocation5 + $0xa94] ss:$8 sps:$4 sm:$0xff]   ;;  %v8009_v14 = vld [vmem:[#allocation5 + $0xa90] ss:$8 sps:$4 sm:$0xff]  }
 0x18e   :  { %v5201_v27 = vadd.f32 %v5200_v24, %v8913_v34  ;;  %v8946_v28 = vadd.f32 %v5251_v26, %v5199_v21  ;;  %5583 = vmatpush1.bf16.msra.mxu0 %v7943_v10  ;;  %v7958_v34 = vld [vmem:[#allocation5 + $0xb20] ss:$8 sps:$4 sm:$0xff]   ;;  %v8014_v15 = vld [vmem:[#allocation5 + $0xb94] ss:$8 sps:$4 sm:$0xff]   ;;  %v8017_v18 = vld [vmem:[#allocation5 + $0xa84] ss:$8 sps:$4 sm:$0xff]  }
 0x18f   :  { %v5202_v31 = vpop.f32.mrf.mxu0  ;;  %v5253_v32 = vpop.f32.mrf.mxu1  ;;  %5584 = vmatprep.subr.bf16.mxu0 %v7951_v20  ;;  %v8003_v10 = vld [vmem:[#allocation5 + $0xaa0] ss:$8 sps:$4 sm:$0xff]   ;;  %v8020_v20 = vld [vmem:[#allocation5 + $0xb84] ss:$8 sps:$4 sm:$0xff]   ;;  %v8023_v24 = vld [vmem:[#allocation5 + $0xc74] ss:$8 sps:$4 sm:$0xff]  }
 0x190   :  { %v5203_v41 = vadd.f32 %v5202_v31, %v8915_v51  ;;  %v8949_v36 = vadd.f32 %v5253_v32, %v5201_v27  ;;  %5636 = vmatpush1.bf16.msra.mxu1 %v7946_v17  ;;  %v7969_v51 = vld [vmem:[#allocation5 + $0xa04] ss:$8 sps:$4 sm:$0xff]   ;;  %v8012_v17 = vld [vmem:[#allocation5 + $0xb90] ss:$8 sps:$4 sm:$0xff]   ;;  %v8015_v25 = vld [vmem:[#allocation5 + $0xa80] ss:$8 sps:$4 sm:$0xff]   ;;  %v205_v31 = vunpack.c.h.s8.bf16 %v8923_v57 }
 0x191   :  { %v5255_v38 = vpop.f32.mrf.mxu1  ;;  %5637 = vmatprep.subr.bf16.mxu1 %v7954_v35  ;;  %v8018_v21 = vld [vmem:[#allocation5 + $0xb80] ss:$8 sps:$4 sm:$0xff]   ;;  %v8026_v27 = vld [vmem:[#allocation5 + $0xd74] ss:$8 sps:$4 sm:$0xff]  }
 0x192   :  { %v8951_v40 = vadd.f32 %v5255_v38, %v5203_v41  ;;  %5585 = vmatpush1.bf16.msra.mxu0 %v7949_v23  ;;  %v104_v23 = vld [vmem:[#allocation2 + $0xa0] sm:$0xff]  ;;  %v8953_v26 = vld [vmem:[#allocation2 + $0xb0] sm:$0xff]  ;;  %v207_v38 = vunpack.c.h.s8.bf16 %v8928_v63 }
 0x193   :  { %5586 = vmatprep.subr.bf16.mxu0 %v7957_v33  ;;  %v154_v35 = vunpack.c.l.s8.bf16 %v104_v23  ;;  %v156_v32 = vunpack.c.l.s8.bf16 %v8953_v26  ;;  %v8029_v33 = vld [vmem:[#allocation5 + $0xc64] ss:$8 sps:$4 sm:$0xff]   ;;  %v8024_v41 = vld [vmem:[#allocation5 + $0xd70] ss:$8 sps:$4 sm:$0xff]  }
 0x194   :  { %5638 = vmatpush1.bf16.msra.mxu1 %v7952_v29  ;;  %v8021_v29 = vld [vmem:[#allocation5 + $0xc70] ss:$8 sps:$4 sm:$0xff]  }
 0x195   :  { %5639 = vmatprep.subr.bf16.mxu1 %v7960_v39  ;;  %v8033_v63 = vld [vmem:[#allocation5 + $0xc50] ss:$8 sps:$4 sm:$0xff]  }
 0x196   :  { %5587 = vmatpush1.bf16.msra.mxu0 %v7955_v37  ;;  %v8027_v37 = vld [vmem:[#allocation5 + $0xc60] ss:$8 sps:$4 sm:$0xff]  }
 0x197   :  { %5588 = vmatprep.subr.bf16.mxu0 %v7963_v42 }
 0x198   :  { %5640 = vmatpush1.bf16.msra.mxu1 %v7958_v34  ;;  %v8032_v34 = vld [vmem:[#allocation5 + $0xd64] ss:$8 sps:$4 sm:$0xff]  }
 0x199   :  { %5641 = vmatprep.subr.bf16.mxu1 %v7966_v30  ;;  %v8035_v30 = vld [vmem:[#allocation5 + $0xc54] ss:$8 sps:$4 sm:$0xff]  }
 0x19a   :  { %5589 = vmatpush1.bf16.msra.mxu0 %v7961_v43  ;;  %v8030_v43 = vld [vmem:[#allocation5 + $0xd60] ss:$8 sps:$4 sm:$0xff]  }
 0x19b   :  { %5590 = vmatprep.subr.bf16.mxu0 %v7969_v51  ;;  %v8959_v51 = vld [vmem:[#allocation2 + $0xc8] sm:$0xff] }
 0x19c   :  { %5642 = vmatpush1.bf16.msra.mxu1 %v7964_v45 }
 0x19d   :  { %5643 = vmatprep.subr.bf16.mxu1 %v7972_v48 }
 0x19e   :  { %5591 = vmatpush1.bf16.msra.mxu0 %v7967_v46 }
 0x19f   :  { %5592 = vmatprep.subr.bf16.mxu0 %v7975_v50 }
 0x1a0   :  { %5644 = vmatpush1.bf16.msra.mxu1 %v7970_v49  ;;  %v8038_v49 = vld [vmem:[#allocation5 + $0xd54] ss:$8 sps:$4 sm:$0xff]  }
 0x1a1   :  { %5645 = vmatprep.subr.bf16.mxu1 %v7978_v53  ;;  %v8964_v53 = vld [vmem:[#allocation2 + $0xd8] sm:$0xff] }
 0x1a2   :  { %5593 = vmatpush2.bf16.msra.mxu0 %v7973_v52  ;;  %v204_v52 = vunpack.c.h.s8.bf16 %v104_v23 }
 0x1a3   :  { %5594 = vmatprep.subr.bf16.mxu0 %v7981_v55 }
 0x1a4   :  { %5646 = vmatpush2.bf16.msra.mxu1 %v7976_v54 }
 0x1a5   :  { %5647 = vmatprep.subr.bf16.mxu1 %v7984_v56 }
 0x1a6   :  { %5595 = vmatpush2.bf16.msra.mxu0 %v7979_v2  ;;  %v8036_v2 = vld [vmem:[#allocation5 + $0xd50] ss:$8 sps:$4 sm:$0xff]  }
 0x1a7   :  { %5596 = vmatprep.subr.bf16.mxu0 %v7987_v9  ;;  %v206_v9 = vunpack.c.h.s8.bf16 %v8953_v26 }
 0x1a8   :  { %5648 = vmatpush2.bf16.msra.mxu1 %v7982_v58 }
 0x1a9   :  { %5649 = vmatprep.subr.bf16.mxu1 %v7990_v61 }
 0x1aa   :  { %5597 = vmatpush2.bf16.msra.mxu0 %v7985_v60  ;;  %v8041_v60 = vld [vmem:[#allocation5 + $0xc44] ss:$8 sps:$4 sm:$0xff]  }
 0x1ab   :  { %5598 = vmatprep.subr.bf16.mxu0 %v7993_v62  ;;  %v8039_v62 = vld [vmem:[#allocation5 + $0xc40] ss:$8 sps:$4 sm:$0xff]  }
 0x1ac   :  { %5650 = vmatpush2.bf16.msra.mxu1 %v7988_v4 }
 0x1ad   :  { %5651 = vmatprep.subr.bf16.mxu1 %v7996_v1 }
 0x1ae   :  { %5599 = vmatpush2.bf16.msra.mxu0 %v7991_v44 }
 0x1af   :  { %5600 = vmatprep.subr.bf16.mxu0 %v7999_v3 }
 0x1b0   :  { %5652 = vmatpush2.bf16.msra.mxu1 %v7994_v11  ;;  %v8044_v11 = vld [vmem:[#allocation5 + $0xd44] ss:$8 sps:$4 sm:$0xff]  }
 0x1b1   :  { %5653 = vmatprep.subr.bf16.mxu1 %v8002_v5  ;;  %v8042_v5 = vld [vmem:[#allocation5 + $0xd40] ss:$8 sps:$4 sm:$0xff]  }
 0x1b2   :  { %5601 = vmatpush2.bf16.msra.mxu0 %v7997_v47 }
 0x1b3   :  { %5602 = vmatprep.subr.bf16.mxu0 %v8005_v7  ;;  %v8047_v7 = vld [vmem:[#allocation5 + $0xc34] ss:$8 sps:$4 sm:$0xff]  }
 0x1b4   :  { %5654 = vmatpush2.bf16.msra.mxu1 %v8000_v6 }
 0x1b5   :  { %5655 = vmatprep.subr.bf16.mxu1 %v8008_v19 }
 0x1b6   :  { %5603 = vmatpush2.bf16.msra.mxu0 %v8003_v10 }
 0x1b7   :  { %5604 = vmatprep.subr.bf16.mxu0 %v8011_v13 }
 0x1b8   :  { %5656 = vmatpush2.bf16.msra.mxu1 %v8006_v12  ;;  %v8045_v12 = vld [vmem:[#allocation5 + $0xc30] ss:$8 sps:$4 sm:$0xff]  }
 0x1b9   :  { %5657 = vmatprep.subr.bf16.mxu1 %v8014_v15 }
 0x1ba   :  { %5605 = vmatpush2.bf16.msra.mxu0 %v8009_v14 }
 0x1bb   :  { %5606 = vmatprep.subr.bf16.mxu0 %v8017_v18  ;;  %v8048_v18 = vld [vmem:[#allocation5 + $0xd30] ss:$8 sps:$4 sm:$0xff]  }
 0x1bc   :  { %5658 = vmatpush2.bf16.msra.mxu1 %v8012_v17 }
 0x1bd   :  { %5659 = vmatprep.subr.bf16.mxu1 %v8020_v20 }
 0x1be   :  { %5607 = vmatpush2.bf16.msra.mxu0 %v8015_v25 }
 0x1bf   :  { %5682 = vmatprep.subr.bf16.mxu0 %v8023_v24  ;;  %v8051_v24 = vld [vmem:[#allocation5 + $0xc20] ss:$8 sps:$4 sm:$0xff]  }
 0x1c0   :  { %5660 = vmatpush2.bf16.msra.mxu1 %v8018_v21  ;;  %v8053_v21 = vld [vmem:[#allocation5 + $0xc24] ss:$8 sps:$4 sm:$0xff]  }
 0x1c1   :  { %v5292_v39 = vpop.f32.mrf.mxu0  ;;  %5609 = vmatmul.mubr.bf16.vlgmr.msra.gmra.mxu0 %v154_v35  ;;  %5735 = vmatprep.subr.bf16.mxu1 %v8026_v27  ;;  %v8056_v35 = vld [vmem:[#allocation5 + $0xd24] ss:$8 sps:$4 sm:$0xff]  }
 0x1c2   :  { %v5293_v42 = vadd.f32 %v5292_v39, %v8926_v59  ;;  %5683 = vmatpush1.bf16.msra.mxu0 %v8021_v29  ;;  %5618 = vmatprep.mubr.bf16.mxu0 %v205_v31  ;;  %v8059_v29 = vld [vmem:[#allocation5 + $0xc14] ss:$8 sps:$4 sm:$0xff]   ;;  %v8057_v31 = vld [vmem:[#allocation5 + $0xc10] ss:$8 sps:$4 sm:$0xff]  }
 0x1c3   :  { %v5294_v57 = vpop.f32.mrf.mxu0  ;;  %v5345_v45 = vpop.f32.mrf.mxu1  ;;  %5662 = vmatmul.mubr.bf16.vlgmr.msra.gmra.mxu1 %v156_v32  ;;  %5684 = vmatprep.subr.bf16.mxu0 %v8029_v33  ;;  %v8062_v32 = vld [vmem:[#allocation5 + $0xd14] ss:$8 sps:$4 sm:$0xff]   ;;  %v8060_v33 = vld [vmem:[#allocation5 + $0xd10] ss:$8 sps:$4 sm:$0xff]  }
 0x1c4   :  { %v5295_v46 = vadd.f32 %v5294_v57, %v8931_v0  ;;  %v8962_v48 = vadd.f32 %v5345_v45, %v5293_v42  ;;  %5736 = vmatpush1.bf16.msra.mxu1 %v8024_v41  ;;  %5671 = vmatprep.mubr.bf16.mxu1 %v207_v38  ;;  %v159_v0 = vunpack.c.l.s8.bf16 %v8959_v51  ;;  %v8063_v41 = vld [vmem:[#allocation5 + $0xc00] ss:$8 sps:$4 sm:$0xff]   ;;  %v8071_v39 = vld [vmem:[#allocation5 + $0xcf4] ss:$8 sps:$4 sm:$0xff]   ;;  %v8080_v45 = vld [vmem:[#allocation5 + $0xde4] ss:$8 sps:$4 sm:$0xff]  }
 0x1c5   :  { %v5296_v50 = vpop.f32.mrf.mxu0  ;;  %v5347_v59 = vpop.f32.mrf.mxu1  ;;  %5737 = vmatprep.subr.bf16.mxu1 %v8032_v34  ;;  %v8066_v38 = vld [vmem:[#allocation5 + $0xd00] ss:$8 sps:$4 sm:$0xff]   ;;  %v8069_v34 = vld [vmem:[#allocation5 + $0xcf0] ss:$8 sps:$4 sm:$0xff]   ;;  %v8074_v42 = vld [vmem:[#allocation5 + $0xdf4] ss:$8 sps:$4 sm:$0xff]  }
 0x1c6   :  { %v5297_v54 = vadd.f32 %v5296_v50, %v8936_v8  ;;  %v8967_v55 = vadd.f32 %v5347_v59, %v5295_v46  ;;  %5685 = vmatpush1.bf16.msra.mxu0 %v8027_v37  ;;  %v161_v8 = vunpack.c.l.s8.bf16 %v8964_v53  ;;  %v8068_v37 = vld [vmem:[#allocation5 + $0xd04] ss:$8 sps:$4 sm:$0xff]   ;;  %v8075_v57 = vld [vmem:[#allocation5 + $0xce0] ss:$8 sps:$4 sm:$0xff]   ;;  %v8086_v50 = vld [vmem:[#allocation5 + $0xdd4] ss:$8 sps:$4 sm:$0xff]  }
 0x1c7   :  { %v5298_v56 = vpop.f32.mrf.mxu0  ;;  %v5349_v58 = vpop.f32.mrf.mxu1  ;;  %5686 = vmatprep.subr.bf16.mxu0 %v8035_v30  ;;  %v8077_v30 = vld [vmem:[#allocation5 + $0xce4] ss:$8 sps:$4 sm:$0xff]   ;;  %v8078_v46 = vld [vmem:[#allocation5 + $0xde0] ss:$8 sps:$4 sm:$0xff]   ;;  %v8084_v59 = vld [vmem:[#allocation5 + $0xdd0] ss:$8 sps:$4 sm:$0xff]  }
 0x1c8   :  { %v5299_v61 = vadd.f32 %v5298_v56, %v8940_v16  ;;  %v8972_v4 = vadd.f32 %v5349_v58, %v5297_v54  ;;  %5738 = vmatpush1.bf16.msra.mxu1 %v8030_v43  ;;  %v8072_v43 = vld [vmem:[#allocation5 + $0xdf0] ss:$8 sps:$4 sm:$0xff]   ;;  %v8087_v54 = vld [vmem:[#allocation5 + $0xcc0] ss:$8 sps:$4 sm:$0xff]   ;;  %v8095_v56 = vld [vmem:[#allocation5 + $0xcb4] ss:$8 sps:$4 sm:$0xff]  }
 0x1c9   :  { %v5302_v44 = vpop.f32.mrf.mxu0  ;;  %v5351_v1 = vpop.f32.mrf.mxu1  ;;  %5619 = vmatmul.mubr.bf16.gmra.mxu0 %v204_v52  ;;  %5739 = vmatprep.subr.bf16.mxu1 %v8038_v49  ;;  %v8081_v49 = vld [vmem:[#allocation5 + $0xcd0] ss:$8 sps:$4 sm:$0xff]   ;;  %v8089_v52 = vld [vmem:[#allocation5 + $0xcc4] ss:$8 sps:$4 sm:$0xff]  }
 0x1ca   :  { %v5303_v3 = vadd.f32 %v5302_v44, %v8943_v22  ;;  %v8976_v47 = vadd.f32 %v5351_v1, %v5299_v61  ;;  %5687 = vmatpush1.bf16.msra.mxu0 %v8033_v63  ;;  %5714 = vmatprep.mubr.bf16.mxu0 %v159_v0  ;;  %v8050_v22 = vld [vmem:[#allocation5 + $0xd34] ss:$8 sps:$4 sm:$0xff]   ;;  %v8090_v0 = vld [vmem:[#allocation5 + $0xdc0] ss:$8 sps:$4 sm:$0xff]   ;;  %v8093_v58 = vld [vmem:[#allocation5 + $0xcb0] ss:$8 sps:$4 sm:$0xff]  }
 0x1cb   :  { %v5304_v6 = vpop.f32.mrf.mxu0  ;;  %v5355_v16 = vpop.f32.mrf.mxu1  ;;  %5672 = vmatmul.mubr.bf16.gmra.mxu1 %v206_v9  ;;  %5688 = vmatprep.subr.bf16.mxu0 %v8041_v60  ;;  %v8083_v63 = vld [vmem:[#allocation5 + $0xcd4] ss:$8 sps:$4 sm:$0xff]   ;;  %v8096_v60 = vld [vmem:[#allocation5 + $0xdb0] ss:$8 sps:$4 sm:$0xff]   ;;  %v8101_v61 = vld [vmem:[#allocation5 + $0xca4] ss:$8 sps:$4 sm:$0xff]  }
 0x1cc   :  { %v5305_v10 = vadd.f32 %v5304_v6, %v8946_v28  ;;  %v8979_v19 = vadd.f32 %v5355_v16, %v5303_v3  ;;  %5740 = vmatpush1.bf16.msra.mxu1 %v8036_v2  ;;  %5767 = vmatprep.mubr.bf16.mxu1 %v161_v8  ;;  %v8092_v2 = vld [vmem:[#allocation5 + $0xdc4] ss:$8 sps:$4 sm:$0xff]   ;;  %v8098_v9 = vld [vmem:[#allocation5 + $0xdb4] ss:$8 sps:$4 sm:$0xff]   ;;  %v8102_v44 = vld [vmem:[#allocation5 + $0xda0] ss:$8 sps:$4 sm:$0xff]  }
 0x1cd   :  { %v5306_v13 = vpop.f32.mrf.mxu0  ;;  %v5357_v14 = vpop.f32.mrf.mxu1  ;;  %5741 = vmatprep.subr.bf16.mxu1 %v8044_v11  ;;  %v8104_v8 = vld [vmem:[#allocation5 + $0xda4] ss:$8 sps:$4 sm:$0xff]   ;;  %v8107_v1 = vld [vmem:[#allocation5 + $0xc94] ss:$8 sps:$4 sm:$0xff]   ;;  %v8105_v11 = vld [vmem:[#allocation5 + $0xc90] ss:$8 sps:$4 sm:$0xff]  }
 0x1ce   :  { %v5307_v15 = vadd.f32 %v5306_v13, %v8949_v36  ;;  %v8982_v17 = vadd.f32 %v5357_v14, %v5305_v10  ;;  %5689 = vmatpush1.bf16.msra.mxu0 %v8039_v62  ;;  %v8054_v36 = vld [vmem:[#allocation5 + $0xd20] ss:$8 sps:$4 sm:$0xff]   ;;  %v8110_v3 = vld [vmem:[#allocation5 + $0xd94] ss:$8 sps:$4 sm:$0xff]   ;;  %v8113_v6 = vld [vmem:[#allocation5 + $0xc84] ss:$8 sps:$4 sm:$0xff]  }
 0x1cf   :  { %v5308_v25 = vpop.f32.mrf.mxu0  ;;  %v5359_v20 = vpop.f32.mrf.mxu1  ;;  %5690 = vmatprep.subr.bf16.mxu0 %v8047_v7  ;;  %v8099_v62 = vld [vmem:[#allocation5 + $0xca0] ss:$8 sps:$4 sm:$0xff]   ;;  %v8116_v7 = vld [vmem:[#allocation5 + $0xd84] ss:$8 sps:$4 sm:$0xff]   ;;  %v8119_v13 = vld [vmem:[#allocation5 + $0xe74] ss:$8 sps:$4 sm:$0xff]  }
 0x1d0   :  { %v5309_v28 = vadd.f32 %v5308_v25, %v8951_v40  ;;  %v8985_v23 = vadd.f32 %v5359_v20, %v5307_v15  ;;  %5742 = vmatpush1.bf16.msra.mxu1 %v8042_v5  ;;  %v8065_v40 = vld [vmem:[#allocation5 + $0xc04] ss:$8 sps:$4 sm:$0xff]   ;;  %v8108_v5 = vld [vmem:[#allocation5 + $0xd90] ss:$8 sps:$4 sm:$0xff]   ;;  %v8111_v16 = vld [vmem:[#allocation5 + $0xc80] ss:$8 sps:$4 sm:$0xff]   ;;  %v209_v25 = vunpack.c.h.s8.bf16 %v8959_v51 }
 0x1d1   :  { %v5361_v26 = vpop.f32.mrf.mxu1  ;;  %5743 = vmatprep.subr.bf16.mxu1 %v8050_v22  ;;  %v8114_v10 = vld [vmem:[#allocation5 + $0xd80] ss:$8 sps:$4 sm:$0xff]   ;;  %v8122_v15 = vld [vmem:[#allocation5 + $0xf74] ss:$8 sps:$4 sm:$0xff]  }
 0x1d2   :  { %v8987_v27 = vadd.f32 %v5361_v26, %v5309_v28  ;;  %5691 = vmatpush1.bf16.msra.mxu0 %v8045_v12  ;;  %v108_v12 = vld [vmem:[#allocation2 + $0xc0] sm:$0xff]  ;;  %v8989_v14 = vld [vmem:[#allocation2 + $0xd0] sm:$0xff]  ;;  %v211_v26 = vunpack.c.h.s8.bf16 %v8964_v53 }
 0x1d3   :  { %5692 = vmatprep.subr.bf16.mxu0 %v8053_v21  ;;  %v158_v22 = vunpack.c.l.s8.bf16 %v108_v12  ;;  %v160_v20 = vunpack.c.l.s8.bf16 %v8989_v14  ;;  %v8125_v21 = vld [vmem:[#allocation5 + $0xe64] ss:$8 sps:$4 sm:$0xff]   ;;  %v8120_v28 = vld [vmem:[#allocation5 + $0xf70] ss:$8 sps:$4 sm:$0xff]   ;;  %v8134_v53 = vld [vmem:[#allocation5 + $0xf54] ss:$8 sps:$4 sm:$0xff]  }
 0x1d4   :  { %5744 = vmatpush1.bf16.msra.mxu1 %v8048_v18  ;;  %v8117_v18 = vld [vmem:[#allocation5 + $0xe70] ss:$8 sps:$4 sm:$0xff]  }
 0x1d5   :  { %5745 = vmatprep.subr.bf16.mxu1 %v8056_v35 }
 0x1d6   :  { %5693 = vmatpush1.bf16.msra.mxu0 %v8051_v24  ;;  %v8123_v24 = vld [vmem:[#allocation5 + $0xe60] ss:$8 sps:$4 sm:$0xff]  }
 0x1d7   :  { %5694 = vmatprep.subr.bf16.mxu0 %v8059_v29 }
 0x1d8   :  { %5746 = vmatpush1.bf16.msra.mxu1 %v8054_v36  ;;  %v8128_v36 = vld [vmem:[#allocation5 + $0xf64] ss:$8 sps:$4 sm:$0xff]  }
 0x1d9   :  { %5747 = vmatprep.subr.bf16.mxu1 %v8062_v32  ;;  %v8131_v32 = vld [vmem:[#allocation5 + $0xe54] ss:$8 sps:$4 sm:$0xff]  }
 0x1da   :  { %5695 = vmatpush1.bf16.msra.mxu0 %v8057_v31  ;;  %v8126_v31 = vld [vmem:[#allocation5 + $0xf60] ss:$8 sps:$4 sm:$0xff]  }
 0x1db   :  { %5696 = vmatprep.subr.bf16.mxu0 %v8065_v40  ;;  %v8995_v40 = vld [vmem:[#allocation2 + $0xe8] sm:$0xff] }
 0x1dc   :  { %5748 = vmatpush1.bf16.msra.mxu1 %v8060_v33 }
 0x1dd   :  { %5749 = vmatprep.subr.bf16.mxu1 %v8068_v37 }
 0x1de   :  { %5697 = vmatpush1.bf16.msra.mxu0 %v8063_v41 }
 0x1df   :  { %5698 = vmatprep.subr.bf16.mxu0 %v8071_v39 }
 0x1e0   :  { %5750 = vmatpush1.bf16.msra.mxu1 %v8066_v38 }
 0x1e1   :  { %5751 = vmatprep.subr.bf16.mxu1 %v8074_v42 }
 0x1e2   :  { %5699 = vmatpush2.bf16.msra.mxu0 %v8069_v34  ;;  %v9000_v34 = vld [vmem:[#allocation2 + $0xf8] sm:$0xff] }
 0x1e3   :  { %5700 = vmatprep.subr.bf16.mxu0 %v8077_v30  ;;  %v8129_v30 = vld [vmem:[#allocation5 + $0xe50] ss:$8 sps:$4 sm:$0xff]  }
 0x1e4   :  { %5752 = vmatpush2.bf16.msra.mxu1 %v8072_v43 }
 0x1e5   :  { %5753 = vmatprep.subr.bf16.mxu1 %v8080_v45 }
 0x1e6   :  { %5701 = vmatpush2.bf16.msra.mxu0 %v8075_v57  ;;  %v163_v57 = vunpack.c.l.s8.bf16 %v8995_v40 }
 0x1e7   :  { %5702 = vmatprep.subr.bf16.mxu0 %v8083_v63  ;;  %v8137_v63 = vld [vmem:[#allocation5 + $0xe44] ss:$8 sps:$4 sm:$0xff]  }
 0x1e8   :  { %5754 = vmatpush2.bf16.msra.mxu1 %v8078_v46  ;;  %v210_v46 = vunpack.c.h.s8.bf16 %v8989_v14  ;;  %v8152_v14 = vld [vmem:[#allocation5 + $0xf24] ss:$8 sps:$4 sm:$0xff]  }
 0x1e9   :  { %5755 = vmatprep.subr.bf16.mxu1 %v8086_v50 }
 0x1ea   :  { %5703 = vmatpush2.bf16.msra.mxu0 %v8081_v49 }
 0x1eb   :  { %5704 = vmatprep.subr.bf16.mxu0 %v8089_v52 }
 0x1ec   :  { %5756 = vmatpush2.bf16.msra.mxu1 %v8084_v59  ;;  %v8132_v59 = vld [vmem:[#allocation5 + $0xf50] ss:$8 sps:$4 sm:$0xff]  }
 0x1ed   :  { %5757 = vmatprep.subr.bf16.mxu1 %v8092_v2  ;;  %v8140_v2 = vld [vmem:[#allocation5 + $0xf44] ss:$8 sps:$4 sm:$0xff]  }
 0x1ee   :  { %5705 = vmatpush2.bf16.msra.mxu0 %v8087_v54 }
 0x1ef   :  { %5706 = vmatprep.subr.bf16.mxu0 %v8095_v56 }
 0x1f0   :  { %5758 = vmatpush2.bf16.msra.mxu1 %v8090_v0 }
 0x1f1   :  { %5759 = vmatprep.subr.bf16.mxu1 %v8098_v9 }
 0x1f2   :  { %5707 = vmatpush2.bf16.msra.mxu0 %v8093_v58  ;;  %v8135_v58 = vld [vmem:[#allocation5 + $0xe40] ss:$8 sps:$4 sm:$0xff]  }
 0x1f3   :  { %5708 = vmatprep.subr.bf16.mxu0 %v8101_v61 }
 0x1f4   :  { %5760 = vmatpush2.bf16.msra.mxu1 %v8096_v60  ;;  %v8143_v60 = vld [vmem:[#allocation5 + $0xe34] ss:$8 sps:$4 sm:$0xff]  }
 0x1f5   :  { %5761 = vmatprep.subr.bf16.mxu1 %v8104_v8  ;;  %v8138_v8 = vld [vmem:[#allocation5 + $0xf40] ss:$8 sps:$4 sm:$0xff]  }
 0x1f6   :  { %5709 = vmatpush2.bf16.msra.mxu0 %v8099_v62 }
 0x1f7   :  { %5710 = vmatprep.subr.bf16.mxu0 %v8107_v1 }
 0x1f8   :  { %5762 = vmatpush2.bf16.msra.mxu1 %v8102_v44 }
 0x1f9   :  { %5763 = vmatprep.subr.bf16.mxu1 %v8110_v3 }
 0x1fa   :  { %5711 = vmatpush2.bf16.msra.mxu0 %v8105_v11 }
 0x1fb   :  { %5712 = vmatprep.subr.bf16.mxu0 %v8113_v6 }
 0x1fc   :  { %5764 = vmatpush2.bf16.msra.mxu1 %v8108_v5  ;;  %v8141_v5 = vld [vmem:[#allocation5 + $0xe30] ss:$8 sps:$4 sm:$0xff]  }
 0x1fd   :  { %5765 = vmatprep.subr.bf16.mxu1 %v8116_v7  ;;  %v8149_v7 = vld [vmem:[#allocation5 + $0xe24] ss:$8 sps:$4 sm:$0xff]  }
 0x1fe   :  { %5713 = vmatpush2.bf16.msra.mxu0 %v8111_v16 }
 0x1ff   :  { %5788 = vmatprep.subr.bf16.mxu0 %v8119_v13 }
 0x200   :  { %5766 = vmatpush2.bf16.msra.mxu1 %v8114_v10 }
 0x201   :  { %v5398_v35 = vpop.f32.mrf.mxu0  ;;  %5715 = vmatmul.mubr.bf16.vlgmr.msra.gmra.mxu0 %v158_v22  ;;  %5841 = vmatprep.subr.bf16.mxu1 %v8122_v15  ;;  %v8155_v15 = vld [vmem:[#allocation5 + $0xe14] ss:$8 sps:$4 sm:$0xff]  }
 0x202   :  { %v5399_v29 = vadd.f32 %v5398_v35, %v8962_v48  ;;  %5789 = vmatpush1.bf16.msra.mxu0 %v8117_v18  ;;  %5724 = vmatprep.mubr.bf16.mxu0 %v209_v25  ;;  %v208_v48 = vunpack.c.h.s8.bf16 %v108_v12  ;;  %v8144_v12 = vld [vmem:[#allocation5 + $0xf30] ss:$8 sps:$4 sm:$0xff]   ;;  %v8150_v18 = vld [vmem:[#allocation5 + $0xf20] ss:$8 sps:$4 sm:$0xff]   ;;  %v8158_v25 = vld [vmem:[#allocation5 + $0xf14] ss:$8 sps:$4 sm:$0xff]  }
 0x203   :  { %v5400_v51 = vpop.f32.mrf.mxu0  ;;  %v5451_v33 = vpop.f32.mrf.mxu1  ;;  %5768 = vmatmul.mubr.bf16.vlgmr.msra.gmra.mxu1 %v160_v20  ;;  %5790 = vmatprep.subr.bf16.mxu0 %v8125_v21  ;;  %v8153_v20 = vld [vmem:[#allocation5 + $0xe10] ss:$8 sps:$4 sm:$0xff]   ;;  %v8162_v35 = vld [vmem:[#allocation5 + $0xf00] ss:$8 sps:$4 sm:$0xff]  }
 0x204   :  { %v5401_v41 = vadd.f32 %v5400_v51, %v8967_v55  ;;  %v8998_v37 = vadd.f32 %v5451_v33, %v5399_v29  ;;  %5842 = vmatpush1.bf16.msra.mxu1 %v8120_v28  ;;  %5777 = vmatprep.mubr.bf16.mxu1 %v211_v26  ;;  %v8156_v21 = vld [vmem:[#allocation5 + $0xf10] ss:$8 sps:$4 sm:$0xff]   ;;  %v8164_v28 = vld [vmem:[#allocation5 + $0xf04] ss:$8 sps:$4 sm:$0xff]   ;;  %v8167_v26 = vld [vmem:[#allocation5 + $0xef4] ss:$8 sps:$4 sm:$0xff]  }
 0x205   :  { %v5402_v38 = vpop.f32.mrf.mxu0  ;;  %v5453_v39 = vpop.f32.mrf.mxu1  ;;  %5843 = vmatprep.subr.bf16.mxu1 %v8128_v36  ;;  %v8170_v36 = vld [vmem:[#allocation5 + $0xff4] ss:$8 sps:$4 sm:$0xff]   ;;  %v8165_v29 = vld [vmem:[#allocation5 + $0xef0] ss:$8 sps:$4 sm:$0xff]   ;;  %v8176_v51 = vld [vmem:[#allocation5 + $0xfe4] ss:$8 sps:$4 sm:$0xff]  }
 0x206   :  { %v5403_v42 = vadd.f32 %v5402_v38, %v8972_v4  ;;  %v9003_v43 = vadd.f32 %v5453_v39, %v5401_v41  ;;  %5791 = vmatpush1.bf16.msra.mxu0 %v8123_v24  ;;  %v165_v4 = vunpack.c.l.s8.bf16 %v9000_v34  ;;  %v8159_v24 = vld [vmem:[#allocation5 + $0xe00] ss:$8 sps:$4 sm:$0xff]   ;;  %v8179_v41 = vld [vmem:[#allocation5 + $0xed4] ss:$8 sps:$4 sm:$0xff]   ;;  %v8177_v39 = vld [vmem:[#allocation5 + $0xed0] ss:$8 sps:$4 sm:$0xff]  }
 0x207   :  { %v5404_v55 = vpop.f32.mrf.mxu0  ;;  %v5455_v45 = vpop.f32.mrf.mxu1  ;;  %5792 = vmatprep.subr.bf16.mxu0 %v8131_v32  ;;  %v8168_v32 = vld [vmem:[#allocation5 + $0xff0] ss:$8 sps:$4 sm:$0xff]   ;;  %v8171_v33 = vld [vmem:[#allocation5 + $0xee0] ss:$8 sps:$4 sm:$0xff]   ;;  %v8182_v38 = vld [vmem:[#allocation5 + $0xfd4] ss:$8 sps:$4 sm:$0xff]  }
 0x208   :  { %v5405_v49 = vadd.f32 %v5404_v55, %v8976_v47  ;;  %v9008_v50 = vadd.f32 %v5455_v45, %v5403_v42  ;;  %5844 = vmatpush1.bf16.msra.mxu1 %v8126_v31  ;;  %v8173_v31 = vld [vmem:[#allocation5 + $0xee4] ss:$8 sps:$4 sm:$0xff]   ;;  %v8180_v42 = vld [vmem:[#allocation5 + $0xfd0] ss:$8 sps:$4 sm:$0xff]   ;;  %v8191_v55 = vld [vmem:[#allocation5 + $0xeb4] ss:$8 sps:$4 sm:$0xff]  }
 0x209   :  { %v5408_v52 = vpop.f32.mrf.mxu0  ;;  %v5457_v54 = vpop.f32.mrf.mxu1  ;;  %5725 = vmatmul.mubr.bf16.gmra.mxu0 %v208_v48  ;;  %5845 = vmatprep.subr.bf16.mxu1 %v8134_v53  ;;  %v8174_v53 = vld [vmem:[#allocation5 + $0xfe0] ss:$8 sps:$4 sm:$0xff]   ;;  %v8185_v48 = vld [vmem:[#allocation5 + $0xec4] ss:$8 sps:$4 sm:$0xff]  }
 0x20a   :  { %v5409_v0 = vadd.f32 %v5408_v52, %v8979_v19  ;;  %v9012_v56 = vadd.f32 %v5457_v54, %v5405_v49  ;;  %5793 = vmatpush1.bf16.msra.mxu0 %v8129_v30  ;;  %5820 = vmatprep.mubr.bf16.mxu0 %v163_v57  ;;  %v8146_v19 = vld [vmem:[#allocation5 + $0xf34] ss:$8 sps:$4 sm:$0xff]   ;;  %v8188_v30 = vld [vmem:[#allocation5 + $0xfc4] ss:$8 sps:$4 sm:$0xff]   ;;  %v8183_v57 = vld [vmem:[#allocation5 + $0xec0] ss:$8 sps:$4 sm:$0xff]  }
 0x20b   :  { %v5410_v9 = vpop.f32.mrf.mxu0  ;;  %v5461_v47 = vpop.f32.mrf.mxu1  ;;  %5778 = vmatmul.mubr.bf16.gmra.mxu1 %v210_v46  ;;  %5794 = vmatprep.subr.bf16.mxu0 %v8137_v63  ;;  %v8186_v45 = vld [vmem:[#allocation5 + $0xfc0] ss:$8 sps:$4 sm:$0xff]   ;;  %v8194_v46 = vld [vmem:[#allocation5 + $0xfb4] ss:$8 sps:$4 sm:$0xff]   ;;  %v8189_v63 = vld [vmem:[#allocation5 + $0xeb0] ss:$8 sps:$4 sm:$0xff]  }
 0x20c   :  { %v5411_v61 = vadd.f32 %v5410_v9, %v8982_v17  ;;  %v9015_v62 = vadd.f32 %v5461_v47, %v5409_v0  ;;  %5846 = vmatpush1.bf16.msra.mxu1 %v8132_v59  ;;  %5873 = vmatprep.mubr.bf16.mxu1 %v165_v4  ;;  %v8197_v49 = vld [vmem:[#allocation5 + $0xea4] ss:$8 sps:$4 sm:$0xff]   ;;  %v8192_v59 = vld [vmem:[#allocation5 + $0xfb0] ss:$8 sps:$4 sm:$0xff]   ;;  %v8195_v52 = vld [vmem:[#allocation5 + $0xea0] ss:$8 sps:$4 sm:$0xff]  }
 0x20d   :  { %v5412_v44 = vpop.f32.mrf.mxu0  ;;  %v5463_v1 = vpop.f32.mrf.mxu1  ;;  %5847 = vmatprep.subr.bf16.mxu1 %v8140_v2  ;;  %v8200_v4 = vld [vmem:[#allocation5 + $0xfa4] ss:$8 sps:$4 sm:$0xff]   ;;  %v8203_v54 = vld [vmem:[#allocation5 + $0xe94] ss:$8 sps:$4 sm:$0xff]   ;;  %v8198_v2 = vld [vmem:[#allocation5 + $0xfa0] ss:$8 sps:$4 sm:$0xff]  }
 0x20e   :  { %v5413_v11 = vadd.f32 %v5412_v44, %v8985_v23  ;;  %v9018_v3 = vadd.f32 %v5463_v1, %v5411_v61  ;;  %5795 = vmatpush1.bf16.msra.mxu0 %v8135_v58  ;;  %v8147_v23 = vld [vmem:[#allocation5 + $0xe20] ss:$8 sps:$4 sm:$0xff]   ;;  %v8206_v0 = vld [vmem:[#allocation5 + $0xf94] ss:$8 sps:$4 sm:$0xff]   ;;  %v8201_v58 = vld [vmem:[#allocation5 + $0xe90] ss:$8 sps:$4 sm:$0xff]  }
 0x20f   :  { %v5414_v6 = vpop.f32.mrf.mxu0  ;;  %v5465_v16 = vpop.f32.mrf.mxu1  ;;  %5796 = vmatprep.subr.bf16.mxu0 %v8143_v60  ;;  %v8209_v9 = vld [vmem:[#allocation5 + $0xe84] ss:$8 sps:$4 sm:$0xff]   ;;  %v8204_v47 = vld [vmem:[#allocation5 + $0xf90] ss:$8 sps:$4 sm:$0xff]   ;;  %v8207_v61 = vld [vmem:[#allocation5 + $0xe80] ss:$8 sps:$4 sm:$0xff]  }
 0x210   :  { %v5415_v17 = vadd.f32 %v5414_v6, %v8987_v27  ;;  %v9021_v10 = vadd.f32 %v5465_v16, %v5413_v11  ;;  %5848 = vmatpush1.bf16.msra.mxu1 %v8138_v8  ;;  %v8161_v27 = vld [vmem:[#allocation5 + $0xe04] ss:$8 sps:$4 sm:$0xff]   ;;  %v112_v8 = vld [vmem:[#allocation2 + $0xe0] sm:$0xff]  ;;  %v8210_v1 = vld [vmem:[#allocation5 + $0xf80] ss:$8 sps:$4 sm:$0xff]   ;;  %v213_v16 = vunpack.c.h.s8.bf16 %v8995_v40 }
 0x211   :  { %v5467_v13 = vpop.f32.mrf.mxu1  ;;  %5849 = vmatprep.subr.bf16.mxu1 %v8146_v19  ;;  %v8212_v60 = vld [vmem:[#allocation5 + $0xf84] ss:$8 sps:$4 sm:$0xff]   ;;  %v8215_v44 = vld [vmem:[#allocation5 + $0x1074] ss:$8 sps:$4 sm:$0xff]   ;;  %v162_v11 = vunpack.c.l.s8.bf16 %v112_v8  ;;  %v8213_v6 = vld [vmem:[#allocation5 + $0x1070] ss:$8 sps:$4 sm:$0xff]  }
 0x212   :  { %v9023_v22 = vadd.f32 %v5467_v13, %v5415_v17  ;;  %5797 = vmatpush1.bf16.msra.mxu0 %v8141_v5  ;;  %v9025_v19 = vld [vmem:[#allocation2 + $0xf0] sm:$0xff]  ;;  %v8218_v5 = vld [vmem:[#allocation5 + $0x1174] ss:$8 sps:$4 sm:$0xff]   ;;  %v215_v13 = vunpack.c.h.s8.bf16 %v9000_v34 }
 0x213   :  { %5798 = vmatprep.subr.bf16.mxu0 %v8149_v7  ;;  %v164_v7 = vunpack.c.l.s8.bf16 %v9025_v19  ;;  %v8221_v17 = vld [vmem:[#allocation5 + $0x1064] ss:$8 sps:$4 sm:$0xff]   ;;  %v8227_v40 = vld [vmem:[#allocation5 + $0x1054] ss:$8 sps:$4 sm:$0xff]   ;;  %v8222_v34 = vld [vmem:[#allocation5 + $0x1160] ss:$8 sps:$4 sm:$0xff]  }
 0x214   :  { %5850 = vmatpush1.bf16.msra.mxu1 %v8144_v12  ;;  %v8216_v12 = vld [vmem:[#allocation5 + $0x1170] ss:$8 sps:$4 sm:$0xff]  }
 0x215   :  { %5851 = vmatprep.subr.bf16.mxu1 %v8152_v14 }
 0x216   :  { %5799 = vmatpush1.bf16.msra.mxu0 %v8147_v23  ;;  %v8224_v23 = vld [vmem:[#allocation5 + $0x1164] ss:$8 sps:$4 sm:$0xff]  }
 0x217   :  { %5800 = vmatprep.subr.bf16.mxu0 %v8155_v15 }
 0x218   :  { %5852 = vmatpush1.bf16.msra.mxu1 %v8150_v18  ;;  %v8219_v18 = vld [vmem:[#allocation5 + $0x1060] ss:$8 sps:$4 sm:$0xff]  }
 0x219   :  { %5853 = vmatprep.subr.bf16.mxu1 %v8158_v25 }
 0x21a   :  { %5801 = vmatpush1.bf16.msra.mxu0 %v8153_v20 }
 0x21b   :  { %5802 = vmatprep.subr.bf16.mxu0 %v8161_v27  ;;  %v9031_v27 = vld [vmem:[#allocation2 + $0x108] sm:$0xff] }
 0x21c   :  { %5854 = vmatpush1.bf16.msra.mxu1 %v8156_v21 }
 0x21d   :  { %5855 = vmatprep.subr.bf16.mxu1 %v8164_v28 }
 0x21e   :  { %5803 = vmatpush1.bf16.msra.mxu0 %v8159_v24 }
 0x21f   :  { %5804 = vmatprep.subr.bf16.mxu0 %v8167_v26 }
 0x220   :  { %5856 = vmatpush1.bf16.msra.mxu1 %v8162_v35  ;;  %v8230_v35 = vld [vmem:[#allocation5 + $0x1154] ss:$8 sps:$4 sm:$0xff]  }
 0x221   :  { %5857 = vmatprep.subr.bf16.mxu1 %v8170_v36  ;;  %v9036_v36 = vld [vmem:[#allocation2 + $0x118] sm:$0xff] }
 0x222   :  { %5805 = vmatpush2.bf16.msra.mxu0 %v8165_v29 }
 0x223   :  { %5806 = vmatprep.subr.bf16.mxu0 %v8173_v31 }
 0x224   :  { %5858 = vmatpush2.bf16.msra.mxu1 %v8168_v32  ;;  %v8225_v32 = vld [vmem:[#allocation5 + $0x1050] ss:$8 sps:$4 sm:$0xff]  }
 0x225   :  { %5859 = vmatprep.subr.bf16.mxu1 %v8176_v51 }
 0x226   :  { %5807 = vmatpush2.bf16.msra.mxu0 %v8171_v33 }
 0x227   :  { %5808 = vmatprep.subr.bf16.mxu0 %v8179_v41  ;;  %v214_v41 = vunpack.c.h.s8.bf16 %v9025_v19  ;;  %v8248_v19 = vld [vmem:[#allocation5 + $0x1124] ss:$8 sps:$4 sm:$0xff]  }
 0x228   :  { %5860 = vmatpush2.bf16.msra.mxu1 %v8174_v53  ;;  %v8233_v53 = vld [vmem:[#allocation5 + $0x1044] ss:$8 sps:$4 sm:$0xff]  }
 0x229   :  { %5861 = vmatprep.subr.bf16.mxu1 %v8182_v38 }
 0x22a   :  { %5809 = vmatpush2.bf16.msra.mxu0 %v8177_v39 }
 0x22b   :  { %5810 = vmatprep.subr.bf16.mxu0 %v8185_v48  ;;  %v8228_v48 = vld [vmem:[#allocation5 + $0x1150] ss:$8 sps:$4 sm:$0xff]  }
 0x22c   :  { %5862 = vmatpush2.bf16.msra.mxu1 %v8180_v42 }
 0x22d   :  { %5863 = vmatprep.subr.bf16.mxu1 %v8188_v30 }
 0x22e   :  { %5811 = vmatpush2.bf16.msra.mxu0 %v8183_v57  ;;  %v8236_v57 = vld [vmem:[#allocation5 + $0x1144] ss:$8 sps:$4 sm:$0xff]  }
 0x22f   :  { %5812 = vmatprep.subr.bf16.mxu0 %v8191_v55 }
 0x230   :  { %5864 = vmatpush2.bf16.msra.mxu1 %v8186_v45 }
 0x231   :  { %5865 = vmatprep.subr.bf16.mxu1 %v8194_v46  ;;  %v8231_v46 = vld [vmem:[#allocation5 + $0x1040] ss:$8 sps:$4 sm:$0xff]  }
 0x232   :  { %5813 = vmatpush2.bf16.msra.mxu0 %v8189_v63 }
 0x233   :  { %5814 = vmatprep.subr.bf16.mxu0 %v8197_v49  ;;  %v8239_v49 = vld [vmem:[#allocation5 + $0x1034] ss:$8 sps:$4 sm:$0xff]  }
 0x234   :  { %5866 = vmatpush2.bf16.msra.mxu1 %v8192_v59 }
 0x235   :  { %5867 = vmatprep.subr.bf16.mxu1 %v8200_v4 }
 0x236   :  { %5815 = vmatpush2.bf16.msra.mxu0 %v8195_v52  ;;  %v8234_v52 = vld [vmem:[#allocation5 + $0x1140] ss:$8 sps:$4 sm:$0xff]  }
 0x237   :  { %5816 = vmatprep.subr.bf16.mxu0 %v8203_v54 }
 0x238   :  { %5868 = vmatpush2.bf16.msra.mxu1 %v8198_v2 }
 0x239   :  { %5869 = vmatprep.subr.bf16.mxu1 %v8206_v0 }
 0x23a   :  { %5817 = vmatpush2.bf16.msra.mxu0 %v8201_v58 }
 0x23b   :  { %5818 = vmatprep.subr.bf16.mxu0 %v8209_v9  ;;  %v8237_v9 = vld [vmem:[#allocation5 + $0x1030] ss:$8 sps:$4 sm:$0xff]  }
 0x23c   :  { %5870 = vmatpush2.bf16.msra.mxu1 %v8204_v47 }
 0x23d   :  { %5871 = vmatprep.subr.bf16.mxu1 %v8212_v60 }
 0x23e   :  { %5819 = vmatpush2.bf16.msra.mxu0 %v8207_v61  ;;  %v8245_v61 = vld [vmem:[#allocation5 + $0x1024] ss:$8 sps:$4 sm:$0xff]  }
 0x23f   :  { %5894 = vmatprep.subr.bf16.mxu0 %v8215_v44  ;;  %v8240_v44 = vld [vmem:[#allocation5 + $0x1130] ss:$8 sps:$4 sm:$0xff]  }
 0x240   :  { %5872 = vmatpush2.bf16.msra.mxu1 %v8210_v1 }
 0x241   :  { %v5504_v14 = vpop.f32.mrf.mxu0  ;;  %5821 = vmatmul.mubr.bf16.vlgmr.msra.gmra.mxu0 %v162_v11  ;;  %5947 = vmatprep.subr.bf16.mxu1 %v8218_v5  ;;  %v8251_v5 = vld [vmem:[#allocation5 + $0x1014] ss:$8 sps:$4 sm:$0xff]  }
 0x242   :  { %v5505_v15 = vadd.f32 %v5504_v14, %v8998_v37  ;;  %5895 = vmatpush1.bf16.msra.mxu0 %v8213_v6  ;;  %5830 = vmatprep.mubr.bf16.mxu0 %v213_v16  ;;  %v212_v37 = vunpack.c.h.s8.bf16 %v112_v8  ;;  %v8246_v6 = vld [vmem:[#allocation5 + $0x1120] ss:$8 sps:$4 sm:$0xff]   ;;  %v8254_v16 = vld [vmem:[#allocation5 + $0x1114] ss:$8 sps:$4 sm:$0xff]  }
 0x243   :  { %v5506_v25 = vpop.f32.mrf.mxu0  ;;  %v5557_v20 = vpop.f32.mrf.mxu1  ;;  %5874 = vmatmul.mubr.bf16.vlgmr.msra.gmra.mxu1 %v164_v7  ;;  %5896 = vmatprep.subr.bf16.mxu0 %v8221_v17  ;;  %v8249_v7 = vld [vmem:[#allocation5 + $0x1010] ss:$8 sps:$4 sm:$0xff]   ;;  %v8263_v14 = vld [vmem:[#allocation5 + $0x10f4] ss:$8 sps:$4 sm:$0xff]  }
 0x244   :  { %v5507_v21 = vadd.f32 %v5506_v25, %v9003_v43  ;;  %v9034_v28 = vadd.f32 %v5557_v20, %v5505_v15  ;;  %5948 = vmatpush1.bf16.msra.mxu1 %v8216_v12  ;;  %5883 = vmatprep.mubr.bf16.mxu1 %v215_v13  ;;  %v167_v43 = vunpack.c.l.s8.bf16 %v9031_v27  ;;  %v8252_v17 = vld [vmem:[#allocation5 + $0x1110] ss:$8 sps:$4 sm:$0xff]   ;;  %v8260_v12 = vld [vmem:[#allocation5 + $0x1104] ss:$8 sps:$4 sm:$0xff]   ;;  %v8255_v13 = vld [vmem:[#allocation5 + $0x1000] ss:$8 sps:$4 sm:$0xff]  }
 0x245   :  { %v5508_v24 = vpop.f32.mrf.mxu0  ;;  %v5559_v26 = vpop.f32.mrf.mxu1  ;;  %5949 = vmatprep.subr.bf16.mxu1 %v8224_v23  ;;  %v8258_v23 = vld [vmem:[#allocation5 + $0x1100] ss:$8 sps:$4 sm:$0xff]   ;;  %v8266_v15 = vld [vmem:[#allocation5 + $0x11f4] ss:$8 sps:$4 sm:$0xff]   ;;  %v8269_v25 = vld [vmem:[#allocation5 + $0x10e4] ss:$8 sps:$4 sm:$0xff]  }
 0x246   :  { %v5509_v29 = vadd.f32 %v5508_v24, %v9008_v50  ;;  %v9039_v31 = vadd.f32 %v5559_v26, %v5507_v21  ;;  %5897 = vmatpush1.bf16.msra.mxu0 %v8219_v18  ;;  %v169_v50 = vunpack.c.l.s8.bf16 %v9036_v36  ;;  %v8261_v18 = vld [vmem:[#allocation5 + $0x10f0] ss:$8 sps:$4 sm:$0xff]   ;;  %v8267_v21 = vld [vmem:[#allocation5 + $0x10e0] ss:$8 sps:$4 sm:$0xff]   ;;  %v8278_v26 = vld [vmem:[#allocation5 + $0x11d4] ss:$8 sps:$4 sm:$0xff]  }
 0x247   :  { %v5510_v51 = vpop.f32.mrf.mxu0  ;;  %v5561_v33 = vpop.f32.mrf.mxu1  ;;  %5898 = vmatprep.subr.bf16.mxu0 %v8227_v40  ;;  %v8264_v20 = vld [vmem:[#allocation5 + $0x11f0] ss:$8 sps:$4 sm:$0xff]   ;;  %v8272_v40 = vld [vmem:[#allocation5 + $0x11e4] ss:$8 sps:$4 sm:$0xff]   ;;  %v8270_v24 = vld [vmem:[#allocation5 + $0x11e0] ss:$8 sps:$4 sm:$0xff]  }
 0x248   :  { %v5511_v38 = vadd.f32 %v5510_v51, %v9012_v56  ;;  %v9044_v39 = vadd.f32 %v5561_v33, %v5509_v29  ;;  %5950 = vmatpush1.bf16.msra.mxu1 %v8222_v34  ;;  %v8275_v34 = vld [vmem:[#allocation5 + $0x10d4] ss:$8 sps:$4 sm:$0xff]   ;;  %v8276_v29 = vld [vmem:[#allocation5 + $0x11d0] ss:$8 sps:$4 sm:$0xff]   ;;  %v8282_v33 = vld [vmem:[#allocation5 + $0x11c0] ss:$8 sps:$4 sm:$0xff]  }
 0x249   :  { %v5514_v42 = vpop.f32.mrf.mxu0  ;;  %v5563_v30 = vpop.f32.mrf.mxu1  ;;  %5831 = vmatmul.mubr.bf16.gmra.mxu0 %v212_v37  ;;  %5951 = vmatprep.subr.bf16.mxu1 %v8230_v35  ;;  %v8273_v37 = vld [vmem:[#allocation5 + $0x10d0] ss:$8 sps:$4 sm:$0xff]   ;;  %v8281_v35 = vld [vmem:[#allocation5 + $0x10c4] ss:$8 sps:$4 sm:$0xff]   ;;  %v8287_v51 = vld [vmem:[#allocation5 + $0x10b4] ss:$8 sps:$4 sm:$0xff]  }
 0x24a   :  { %v5515_v55 = vadd.f32 %v5514_v42, %v9015_v62  ;;  %v9048_v45 = vadd.f32 %v5563_v30, %v5511_v38  ;;  %5899 = vmatpush1.bf16.msra.mxu0 %v8225_v32  ;;  %5926 = vmatprep.mubr.bf16.mxu0 %v167_v43  ;;  %v8242_v62 = vld [vmem:[#allocation5 + $0x1134] ss:$8 sps:$4 sm:$0xff]   ;;  %v8284_v32 = vld [vmem:[#allocation5 + $0x11c4] ss:$8 sps:$4 sm:$0xff]   ;;  %v8279_v43 = vld [vmem:[#allocation5 + $0x10c0] ss:$8 sps:$4 sm:$0xff]  }
 0x24b   :  { %v5516_v63 = vpop.f32.mrf.mxu0  ;;  %v5567_v56 = vpop.f32.mrf.mxu1  ;;  %5884 = vmatmul.mubr.bf16.gmra.mxu1 %v214_v41  ;;  %5900 = vmatprep.subr.bf16.mxu0 %v8233_v53  ;;  %v8290_v41 = vld [vmem:[#allocation5 + $0x11b4] ss:$8 sps:$4 sm:$0xff]   ;;  %v8285_v53 = vld [vmem:[#allocation5 + $0x10b0] ss:$8 sps:$4 sm:$0xff]   ;;  %v8293_v38 = vld [vmem:[#allocation5 + $0x10a4] ss:$8 sps:$4 sm:$0xff]  }
 0x24c   :  { %v5517_v59 = vadd.f32 %v5516_v63, %v9018_v3  ;;  %v9051_v4 = vadd.f32 %v5567_v56, %v5515_v55  ;;  %5952 = vmatpush1.bf16.msra.mxu1 %v8228_v48  ;;  %5979 = vmatprep.mubr.bf16.mxu1 %v169_v50  ;;  %v8288_v48 = vld [vmem:[#allocation5 + $0x11b0] ss:$8 sps:$4 sm:$0xff]   ;;  %v8296_v50 = vld [vmem:[#allocation5 + $0x11a4] ss:$8 sps:$4 sm:$0xff]   ;;  %v8291_v42 = vld [vmem:[#allocation5 + $0x10a0] ss:$8 sps:$4 sm:$0xff]  }
 0x24d   :  { %v5518_v54 = vpop.f32.mrf.mxu0  ;;  %v5569_v2 = vpop.f32.mrf.mxu1  ;;  %5953 = vmatprep.subr.bf16.mxu1 %v8236_v57  ;;  %v8299_v30 = vld [vmem:[#allocation5 + $0x1094] ss:$8 sps:$4 sm:$0xff]   ;;  %v8294_v57 = vld [vmem:[#allocation5 + $0x11a0] ss:$8 sps:$4 sm:$0xff]   ;;  %v8305_v63 = vld [vmem:[#allocation5 + $0x1084] ss:$8 sps:$4 sm:$0xff]  }
 0x24e   :  { %v5519_v0 = vadd.f32 %v5518_v54, %v9021_v10  ;;  %v9054_v58 = vadd.f32 %v5569_v2, %v5517_v59  ;;  %5901 = vmatpush1.bf16.msra.mxu0 %v8231_v46  ;;  %v8243_v10 = vld [vmem:[#allocation5 + $0x1020] ss:$8 sps:$4 sm:$0xff]   ;;  %v8302_v55 = vld [vmem:[#allocation5 + $0x1194] ss:$8 sps:$4 sm:$0xff]   ;;  %v8297_v46 = vld [vmem:[#allocation5 + $0x1090] ss:$8 sps:$4 sm:$0xff]  }
 0x24f   :  { %v5520_v47 = vpop.f32.mrf.mxu0  ;;  %v5571_v60 = vpop.f32.mrf.mxu1  ;;  %5902 = vmatprep.subr.bf16.mxu0 %v8239_v49  ;;  %v8300_v56 = vld [vmem:[#allocation5 + $0x1190] ss:$8 sps:$4 sm:$0xff]   ;;  %v8308_v49 = vld [vmem:[#allocation5 + $0x1184] ss:$8 sps:$4 sm:$0xff]   ;;  %v8303_v59 = vld [vmem:[#allocation5 + $0x1080] ss:$8 sps:$4 sm:$0xff]  }
 0x250   :  { %v5521_v3 = vadd.f32 %v5520_v47, %v9023_v22  ;;  %v9057_v8 = vadd.f32 %v5571_v60, %v5519_v0  ;;  %5954 = vmatpush1.bf16.msra.mxu1 %v8234_v52  ;;  %v8257_v22 = vld [vmem:[#allocation5 + $0x1004] ss:$8 sps:$4 sm:$0xff]   ;;  %v116_v52 = vld [vmem:[#allocation2 + $0x100] sm:$0xff]  ;;  %v8306_v2 = vld [vmem:[#allocation5 + $0x1180] ss:$8 sps:$4 sm:$0xff]   ;;  %v217_v60 = vunpack.c.h.s8.bf16 %v9031_v27 }
 0x251   :  { %v5573_v1 = vpop.f32.mrf.mxu1  ;;  %5955 = vmatprep.subr.bf16.mxu1 %v8242_v62  ;;  %v8311_v54 = vld [vmem:[#allocation5 + $0x1274] ss:$8 sps:$4 sm:$0xff]   ;;  %v9061_v62 = vld [vmem:[#allocation2 + $0x110] sm:$0xff]  ;;  %v166_v0 = vunpack.c.l.s8.bf16 %v116_v52  ;;  %v8309_v47 = vld [vmem:[#allocation5 + $0x1270] ss:$8 sps:$4 sm:$0xff]  }
 0x252   :  { %v9059_v11 = vadd.f32 %v5573_v1, %v5521_v3  ;;  %5903 = vmatpush1.bf16.msra.mxu0 %v8237_v9  ;;  %v8314_v9 = vld [vmem:[#allocation5 + $0x1374] ss:$8 sps:$4 sm:$0xff]   ;;  %v8317_v3 = vld [vmem:[#allocation5 + $0x1264] ss:$8 sps:$4 sm:$0xff]   ;;  %v219_v1 = vunpack.c.h.s8.bf16 %v9036_v36  ;;  %v8318_v36 = vld [vmem:[#allocation5 + $0x1360] ss:$8 sps:$4 sm:$0xff]  }
 0x253   :  { %5904 = vmatprep.subr.bf16.mxu0 %v8245_v61  ;;  %v168_v61 = vunpack.c.l.s8.bf16 %v9061_v62  ;;  %v8323_v27 = vld [vmem:[#allocation5 + $0x1254] ss:$8 sps:$4 sm:$0xff]  }
 0x254   :  { %5956 = vmatpush1.bf16.msra.mxu1 %v8240_v44  ;;  %v8312_v44 = vld [vmem:[#allocation5 + $0x1370] ss:$8 sps:$4 sm:$0xff]  }
 0x255   :  { %5957 = vmatprep.subr.bf16.mxu1 %v8248_v19 }
 0x256   :  { %5905 = vmatpush1.bf16.msra.mxu0 %v8243_v10  ;;  %v8320_v10 = vld [vmem:[#allocation5 + $0x1364] ss:$8 sps:$4 sm:$0xff]  }
 0x257   :  { %5906 = vmatprep.subr.bf16.mxu0 %v8251_v5 }
 0x258   :  { %5958 = vmatpush1.bf16.msra.mxu1 %v8246_v6  ;;  %v8315_v6 = vld [vmem:[#allocation5 + $0x1260] ss:$8 sps:$4 sm:$0xff]  }
 0x259   :  { %5959 = vmatprep.subr.bf16.mxu1 %v8254_v16 }
 0x25a   :  { %5907 = vmatpush1.bf16.msra.mxu0 %v8249_v7 }
 0x25b   :  { %5908 = vmatprep.subr.bf16.mxu0 %v8257_v22  ;;  %v9067_v22 = vld [vmem:[#allocation2 + $0x128] sm:$0xff] }
 0x25c   :  { %5960 = vmatpush1.bf16.msra.mxu1 %v8252_v17 }
 0x25d   :  { %5961 = vmatprep.subr.bf16.mxu1 %v8260_v12 }
 0x25e   :  { %5909 = vmatpush1.bf16.msra.mxu0 %v8255_v13 }
 0x25f   :  { %5910 = vmatprep.subr.bf16.mxu0 %v8263_v14 }
 0x260   :  { %5962 = vmatpush1.bf16.msra.mxu1 %v8258_v23  ;;  %v8326_v23 = vld [vmem:[#allocation5 + $0x1354] ss:$8 sps:$4 sm:$0xff]  }
 0x261   :  { %5963 = vmatprep.subr.bf16.mxu1 %v8266_v15  ;;  %v9072_v15 = vld [vmem:[#allocation2 + $0x138] sm:$0xff] }
 0x262   :  { %5911 = vmatpush2.bf16.msra.mxu0 %v8261_v18 }
 0x263   :  { %5912 = vmatprep.subr.bf16.mxu0 %v8269_v25 }
 0x264   :  { %5964 = vmatpush2.bf16.msra.mxu1 %v8264_v20  ;;  %v8321_v20 = vld [vmem:[#allocation5 + $0x1250] ss:$8 sps:$4 sm:$0xff]  }
 0x265   :  { %5965 = vmatprep.subr.bf16.mxu1 %v8272_v40 }
 0x266   :  { %5913 = vmatpush2.bf16.msra.mxu0 %v8267_v21 }
 0x267   :  { %5914 = vmatprep.subr.bf16.mxu0 %v8275_v34  ;;  %v218_v34 = vunpack.c.h.s8.bf16 %v9061_v62  ;;  %v8344_v62 = vld [vmem:[#allocation5 + $0x1324] ss:$8 sps:$4 sm:$0xff]  }
 0x268   :  { %5966 = vmatpush2.bf16.msra.mxu1 %v8270_v24  ;;  %v8329_v24 = vld [vmem:[#allocation5 + $0x1244] ss:$8 sps:$4 sm:$0xff]  }
 0x269   :  { %5967 = vmatprep.subr.bf16.mxu1 %v8278_v26 }
 0x26a   :  { %5915 = vmatpush2.bf16.msra.mxu0 %v8273_v37 }
 0x26b   :  { %5916 = vmatprep.subr.bf16.mxu0 %v8281_v35  ;;  %v8324_v35 = vld [vmem:[#allocation5 + $0x1350] ss:$8 sps:$4 sm:$0xff]  }
 0x26c   :  { %5968 = vmatpush2.bf16.msra.mxu1 %v8276_v29 }
 0x26d   :  { %5969 = vmatprep.subr.bf16.mxu1 %v8284_v32 }
 0x26e   :  { %5917 = vmatpush2.bf16.msra.mxu0 %v8279_v43  ;;  %v8332_v43 = vld [vmem:[#allocation5 + $0x1344] ss:$8 sps:$4 sm:$0xff]  }
 0x26f   :  { %5918 = vmatprep.subr.bf16.mxu0 %v8287_v51 }
 0x270   :  { %5970 = vmatpush2.bf16.msra.mxu1 %v8282_v33 }
 0x271   :  { %5971 = vmatprep.subr.bf16.mxu1 %v8290_v41  ;;  %v8327_v41 = vld [vmem:[#allocation5 + $0x1240] ss:$8 sps:$4 sm:$0xff]  }
 0x272   :  { %5919 = vmatpush2.bf16.msra.mxu0 %v8285_v53 }
 0x273   :  { %5920 = vmatprep.subr.bf16.mxu0 %v8293_v38  ;;  %v8335_v38 = vld [vmem:[#allocation5 + $0x1234] ss:$8 sps:$4 sm:$0xff]  }
 0x274   :  { %5972 = vmatpush2.bf16.msra.mxu1 %v8288_v48 }
 0x275   :  { %5973 = vmatprep.subr.bf16.mxu1 %v8296_v50 }
 0x276   :  { %5921 = vmatpush2.bf16.msra.mxu0 %v8291_v42  ;;  %v8330_v42 = vld [vmem:[#allocation5 + $0x1340] ss:$8 sps:$4 sm:$0xff]  }
 0x277   :  { %5922 = vmatprep.subr.bf16.mxu0 %v8299_v30 }
 0x278   :  { %5974 = vmatpush2.bf16.msra.mxu1 %v8294_v57 }
 0x279   :  { %5975 = vmatprep.subr.bf16.mxu1 %v8302_v55 }
 0x27a   :  { %5923 = vmatpush2.bf16.msra.mxu0 %v8297_v46 }
 0x27b   :  { %5924 = vmatprep.subr.bf16.mxu0 %v8305_v63  ;;  %v8333_v63 = vld [vmem:[#allocation5 + $0x1230] ss:$8 sps:$4 sm:$0xff]  }
 0x27c   :  { %5976 = vmatpush2.bf16.msra.mxu1 %v8300_v56 }
 0x27d   :  { %5977 = vmatprep.subr.bf16.mxu1 %v8308_v49 }
 0x27e   :  { %5925 = vmatpush2.bf16.msra.mxu0 %v8303_v59  ;;  %v8341_v59 = vld [vmem:[#allocation5 + $0x1224] ss:$8 sps:$4 sm:$0xff]  }
 0x27f   :  { %6000 = vmatprep.subr.bf16.mxu0 %v8311_v54  ;;  %v8336_v54 = vld [vmem:[#allocation5 + $0x1330] ss:$8 sps:$4 sm:$0xff]  }
 0x280   :  { %5978 = vmatpush2.bf16.msra.mxu1 %v8306_v2 }
 0x281   :  { %v5610_v19 = vpop.f32.mrf.mxu0  ;;  %5927 = vmatmul.mubr.bf16.vlgmr.msra.gmra.mxu0 %v166_v0  ;;  %6053 = vmatprep.subr.bf16.mxu1 %v8314_v9  ;;  %v8347_v9 = vld [vmem:[#allocation5 + $0x1214] ss:$8 sps:$4 sm:$0xff]  }
 0x282   :  { %v5611_v5 = vadd.f32 %v5610_v19, %v9034_v28  ;;  %6001 = vmatpush1.bf16.msra.mxu0 %v8309_v47  ;;  %5936 = vmatprep.mubr.bf16.mxu0 %v217_v60  ;;  %v216_v28 = vunpack.c.h.s8.bf16 %v116_v52  ;;  %v8342_v47 = vld [vmem:[#allocation5 + $0x1320] ss:$8 sps:$4 sm:$0xff]   ;;  %v8350_v60 = vld [vmem:[#allocation5 + $0x1314] ss:$8 sps:$4 sm:$0xff]  }
 0x283   :  { %v5612_v16 = vpop.f32.mrf.mxu0  ;;  %v5663_v7 = vpop.f32.mrf.mxu1  ;;  %5980 = vmatmul.mubr.bf16.vlgmr.msra.gmra.mxu1 %v168_v61  ;;  %6002 = vmatprep.subr.bf16.mxu0 %v8317_v3  ;;  %v8345_v61 = vld [vmem:[#allocation5 + $0x1210] ss:$8 sps:$4 sm:$0xff]   ;;  %v8359_v19 = vld [vmem:[#allocation5 + $0x12f4] ss:$8 sps:$4 sm:$0xff]  }
 0x284   :  { %v5613_v17 = vadd.f32 %v5612_v16, %v9039_v31  ;;  %v9070_v12 = vadd.f32 %v5663_v7, %v5611_v5  ;;  %6054 = vmatpush1.bf16.msra.mxu1 %v8312_v44  ;;  %5989 = vmatprep.mubr.bf16.mxu1 %v219_v1  ;;  %v171_v31 = vunpack.c.l.s8.bf16 %v9067_v22  ;;  %v8348_v3 = vld [vmem:[#allocation5 + $0x1310] ss:$8 sps:$4 sm:$0xff]   ;;  %v8356_v44 = vld [vmem:[#allocation5 + $0x1304] ss:$8 sps:$4 sm:$0xff]   ;;  %v8351_v1 = vld [vmem:[#allocation5 + $0x1200] ss:$8 sps:$4 sm:$0xff]  }
 0x285   :  { %v5614_v13 = vpop.f32.mrf.mxu0  ;;  %v5665_v14 = vpop.f32.mrf.mxu1  ;;  %6055 = vmatprep.subr.bf16.mxu1 %v8320_v10  ;;  %v8354_v10 = vld [vmem:[#allocation5 + $0x1300] ss:$8 sps:$4 sm:$0xff]   ;;  %v8362_v5 = vld [vmem:[#allocation5 + $0x13f4] ss:$8 sps:$4 sm:$0xff]   ;;  %v8365_v16 = vld [vmem:[#allocation5 + $0x12e4] ss:$8 sps:$4 sm:$0xff]  }
 0x286   :  { %v5615_v18 = vadd.f32 %v5614_v13, %v9044_v39  ;;  %v9075_v25 = vadd.f32 %v5665_v14, %v5613_v17  ;;  %6003 = vmatpush1.bf16.msra.mxu0 %v8315_v6  ;;  %v173_v39 = vunpack.c.l.s8.bf16 %v9072_v15  ;;  %v8357_v6 = vld [vmem:[#allocation5 + $0x12f0] ss:$8 sps:$4 sm:$0xff]   ;;  %v8363_v17 = vld [vmem:[#allocation5 + $0x12e0] ss:$8 sps:$4 sm:$0xff]   ;;  %v8374_v14 = vld [vmem:[#allocation5 + $0x13d4] ss:$8 sps:$4 sm:$0xff]  }
 0x287   :  { %v5616_v40 = vpop.f32.mrf.mxu0  ;;  %v5667_v21 = vpop.f32.mrf.mxu1  ;;  %6004 = vmatprep.subr.bf16.mxu0 %v8323_v27  ;;  %v8360_v7 = vld [vmem:[#allocation5 + $0x13f0] ss:$8 sps:$4 sm:$0xff]   ;;  %v8368_v27 = vld [vmem:[#allocation5 + $0x13e4] ss:$8 sps:$4 sm:$0xff]   ;;  %v8366_v13 = vld [vmem:[#allocation5 + $0x13e0] ss:$8 sps:$4 sm:$0xff]  }
 0x288   :  { %v5617_v26 = vadd.f32 %v5616_v40, %v9048_v45  ;;  %v9080_v37 = vadd.f32 %v5667_v21, %v5615_v18  ;;  %6056 = vmatpush1.bf16.msra.mxu1 %v8318_v36  ;;  %v8371_v36 = vld [vmem:[#allocation5 + $0x12d4] ss:$8 sps:$4 sm:$0xff]   ;;  %v8372_v18 = vld [vmem:[#allocation5 + $0x13d0] ss:$8 sps:$4 sm:$0xff]   ;;  %v8378_v21 = vld [vmem:[#allocation5 + $0x13c0] ss:$8 sps:$4 sm:$0xff]  }
 0x289   :  { %v5620_v29 = vpop.f32.mrf.mxu0  ;;  %v5669_v32 = vpop.f32.mrf.mxu1  ;;  %5937 = vmatmul.mubr.bf16.gmra.mxu0 %v216_v28  ;;  %6057 = vmatprep.subr.bf16.mxu1 %v8326_v23  ;;  %v8369_v28 = vld [vmem:[#allocation5 + $0x12d0] ss:$8 sps:$4 sm:$0xff]   ;;  %v8377_v23 = vld [vmem:[#allocation5 + $0x12c4] ss:$8 sps:$4 sm:$0xff]   ;;  %v8383_v40 = vld [vmem:[#allocation5 + $0x12b4] ss:$8 sps:$4 sm:$0xff]  }
 0x28a   :  { %v5621_v51 = vadd.f32 %v5620_v29, %v9051_v4  ;;  %v9084_v33 = vadd.f32 %v5669_v32, %v5617_v26  ;;  %6005 = vmatpush1.bf16.msra.mxu0 %v8321_v20  ;;  %6032 = vmatprep.mubr.bf16.mxu0 %v171_v31  ;;  %v8338_v4 = vld [vmem:[#allocation5 + $0x1334] ss:$8 sps:$4 sm:$0xff]   ;;  %v8380_v20 = vld [vmem:[#allocation5 + $0x13c4] ss:$8 sps:$4 sm:$0xff]   ;;  %v8375_v31 = vld [vmem:[#allocation5 + $0x12c0] ss:$8 sps:$4 sm:$0xff]  }
 0x28b   :  { %v5622_v53 = vpop.f32.mrf.mxu0  ;;  %v5673_v45 = vpop.f32.mrf.mxu1  ;;  %5990 = vmatmul.mubr.bf16.gmra.mxu1 %v218_v34  ;;  %6006 = vmatprep.subr.bf16.mxu0 %v8329_v24  ;;  %v8386_v34 = vld [vmem:[#allocation5 + $0x13b4] ss:$8 sps:$4 sm:$0xff]   ;;  %v8381_v24 = vld [vmem:[#allocation5 + $0x12b0] ss:$8 sps:$4 sm:$0xff]   ;;  %v8389_v26 = vld [vmem:[#allocation5 + $0x12a4] ss:$8 sps:$4 sm:$0xff]  }
 0x28c   :  { %v5623_v48 = vadd.f32 %v5622_v53, %v9054_v58  ;;  %v9087_v50 = vadd.f32 %v5673_v45, %v5621_v51  ;;  %6058 = vmatpush1.bf16.msra.mxu1 %v8324_v35  ;;  %6085 = vmatprep.mubr.bf16.mxu1 %v173_v39  ;;  %v8384_v35 = vld [vmem:[#allocation5 + $0x13b0] ss:$8 sps:$4 sm:$0xff]   ;;  %v8392_v39 = vld [vmem:[#allocation5 + $0x13a4] ss:$8 sps:$4 sm:$0xff]   ;;  %v8387_v29 = vld [vmem:[#allocation5 + $0x12a0] ss:$8 sps:$4 sm:$0xff]  }
 0x28d   :  { %v5624_v30 = vpop.f32.mrf.mxu0  ;;  %v5675_v57 = vpop.f32.mrf.mxu1  ;;  %6059 = vmatprep.subr.bf16.mxu1 %v8332_v43  ;;  %v8395_v32 = vld [vmem:[#allocation5 + $0x1294] ss:$8 sps:$4 sm:$0xff]   ;;  %v8390_v43 = vld [vmem:[#allocation5 + $0x13a0] ss:$8 sps:$4 sm:$0xff]   ;;  %v8401_v53 = vld [vmem:[#allocation5 + $0x1284] ss:$8 sps:$4 sm:$0xff]  }
 0x28e   :  { %v5625_v55 = vadd.f32 %v5624_v30, %v9057_v8  ;;  %v9090_v46 = vadd.f32 %v5675_v57, %v5623_v48  ;;  %6007 = vmatpush1.bf16.msra.mxu0 %v8327_v41  ;;  %v8339_v8 = vld [vmem:[#allocation5 + $0x1220] ss:$8 sps:$4 sm:$0xff]   ;;  %v8398_v51 = vld [vmem:[#allocation5 + $0x1394] ss:$8 sps:$4 sm:$0xff]   ;;  %v8393_v41 = vld [vmem:[#allocation5 + $0x1290] ss:$8 sps:$4 sm:$0xff]  }
 0x28f   :  { %v5626_v56 = vpop.f32.mrf.mxu0  ;;  %v5677_v49 = vpop.f32.mrf.mxu1  ;;  %6008 = vmatprep.subr.bf16.mxu0 %v8335_v38  ;;  %v8396_v45 = vld [vmem:[#allocation5 + $0x1390] ss:$8 sps:$4 sm:$0xff]   ;;  %v8404_v38 = vld [vmem:[#allocation5 + $0x1384] ss:$8 sps:$4 sm:$0xff]   ;;  %v8399_v48 = vld [vmem:[#allocation5 + $0x1280] ss:$8 sps:$4 sm:$0xff]  }
 0x290   :  { %v5627_v58 = vadd.f32 %v5626_v56, %v9059_v11  ;;  %v9093_v52 = vadd.f32 %v5677_v49, %v5625_v55  ;;  %6060 = vmatpush1.bf16.msra.mxu1 %v8330_v42  ;;  %v8353_v11 = vld [vmem:[#allocation5 + $0x1204] ss:$8 sps:$4 sm:$0xff]   ;;  %v120_v42 = vld [vmem:[#allocation2 + $0x120] sm:$0xff]  ;;  %v8402_v57 = vld [vmem:[#allocation5 + $0x1380] ss:$8 sps:$4 sm:$0xff]   ;;  %v221_v49 = vunpack.c.h.s8.bf16 %v9067_v22 }
 0x291   :  { %v5679_v2 = vpop.f32.mrf.mxu1  ;;  %6061 = vmatprep.subr.bf16.mxu1 %v8338_v4  ;;  %v8407_v30 = vld [vmem:[#allocation5 + $0x1474] ss:$8 sps:$4 sm:$0xff]   ;;  %v9097_v4 = vld [vmem:[#allocation2 + $0x130] sm:$0xff]  ;;  %v170_v55 = vunpack.c.l.s8.bf16 %v120_v42  ;;  %v8405_v56 = vld [vmem:[#allocation5 + $0x1470] ss:$8 sps:$4 sm:$0xff]  }
 0x292   :  { %v9095_v0 = vadd.f32 %v5679_v2, %v5627_v58  ;;  %6009 = vmatpush1.bf16.msra.mxu0 %v8333_v63  ;;  %v8410_v63 = vld [vmem:[#allocation5 + $0x1574] ss:$8 sps:$4 sm:$0xff]   ;;  %v8413_v58 = vld [vmem:[#allocation5 + $0x1464] ss:$8 sps:$4 sm:$0xff]   ;;  %v223_v2 = vunpack.c.h.s8.bf16 %v9072_v15  ;;  %v8414_v15 = vld [vmem:[#allocation5 + $0x1560] ss:$8 sps:$4 sm:$0xff]  }
 0x293   :  { %6010 = vmatprep.subr.bf16.mxu0 %v8341_v59  ;;  %v172_v59 = vunpack.c.l.s8.bf16 %v9097_v4  ;;  %v8419_v22 = vld [vmem:[#allocation5 + $0x1454] ss:$8 sps:$4 sm:$0xff]  }
 0x294   :  { %6062 = vmatpush1.bf16.msra.mxu1 %v8336_v54  ;;  %v8408_v54 = vld [vmem:[#allocation5 + $0x1570] ss:$8 sps:$4 sm:$0xff]  }
 0x295   :  { %6063 = vmatprep.subr.bf16.mxu1 %v8344_v62 }
 0x296   :  { %6011 = vmatpush1.bf16.msra.mxu0 %v8339_v8  ;;  %v8416_v8 = vld [vmem:[#allocation5 + $0x1564] ss:$8 sps:$4 sm:$0xff]  }
 0x297   :  { %6012 = vmatprep.subr.bf16.mxu0 %v8347_v9 }
 0x298   :  { %6064 = vmatpush1.bf16.msra.mxu1 %v8342_v47  ;;  %v8411_v47 = vld [vmem:[#allocation5 + $0x1460] ss:$8 sps:$4 sm:$0xff]  }
 0x299   :  { %6065 = vmatprep.subr.bf16.mxu1 %v8350_v60 }
 0x29a   :  { %6013 = vmatpush1.bf16.msra.mxu0 %v8345_v61 }
 0x29b   :  { %6014 = vmatprep.subr.bf16.mxu0 %v8353_v11  ;;  %v9103_v11 = vld [vmem:[#allocation2 + $0x148] sm:$0xff] }
 0x29c   :  { %6066 = vmatpush1.bf16.msra.mxu1 %v8348_v3 }
 0x29d   :  { %6067 = vmatprep.subr.bf16.mxu1 %v8356_v44 }
 0x29e   :  { %6015 = vmatpush1.bf16.msra.mxu0 %v8351_v1 }
 0x29f   :  { %6016 = vmatprep.subr.bf16.mxu0 %v8359_v19 }
 0x2a0   :  { %6068 = vmatpush1.bf16.msra.mxu1 %v8354_v10  ;;  %v8422_v10 = vld [vmem:[#allocation5 + $0x1554] ss:$8 sps:$4 sm:$0xff]  }
 0x2a1   :  { %6069 = vmatprep.subr.bf16.mxu1 %v8362_v5  ;;  %v9108_v5 = vld [vmem:[#allocation2 + $0x158] sm:$0xff] }
 0x2a2   :  { %6017 = vmatpush2.bf16.msra.mxu0 %v8357_v6 }
 0x2a3   :  { %6018 = vmatprep.subr.bf16.mxu0 %v8365_v16 }
 0x2a4   :  { %6070 = vmatpush2.bf16.msra.mxu1 %v8360_v7  ;;  %v8417_v7 = vld [vmem:[#allocation5 + $0x1450] ss:$8 sps:$4 sm:$0xff]  }
 0x2a5   :  { %6071 = vmatprep.subr.bf16.mxu1 %v8368_v27 }
 0x2a6   :  { %6019 = vmatpush2.bf16.msra.mxu0 %v8363_v17 }
 0x2a7   :  { %6020 = vmatprep.subr.bf16.mxu0 %v8371_v36  ;;  %v222_v36 = vunpack.c.h.s8.bf16 %v9097_v4  ;;  %v8449_v4 = vld [vmem:[#allocation5 + $0x1404] ss:$8 sps:$4 sm:$0xff]  }
 0x2a8   :  { %6072 = vmatpush2.bf16.msra.mxu1 %v8366_v13  ;;  %v8425_v13 = vld [vmem:[#allocation5 + $0x1444] ss:$8 sps:$4 sm:$0xff]  }
 0x2a9   :  { %6073 = vmatprep.subr.bf16.mxu1 %v8374_v14 }
 0x2aa   :  { %6021 = vmatpush2.bf16.msra.mxu0 %v8369_v28  ;;  %v8420_v28 = vld [vmem:[#allocation5 + $0x1550] ss:$8 sps:$4 sm:$0xff]  }
 0x2ab   :  { %6022 = vmatprep.subr.bf16.mxu0 %v8377_v23 }
 0x2ac   :  { %6074 = vmatpush2.bf16.msra.mxu1 %v8372_v18 }
 0x2ad   :  { %6075 = vmatprep.subr.bf16.mxu1 %v8380_v20  ;;  %v8428_v20 = vld [vmem:[#allocation5 + $0x1544] ss:$8 sps:$4 sm:$0xff]  }
 0x2ae   :  { %6023 = vmatpush2.bf16.msra.mxu0 %v8375_v31 }
 0x2af   :  { %6024 = vmatprep.subr.bf16.mxu0 %v8383_v40  ;;  %v8423_v40 = vld [vmem:[#allocation5 + $0x1440] ss:$8 sps:$4 sm:$0xff]  }
 0x2b0   :  { %6076 = vmatpush2.bf16.msra.mxu1 %v8378_v21 }
 0x2b1   :  { %6077 = vmatprep.subr.bf16.mxu1 %v8386_v34 }
 0x2b2   :  { %6025 = vmatpush2.bf16.msra.mxu0 %v8381_v24 }
 0x2b3   :  { %6026 = vmatprep.subr.bf16.mxu0 %v8389_v26 }
 0x2b4   :  { %6078 = vmatpush2.bf16.msra.mxu1 %v8384_v35  ;;  %v8426_v35 = vld [vmem:[#allocation5 + $0x1540] ss:$8 sps:$4 sm:$0xff]  }
 0x2b5   :  { %6079 = vmatprep.subr.bf16.mxu1 %v8392_v39 }
 0x2b6   :  { %6027 = vmatpush2.bf16.msra.mxu0 %v8387_v29 }
 0x2b7   :  { %6028 = vmatprep.subr.bf16.mxu0 %v8395_v32  ;;  %v8434_v32 = vld [vmem:[#allocation5 + $0x1534] ss:$8 sps:$4 sm:$0xff]  }
 0x2b8   :  { %6080 = vmatpush2.bf16.msra.mxu1 %v8390_v43 }
 0x2b9   :  { %6081 = vmatprep.subr.bf16.mxu1 %v8398_v51  ;;  %v8429_v51 = vld [vmem:[#allocation5 + $0x1430] ss:$8 sps:$4 sm:$0xff]  }
 0x2ba   :  { %6029 = vmatpush2.bf16.msra.mxu0 %v8393_v41 }
 0x2bb   :  { %6030 = vmatprep.subr.bf16.mxu0 %v8401_v53  ;;  %v8437_v53 = vld [vmem:[#allocation5 + $0x1424] ss:$8 sps:$4 sm:$0xff]  }
 0x2bc   :  { %6082 = vmatpush2.bf16.msra.mxu1 %v8396_v45  ;;  %v8432_v45 = vld [vmem:[#allocation5 + $0x1530] ss:$8 sps:$4 sm:$0xff]  }
 0x2bd   :  { %6083 = vmatprep.subr.bf16.mxu1 %v8404_v38  ;;  %v8440_v38 = vld [vmem:[#allocation5 + $0x1524] ss:$8 sps:$4 sm:$0xff]  }
 0x2be   :  { %6031 = vmatpush2.bf16.msra.mxu0 %v8399_v48  ;;  %v8435_v48 = vld [vmem:[#allocation5 + $0x1420] ss:$8 sps:$4 sm:$0xff]  }
 0x2bf   :  { %6106 = vmatprep.subr.bf16.mxu0 %v8407_v30  ;;  %v8446_v30 = vld [vmem:[#allocation5 + $0x1514] ss:$8 sps:$4 sm:$0xff]  }
 0x2c0   :  { %6084 = vmatpush2.bf16.msra.mxu1 %v8402_v57  ;;  %v8441_v57 = vld [vmem:[#allocation5 + $0x1410] ss:$8 sps:$4 sm:$0xff]  }
 0x2c1   :  { %v5716_v62 = vpop.f32.mrf.mxu0  ;;  %6033 = vmatmul.mubr.bf16.vlgmr.msra.gmra.mxu0 %v170_v55  ;;  %6159 = vmatprep.subr.bf16.mxu1 %v8410_v63  ;;  %v8444_v55 = vld [vmem:[#allocation5 + $0x1510] ss:$8 sps:$4 sm:$0xff]   ;;  %v8447_v63 = vld [vmem:[#allocation5 + $0x1400] ss:$8 sps:$4 sm:$0xff]  }
 0x2c2   :  { %v5717_v9 = vadd.f32 %v5716_v62, %v9070_v12  ;;  %6107 = vmatpush1.bf16.msra.mxu0 %v8405_v56  ;;  %6042 = vmatprep.mubr.bf16.mxu0 %v221_v49  ;;  %v220_v12 = vunpack.c.h.s8.bf16 %v120_v42  ;;  %v8443_v42 = vld [vmem:[#allocation5 + $0x1414] ss:$8 sps:$4 sm:$0xff]   ;;  %v8450_v49 = vld [vmem:[#allocation5 + $0x1500] ss:$8 sps:$4 sm:$0xff]   ;;  %v8464_v62 = vld [vmem:[#allocation5 + $0x15e4] ss:$8 sps:$4 sm:$0xff]  }
 0x2c3   :  { %v5718_v60 = vpop.f32.mrf.mxu0  ;;  %v5769_v61 = vpop.f32.mrf.mxu1  ;;  %6086 = vmatmul.mubr.bf16.vlgmr.msra.gmra.mxu1 %v172_v59  ;;  %6108 = vmatprep.subr.bf16.mxu0 %v8413_v58  ;;  %v8455_v56 = vld [vmem:[#allocation5 + $0x14f4] ss:$8 sps:$4 sm:$0xff]   ;;  %v8453_v58 = vld [vmem:[#allocation5 + $0x14f0] ss:$8 sps:$4 sm:$0xff]  }
 0x2c4   :  { %v5719_v3 = vadd.f32 %v5718_v60, %v9075_v25  ;;  %v9106_v44 = vadd.f32 %v5769_v61, %v5717_v9  ;;  %6160 = vmatpush1.bf16.msra.mxu1 %v8408_v54  ;;  %6095 = vmatprep.mubr.bf16.mxu1 %v223_v2  ;;  %v175_v25 = vunpack.c.l.s8.bf16 %v9103_v11  ;;  %v8458_v59 = vld [vmem:[#allocation5 + $0x15f4] ss:$8 sps:$4 sm:$0xff]   ;;  %v8461_v54 = vld [vmem:[#allocation5 + $0x14e4] ss:$8 sps:$4 sm:$0xff]   ;;  %v8456_v2 = vld [vmem:[#allocation5 + $0x15f0] ss:$8 sps:$4 sm:$0xff]  }
 0x2c5   :  { %v5720_v1 = vpop.f32.mrf.mxu0  ;;  %v5771_v19 = vpop.f32.mrf.mxu1  ;;  %6161 = vmatprep.subr.bf16.mxu1 %v8416_v8  ;;  %v8459_v8 = vld [vmem:[#allocation5 + $0x14e0] ss:$8 sps:$4 sm:$0xff]   ;;  %v8467_v9 = vld [vmem:[#allocation5 + $0x14d4] ss:$8 sps:$4 sm:$0xff]   ;;  %v8465_v61 = vld [vmem:[#allocation5 + $0x14d0] ss:$8 sps:$4 sm:$0xff]  }
 0x2c6   :  { %v9111_v6 = vadd.f32 %v5720_v1, %v9080_v37  ;;  %v9113_v16 = vadd.f32 %v5771_v19, %v5719_v3  ;;  %6109 = vmatpush1.bf16.msra.mxu0 %v8411_v47  ;;  %v177_v37 = vunpack.c.l.s8.bf16 %v9108_v5  ;;  %v8462_v47 = vld [vmem:[#allocation5 + $0x15e0] ss:$8 sps:$4 sm:$0xff]   ;;  %v8470_v60 = vld [vmem:[#allocation5 + $0x15d4] ss:$8 sps:$4 sm:$0xff]   ;;  %v8468_v3 = vld [vmem:[#allocation5 + $0x15d0] ss:$8 sps:$4 sm:$0xff]  }
 0x2c7   :  { %v5722_v27 = vpop.f32.mrf.mxu0  ;;  %v9116_v17 = vpop.f32.mrf.mxu1  ;;  %6110 = vmatprep.subr.bf16.mxu0 %v8419_v22  ;;  %v8473_v22 = vld [vmem:[#allocation5 + $0x14c4] ss:$8 sps:$4 sm:$0xff]   ;;  %v8471_v1 = vld [vmem:[#allocation5 + $0x14c0] ss:$8 sps:$4 sm:$0xff]   ;;  %v8479_v19 = vld [vmem:[#allocation5 + $0x14b4] ss:$8 sps:$4 sm:$0xff]  }
 0x2c8   :  { %v9120_v14 = vadd.f32 %v5722_v27, %v9084_v33  ;;  %6162 = vmatpush1.bf16.msra.mxu1 %v8414_v15  ;;  %v8431_v33 = vld [vmem:[#allocation5 + $0x1434] ss:$8 sps:$4 sm:$0xff]   ;;  %v8476_v15 = vld [vmem:[#allocation5 + $0x15c4] ss:$8 sps:$4 sm:$0xff]   ;;  %v8480_v27 = vld [vmem:[#allocation5 + $0x15b0] ss:$8 sps:$4 sm:$0xff]  }
 0x2c9   :  { %v5726_v23 = vpop.f32.mrf.mxu0  ;;  %v9123_v18 = vpop.f32.mrf.mxu1  ;;  %6043 = vmatmul.mubr.bf16.gmra.mxu0 %v220_v12  ;;  %6163 = vmatprep.subr.bf16.mxu1 %v8422_v10  ;;  %v8474_v12 = vld [vmem:[#allocation5 + $0x15c0] ss:$8 sps:$4 sm:$0xff]   ;;  %v8482_v10 = vld [vmem:[#allocation5 + $0x15b4] ss:$8 sps:$4 sm:$0xff]  }
 0x2ca   :  { %v5727_v31 = vadd.f32 %v5726_v23, %v9087_v50  ;;  %6111 = vmatpush1.bf16.msra.mxu0 %v8417_v7  ;;  %6138 = vmatprep.mubr.bf16.mxu0 %v175_v25  ;;  %v8477_v7 = vld [vmem:[#allocation5 + $0x14b0] ss:$8 sps:$4 sm:$0xff]   ;;  %v8485_v25 = vld [vmem:[#allocation5 + $0x14a4] ss:$8 sps:$4 sm:$0xff]   ;;  %v8494_v23 = vld [vmem:[#allocation5 + $0x1594] ss:$8 sps:$4 sm:$0xff]  }
 0x2cb   :  { %v5728_v21 = vpop.f32.mrf.mxu0  ;;  %v5779_v34 = vpop.f32.mrf.mxu1  ;;  %6096 = vmatmul.mubr.bf16.gmra.mxu1 %v222_v36  ;;  %6112 = vmatprep.subr.bf16.mxu0 %v8425_v13  ;;  %v8488_v36 = vld [vmem:[#allocation5 + $0x15a4] ss:$8 sps:$4 sm:$0xff]   ;;  %v8483_v13 = vld [vmem:[#allocation5 + $0x14a0] ss:$8 sps:$4 sm:$0xff]  }
 0x2cc   :  { %v5729_v24 = vadd.f32 %v5728_v21, %v9090_v46  ;;  %v9127_v26 = vadd.f32 %v5779_v34, %v5727_v31  ;;  %6164 = vmatpush1.bf16.msra.mxu1 %v8420_v28  ;;  %6191 = vmatprep.mubr.bf16.mxu1 %v177_v37  ;;  %v8491_v28 = vld [vmem:[#allocation5 + $0x1494] ss:$8 sps:$4 sm:$0xff]   ;;  %v8486_v37 = vld [vmem:[#allocation5 + $0x15a0] ss:$8 sps:$4 sm:$0xff]   ;;  %v8497_v31 = vld [vmem:[#allocation5 + $0x1484] ss:$8 sps:$4 sm:$0xff]  }
 0x2cd   :  { %v5730_v39 = vpop.f32.mrf.mxu0  ;;  %v5781_v29 = vpop.f32.mrf.mxu1  ;;  %6165 = vmatprep.subr.bf16.mxu1 %v8428_v20  ;;  %v8489_v20 = vld [vmem:[#allocation5 + $0x1490] ss:$8 sps:$4 sm:$0xff]   ;;  %v8500_v21 = vld [vmem:[#allocation5 + $0x1584] ss:$8 sps:$4 sm:$0xff]   ;;  %v8495_v34 = vld [vmem:[#allocation5 + $0x1480] ss:$8 sps:$4 sm:$0xff]  }
 0x2ce   :  { %v9130_v50 = vadd.f32 %v5730_v39, %v9093_v52  ;;  %v9132_v43 = vadd.f32 %v5781_v29, %v5729_v24  ;;  %6113 = vmatpush1.bf16.msra.mxu0 %v8423_v40  ;;  %v8438_v52 = vld [vmem:[#allocation5 + $0x1520] ss:$8 sps:$4 sm:$0xff]   ;;  %v8492_v40 = vld [vmem:[#allocation5 + $0x1590] ss:$8 sps:$4 sm:$0xff]   ;;  %v8503_v24 = vld [vmem:[#allocation5 + $0x1674] ss:$8 sps:$4 sm:$0xff]  }
 0x2cf   :  { %v5732_v41 = vpop.f32.mrf.mxu0  ;;  %6114 = vmatprep.subr.bf16.mxu0 %v8431_v33  ;;  %v124_v33 = vld [vmem:[#allocation2 + $0x140] sm:$0xff]  ;;  %v126_v39 = vld [vmem:[#allocation2 + $0x150] sm:$0xff] }
 0x2d0   :  { %v9135_v46 = vadd.f32 %v5732_v41, %v9095_v0  ;;  %6166 = vmatpush1.bf16.msra.mxu1 %v8426_v35  ;;  %v8452_v0 = vld [vmem:[#allocation5 + $0x1504] ss:$8 sps:$4 sm:$0xff]   ;;  %v8498_v35 = vld [vmem:[#allocation5 + $0x1580] ss:$8 sps:$4 sm:$0xff]   ;;  %v174_v29 = vunpack.c.l.s8.bf16 %v124_v33  ;;  %v225_v41 = vunpack.c.h.s8.bf16 %v9103_v11  ;;  %v8515_v11 = vld [vmem:[#allocation5 + $0x1654] ss:$8 sps:$4 sm:$0xff]  }
 0x2d1   :  { %6167 = vmatprep.subr.bf16.mxu1 %v8434_v32  ;;  %v8506_v32 = vld [vmem:[#allocation5 + $0x1774] ss:$8 sps:$4 sm:$0xff]  }
 0x2d2   :  { %6115 = vmatpush1.bf16.msra.mxu0 %v8429_v51  ;;  %v8501_v51 = vld [vmem:[#allocation5 + $0x1670] ss:$8 sps:$4 sm:$0xff]  }
 0x2d3   :  { %6116 = vmatprep.subr.bf16.mxu0 %v8437_v53  ;;  %v176_v53 = vunpack.c.l.s8.bf16 %v126_v39 }
 0x2d4   :  { %6168 = vmatpush1.bf16.msra.mxu1 %v8432_v45  ;;  %v8509_v45 = vld [vmem:[#allocation5 + $0x1664] ss:$8 sps:$4 sm:$0xff]  }
 0x2d5   :  { %6169 = vmatprep.subr.bf16.mxu1 %v8440_v38  ;;  %v8504_v38 = vld [vmem:[#allocation5 + $0x1770] ss:$8 sps:$4 sm:$0xff]  }
 0x2d6   :  { %6117 = vmatpush1.bf16.msra.mxu0 %v8435_v48  ;;  %v227_v48 = vunpack.c.h.s8.bf16 %v9108_v5  ;;  %v8510_v5 = vld [vmem:[#allocation5 + $0x1760] ss:$8 sps:$4 sm:$0xff]  }
 0x2d7   :  { %6118 = vmatprep.subr.bf16.mxu0 %v8443_v42 }
 0x2d8   :  { %6170 = vmatpush1.bf16.msra.mxu1 %v8438_v52  ;;  %v8512_v52 = vld [vmem:[#allocation5 + $0x1764] ss:$8 sps:$4 sm:$0xff]  }
 0x2d9   :  { %6171 = vmatprep.subr.bf16.mxu1 %v8446_v30 }
 0x2da   :  { %6119 = vmatpush1.bf16.msra.mxu0 %v8441_v57  ;;  %v8507_v57 = vld [vmem:[#allocation5 + $0x1660] ss:$8 sps:$4 sm:$0xff]  }
 0x2db   :  { %6120 = vmatprep.subr.bf16.mxu0 %v8449_v4 }
 0x2dc   :  { %6172 = vmatpush1.bf16.msra.mxu1 %v8444_v55  ;;  %v9142_v55 = vld [vmem:[#allocation2 + $0x168] sm:$0xff] }
 0x2dd   :  { %6173 = vmatprep.subr.bf16.mxu1 %v8452_v0 }
 0x2de   :  { %6121 = vmatpush1.bf16.msra.mxu0 %v8447_v63 }
 0x2df   :  { %6122 = vmatprep.subr.bf16.mxu0 %v8455_v56  ;;  %v8518_v56 = vld [vmem:[#allocation5 + $0x1754] ss:$8 sps:$4 sm:$0xff]  }
 0x2e0   :  { %6174 = vmatpush1.bf16.msra.mxu1 %v8450_v49  ;;  %v9149_v49 = vld [vmem:[#allocation2 + $0x178] sm:$0xff] }
 0x2e1   :  { %6175 = vmatprep.subr.bf16.mxu1 %v8458_v59  ;;  %v8513_v59 = vld [vmem:[#allocation5 + $0x1650] ss:$8 sps:$4 sm:$0xff]  }
 0x2e2   :  { %6123 = vmatpush2.bf16.msra.mxu0 %v8453_v58  ;;  %v179_v58 = vunpack.c.l.s8.bf16 %v9142_v55 }
 0x2e3   :  { %6124 = vmatprep.subr.bf16.mxu0 %v8461_v54 }
 0x2e4   :  { %6176 = vmatpush2.bf16.msra.mxu1 %v8456_v2  ;;  %v226_v2 = vunpack.c.h.s8.bf16 %v126_v39  ;;  %v8555_v39 = vld [vmem:[#allocation5 + $0x16e0] ss:$8 sps:$4 sm:$0xff]  }
 0x2e5   :  { %6177 = vmatprep.subr.bf16.mxu1 %v8464_v62  ;;  %v8516_v62 = vld [vmem:[#allocation5 + $0x1750] ss:$8 sps:$4 sm:$0xff]  }
 0x2e6   :  { %6125 = vmatpush2.bf16.msra.mxu0 %v8459_v8  ;;  %v181_v8 = vunpack.c.l.s8.bf16 %v9149_v49 }
 0x2e7   :  { %6126 = vmatprep.subr.bf16.mxu0 %v8467_v9 }
 0x2e8   :  { %6178 = vmatpush2.bf16.msra.mxu1 %v8462_v47  ;;  %v8524_v47 = vld [vmem:[#allocation5 + $0x1744] ss:$8 sps:$4 sm:$0xff]  }
 0x2e9   :  { %6179 = vmatprep.subr.bf16.mxu1 %v8470_v60 }
 0x2ea   :  { %6127 = vmatpush2.bf16.msra.mxu0 %v8465_v61  ;;  %v8519_v61 = vld [vmem:[#allocation5 + $0x1640] ss:$8 sps:$4 sm:$0xff]  }
 0x2eb   :  { %6128 = vmatprep.subr.bf16.mxu0 %v8473_v22 }
 0x2ec   :  { %6180 = vmatpush2.bf16.msra.mxu1 %v8468_v3  ;;  %v8527_v3 = vld [vmem:[#allocation5 + $0x1634] ss:$8 sps:$4 sm:$0xff]  }
 0x2ed   :  { %6181 = vmatprep.subr.bf16.mxu1 %v8476_v15 }
 0x2ee   :  { %6129 = vmatpush2.bf16.msra.mxu0 %v8471_v1  ;;  %v8522_v1 = vld [vmem:[#allocation5 + $0x1740] ss:$8 sps:$4 sm:$0xff]  }
 0x2ef   :  { %6130 = vmatprep.subr.bf16.mxu0 %v8479_v19  ;;  %v8530_v19 = vld [vmem:[#allocation5 + $0x1734] ss:$8 sps:$4 sm:$0xff]  }
 0x2f0   :  { %6182 = vmatpush2.bf16.msra.mxu1 %v8474_v12  ;;  %v8525_v12 = vld [vmem:[#allocation5 + $0x1630] ss:$8 sps:$4 sm:$0xff]  }
 0x2f1   :  { %6183 = vmatprep.subr.bf16.mxu1 %v8482_v10  ;;  %v8528_v10 = vld [vmem:[#allocation5 + $0x1730] ss:$8 sps:$4 sm:$0xff]  }
 0x2f2   :  { %6131 = vmatpush2.bf16.msra.mxu0 %v8477_v7  ;;  %v8536_v7 = vld [vmem:[#allocation5 + $0x1724] ss:$8 sps:$4 sm:$0xff]  }
 0x2f3   :  { %6132 = vmatprep.subr.bf16.mxu0 %v8485_v25  ;;  %v8531_v25 = vld [vmem:[#allocation5 + $0x1620] ss:$8 sps:$4 sm:$0xff]  }
 0x2f4   :  { %6184 = vmatpush2.bf16.msra.mxu1 %v8480_v27  ;;  %v8539_v27 = vld [vmem:[#allocation5 + $0x1614] ss:$8 sps:$4 sm:$0xff]  }
 0x2f5   :  { %6185 = vmatprep.subr.bf16.mxu1 %v8488_v36  ;;  %v8542_v36 = vld [vmem:[#allocation5 + $0x1714] ss:$8 sps:$4 sm:$0xff]  }
 0x2f6   :  { %6133 = vmatpush2.bf16.msra.mxu0 %v8483_v13  ;;  %v8537_v13 = vld [vmem:[#allocation5 + $0x1610] ss:$8 sps:$4 sm:$0xff]  }
 0x2f7   :  { %6134 = vmatprep.subr.bf16.mxu0 %v8491_v28  ;;  %v8545_v28 = vld [vmem:[#allocation5 + $0x1604] ss:$8 sps:$4 sm:$0xff]  }
 0x2f8   :  { %6186 = vmatpush2.bf16.msra.mxu1 %v8486_v37  ;;  %v8540_v37 = vld [vmem:[#allocation5 + $0x1710] ss:$8 sps:$4 sm:$0xff]  }
 0x2f9   :  { %6187 = vmatprep.subr.bf16.mxu1 %v8494_v23  ;;  %v8548_v23 = vld [vmem:[#allocation5 + $0x1704] ss:$8 sps:$4 sm:$0xff]  }
 0x2fa   :  { %6135 = vmatpush2.bf16.msra.mxu0 %v8489_v20  ;;  %v8543_v20 = vld [vmem:[#allocation5 + $0x1600] ss:$8 sps:$4 sm:$0xff]  }
 0x2fb   :  { %6136 = vmatprep.subr.bf16.mxu0 %v8497_v31  ;;  %v8551_v31 = vld [vmem:[#allocation5 + $0x16f4] ss:$8 sps:$4 sm:$0xff]  }
 0x2fc   :  { %6188 = vmatpush2.bf16.msra.mxu1 %v8492_v40  ;;  %v8546_v40 = vld [vmem:[#allocation5 + $0x1700] ss:$8 sps:$4 sm:$0xff]  }
 0x2fd   :  { %6189 = vmatprep.subr.bf16.mxu1 %v8500_v21  ;;  %v8554_v21 = vld [vmem:[#allocation5 + $0x17f4] ss:$8 sps:$4 sm:$0xff]  }
 0x2fe   :  { %6137 = vmatpush2.bf16.msra.mxu0 %v8495_v34  ;;  %v8549_v34 = vld [vmem:[#allocation5 + $0x16f0] ss:$8 sps:$4 sm:$0xff]  }
 0x2ff   :  { %6212 = vmatprep.subr.bf16.mxu0 %v8503_v24  ;;  %v8552_v24 = vld [vmem:[#allocation5 + $0x17f0] ss:$8 sps:$4 sm:$0xff]  }
 0x300   :  { %6190 = vmatpush2.bf16.msra.mxu1 %v8498_v35  ;;  %v8560_v35 = vld [vmem:[#allocation5 + $0x17e4] ss:$8 sps:$4 sm:$0xff]  }
 0x301   :  { %v5822_v42 = vpop.f32.mrf.mxu0  ;;  %6139 = vmatmul.mubr.bf16.vlgmr.msra.gmra.mxu0 %v174_v29  ;;  %6265 = vmatprep.subr.bf16.mxu1 %v8506_v32  ;;  %v8563_v29 = vld [vmem:[#allocation5 + $0x16d4] ss:$8 sps:$4 sm:$0xff]   ;;  %v8558_v32 = vld [vmem:[#allocation5 + $0x17e0] ss:$8 sps:$4 sm:$0xff]  }
 0x302   :  { %v9140_v30 = vadd.f32 %v5822_v42, %v9106_v44  ;;  %6213 = vmatpush1.bf16.msra.mxu0 %v8501_v51  ;;  %6148 = vmatprep.mubr.bf16.mxu0 %v225_v41  ;;  %v224_v44 = vunpack.c.h.s8.bf16 %v124_v33  ;;  %v8557_v33 = vld [vmem:[#allocation5 + $0x16e4] ss:$8 sps:$4 sm:$0xff]   ;;  %v8566_v51 = vld [vmem:[#allocation5 + $0x17d4] ss:$8 sps:$4 sm:$0xff]   ;;  %v8561_v41 = vld [vmem:[#allocation5 + $0x16d0] ss:$8 sps:$4 sm:$0xff]  }
 0x303   :  { %v5824_v4 = vpop.f32.mrf.mxu0  ;;  %6192 = vmatmul.mubr.bf16.vlgmr.msra.gmra.mxu1 %v176_v53  ;;  %6214 = vmatprep.subr.bf16.mxu0 %v8509_v45  ;;  %v8569_v53 = vld [vmem:[#allocation5 + $0x16c4] ss:$8 sps:$4 sm:$0xff]   ;;  %v8564_v45 = vld [vmem:[#allocation5 + $0x17d0] ss:$8 sps:$4 sm:$0xff]   ;;  %v8575_v42 = vld [vmem:[#allocation5 + $0x16b4] ss:$8 sps:$4 sm:$0xff]  }
 0x304   :  { %v9145_v0 = vadd.f32 %v5824_v4, %v9113_v16  ;;  %6266 = vmatpush1.bf16.msra.mxu1 %v8504_v38  ;;  %6201 = vmatprep.mubr.bf16.mxu1 %v227_v48  ;;  %v8521_v16 = vld [vmem:[#allocation5 + $0x1644] ss:$8 sps:$4 sm:$0xff]   ;;  %v8567_v48 = vld [vmem:[#allocation5 + $0x16c0] ss:$8 sps:$4 sm:$0xff]   ;;  %v8573_v4 = vld [vmem:[#allocation5 + $0x16b0] ss:$8 sps:$4 sm:$0xff]  }
 0x305   :  { %v9147_v63 = vpop.f32.mrf.mxu0  ;;  %6267 = vmatprep.subr.bf16.mxu1 %v8512_v52  ;;  %v8572_v38 = vld [vmem:[#allocation5 + $0x17c4] ss:$8 sps:$4 sm:$0xff]   ;;  %v8570_v52 = vld [vmem:[#allocation5 + $0x17c0] ss:$8 sps:$4 sm:$0xff]  }
 0x306   :  { %6215 = vmatpush1.bf16.msra.mxu0 %v8507_v57  ;;  %v8578_v57 = vld [vmem:[#allocation5 + $0x17b4] ss:$8 sps:$4 sm:$0xff]  }
 0x307   :  { %v9152_v54 = vpop.f32.mrf.mxu0  ;;  %6216 = vmatprep.subr.bf16.mxu0 %v8515_v11  ;;  %v8581_v11 = vld [vmem:[#allocation5 + $0x16a4] ss:$8 sps:$4 sm:$0xff]  }
 0x308   :  { %6268 = vmatpush1.bf16.msra.mxu1 %v8510_v5  ;;  %v8576_v5 = vld [vmem:[#allocation5 + $0x17b0] ss:$8 sps:$4 sm:$0xff]  }
 0x309   :  { %v5832_v9 = vpop.f32.mrf.mxu0  ;;  %6149 = vmatmul.mubr.bf16.gmra.mxu0 %v224_v44  ;;  %6269 = vmatprep.subr.bf16.mxu1 %v8518_v56  ;;  %v8584_v44 = vld [vmem:[#allocation5 + $0x17a4] ss:$8 sps:$4 sm:$0xff]   ;;  %v8579_v56 = vld [vmem:[#allocation5 + $0x16a0] ss:$8 sps:$4 sm:$0xff]  }
 0x30a   :  { %v9156_v60 = vadd.f32 %v5832_v9, %v9127_v26  ;;  %6217 = vmatpush1.bf16.msra.mxu0 %v8513_v59  ;;  %6244 = vmatprep.mubr.bf16.mxu0 %v179_v58  ;;  %v8533_v26 = vld [vmem:[#allocation5 + $0x1624] ss:$8 sps:$4 sm:$0xff]   ;;  %v8587_v59 = vld [vmem:[#allocation5 + $0x1694] ss:$8 sps:$4 sm:$0xff]   ;;  %v8582_v58 = vld [vmem:[#allocation5 + $0x17a0] ss:$8 sps:$4 sm:$0xff]  }
 0x30b   :  { %v5834_v22 = vpop.f32.mrf.mxu0  ;;  %6202 = vmatmul.mubr.bf16.gmra.mxu1 %v226_v2  ;;  %6218 = vmatprep.subr.bf16.mxu0 %v8521_v16  ;;  %v8590_v2 = vld [vmem:[#allocation5 + $0x1794] ss:$8 sps:$4 sm:$0xff]   ;;  %v8585_v16 = vld [vmem:[#allocation5 + $0x1690] ss:$8 sps:$4 sm:$0xff]   ;;  %v8596_v9 = vld [vmem:[#allocation5 + $0x1784] ss:$8 sps:$4 sm:$0xff]  }
 0x30c   :  { %v9159_v15 = vadd.f32 %v5834_v22, %v9132_v43  ;;  %6270 = vmatpush1.bf16.msra.mxu1 %v8516_v62  ;;  %6297 = vmatprep.mubr.bf16.mxu1 %v181_v8  ;;  %v8534_v43 = vld [vmem:[#allocation5 + $0x1720] ss:$8 sps:$4 sm:$0xff]   ;;  %v8593_v62 = vld [vmem:[#allocation5 + $0x1684] ss:$8 sps:$4 sm:$0xff]   ;;  %v8588_v8 = vld [vmem:[#allocation5 + $0x1790] ss:$8 sps:$4 sm:$0xff]  }
 0x30d   :  { %6271 = vmatprep.subr.bf16.mxu1 %v8524_v47  ;;  %v8591_v47 = vld [vmem:[#allocation5 + $0x1680] ss:$8 sps:$4 sm:$0xff]   ;;  %v8599_v22 = vld [vmem:[#allocation5 + $0x1874] ss:$8 sps:$4 sm:$0xff]  }
 0x30e   :  { %6219 = vmatpush1.bf16.msra.mxu0 %v8519_v61  ;;  %v128_v61 = vld [vmem:[#allocation2 + $0x160] sm:$0xff] }
 0x30f   :  { %6220 = vmatprep.subr.bf16.mxu0 %v8527_v3  ;;  %v8594_v3 = vld [vmem:[#allocation5 + $0x1780] ss:$8 sps:$4 sm:$0xff]  }
 0x310   :  { %6272 = vmatpush1.bf16.msra.mxu1 %v8522_v1  ;;  %v130_v1 = vld [vmem:[#allocation2 + $0x170] sm:$0xff] }
 0x311   :  { %6273 = vmatprep.subr.bf16.mxu1 %v8530_v19  ;;  %v178_v19 = vunpack.c.l.s8.bf16 %v128_v61 }
 0x312   :  { %6221 = vmatpush1.bf16.msra.mxu0 %v8525_v12  ;;  %v8597_v12 = vld [vmem:[#allocation5 + $0x1870] ss:$8 sps:$4 sm:$0xff]  }
 0x313   :  { %6222 = vmatprep.subr.bf16.mxu0 %v8533_v26  ;;  %v229_v26 = vunpack.c.h.s8.bf16 %v9142_v55 }
 0x314   :  { %6274 = vmatpush1.bf16.msra.mxu1 %v8528_v10  ;;  %v180_v10 = vunpack.c.l.s8.bf16 %v130_v1 }
 0x315   :  { %6275 = vmatprep.subr.bf16.mxu1 %v8536_v7  ;;  %v8602_v7 = vld [vmem:[#allocation5 + $0x1864] ss:$8 sps:$4 sm:$0xff]  }
 0x316   :  { %6223 = vmatpush1.bf16.msra.mxu0 %v8531_v25  ;;  %v231_v25 = vunpack.c.h.s8.bf16 %v9149_v49  ;;  %v8606_v49 = vld [vmem:[#allocation5 + $0x1840] ss:$8 sps:$4 sm:$0xff]  }
 0x317   :  { %6224 = vmatprep.subr.bf16.mxu0 %v8539_v27  ;;  %v8600_v27 = vld [vmem:[#allocation5 + $0x1860] ss:$8 sps:$4 sm:$0xff]  }
 0x318   :  { %6276 = vmatpush1.bf16.msra.mxu1 %v8534_v43  ;;  %v8605_v43 = vld [vmem:[#allocation5 + $0x1854] ss:$8 sps:$4 sm:$0xff]  }
 0x319   :  { %6277 = vmatprep.subr.bf16.mxu1 %v8542_v36  ;;  %v9163_v36 = vld [vmem:[#allocation2 + $0x188] sm:$0xff] }
 0x31a   :  { %6225 = vmatpush1.bf16.msra.mxu0 %v8537_v13  ;;  %v228_v13 = vunpack.c.h.s8.bf16 %v128_v61  ;;  %v183_v55 = vunpack.c.l.s8.bf16 %v9163_v36  ;;  %v8650_v61 = vld [vmem:[#allocation8 + $0x28] sm:$0xff]  }
 0x31b   :  { %6226 = vmatprep.subr.bf16.mxu0 %v8545_v28  ;;  %v8603_v28 = vld [vmem:[#allocation5 + $0x1850] ss:$8 sps:$4 sm:$0xff]  }
 0x31c   :  { %6278 = vmatpush1.bf16.msra.mxu1 %v8540_v37  ;;  %v230_v37 = vunpack.c.h.s8.bf16 %v130_v1  ;;  %v8653_v1 = vld [vmem:[#allocation8 + $0x58] sm:$0xff]  }
 0x31d   :  { %6279 = vmatprep.subr.bf16.mxu1 %v8548_v23  ;;  %v8608_v23 = vld [vmem:[#allocation5 + $0x1844] ss:$8 sps:$4 sm:$0xff]  }
 0x31e   :  { %6227 = vmatpush1.bf16.msra.mxu0 %v8543_v20  ;;  %v8611_v20 = vld [vmem:[#allocation5 + $0x1834] ss:$8 sps:$4 sm:$0xff]  }
 0x31f   :  { %6228 = vmatprep.subr.bf16.mxu0 %v8551_v31  ;;  %v8609_v31 = vld [vmem:[#allocation5 + $0x1830] ss:$8 sps:$4 sm:$0xff]  }
 0x320   :  { %6280 = vmatpush1.bf16.msra.mxu1 %v8546_v40  ;;  %v8614_v40 = vld [vmem:[#allocation5 + $0x1824] ss:$8 sps:$4 sm:$0xff]  }
 0x321   :  { %6281 = vmatprep.subr.bf16.mxu1 %v8554_v21  ;;  %v8612_v21 = vld [vmem:[#allocation5 + $0x1820] ss:$8 sps:$4 sm:$0xff]  }
 0x322   :  { %6229 = vmatpush2.bf16.msra.mxu0 %v8549_v34  ;;  %v8617_v34 = vld [vmem:[#allocation5 + $0x1814] ss:$8 sps:$4 sm:$0xff]  }
 0x323   :  { %6230 = vmatprep.subr.bf16.mxu0 %v8557_v33  ;;  %v8615_v33 = vld [vmem:[#allocation5 + $0x1810] ss:$8 sps:$4 sm:$0xff]  }
 0x324   :  { %6282 = vmatpush2.bf16.msra.mxu1 %v8552_v24  ;;  %v8620_v24 = vld [vmem:[#allocation5 + $0x1804] ss:$8 sps:$4 sm:$0xff]  }
 0x325   :  { %6283 = vmatprep.subr.bf16.mxu1 %v8560_v35  ;;  %v8618_v35 = vld [vmem:[#allocation5 + $0x1800] ss:$8 sps:$4 sm:$0xff]  }
 0x326   :  { %6231 = vmatpush2.bf16.msra.mxu0 %v8555_v39  ;;  %v8623_v39 = vld [vmem:[#allocation5 + $0x18f4] ss:$8 sps:$4 sm:$0xff]  }
 0x327   :  { %6232 = vmatprep.subr.bf16.mxu0 %v8563_v29  ;;  %v8621_v29 = vld [vmem:[#allocation5 + $0x18f0] ss:$8 sps:$4 sm:$0xff]  }
 0x328   :  { %6284 = vmatpush2.bf16.msra.mxu1 %v8558_v32  ;;  %v8626_v32 = vld [vmem:[#allocation5 + $0x18e4] ss:$8 sps:$4 sm:$0xff]  }
 0x329   :  { %6285 = vmatprep.subr.bf16.mxu1 %v8566_v51  ;;  %v8624_v51 = vld [vmem:[#allocation5 + $0x18e0] ss:$8 sps:$4 sm:$0xff]  }
 0x32a   :  { %6233 = vmatpush2.bf16.msra.mxu0 %v8561_v41  ;;  %v8629_v41 = vld [vmem:[#allocation5 + $0x18d4] ss:$8 sps:$4 sm:$0xff]  }
 0x32b   :  { %6234 = vmatprep.subr.bf16.mxu0 %v8569_v53  ;;  %v8627_v53 = vld [vmem:[#allocation5 + $0x18d0] ss:$8 sps:$4 sm:$0xff]  }
 0x32c   :  { %6286 = vmatpush2.bf16.msra.mxu1 %v8564_v45  ;;  %v8632_v45 = vld [vmem:[#allocation5 + $0x18c4] ss:$8 sps:$4 sm:$0xff]  }
 0x32d   :  { %6287 = vmatprep.subr.bf16.mxu1 %v8572_v38  ;;  %v8630_v38 = vld [vmem:[#allocation5 + $0x18c0] ss:$8 sps:$4 sm:$0xff]  }
 0x32e   :  { %6235 = vmatpush2.bf16.msra.mxu0 %v8567_v48  ;;  %v8635_v48 = vld [vmem:[#allocation5 + $0x18b4] ss:$8 sps:$4 sm:$0xff]  }
 0x32f   :  { %6236 = vmatprep.subr.bf16.mxu0 %v8575_v42  ;;  %v8633_v42 = vld [vmem:[#allocation5 + $0x18b0] ss:$8 sps:$4 sm:$0xff]  }
 0x330   :  { %6288 = vmatpush2.bf16.msra.mxu1 %v8570_v52  ;;  %v8638_v52 = vld [vmem:[#allocation5 + $0x18a4] ss:$8 sps:$4 sm:$0xff]  }
 0x331   :  { %6289 = vmatprep.subr.bf16.mxu1 %v8578_v57  ;;  %v8636_v57 = vld [vmem:[#allocation5 + $0x18a0] ss:$8 sps:$4 sm:$0xff]  }
 0x332   :  { %6237 = vmatpush2.bf16.msra.mxu0 %v8573_v4  ;;  %v8641_v4 = vld [vmem:[#allocation5 + $0x1894] ss:$8 sps:$4 sm:$0xff]  }
 0x333   :  { %6238 = vmatprep.subr.bf16.mxu0 %v8581_v11  ;;  %v8639_v11 = vld [vmem:[#allocation5 + $0x1890] ss:$8 sps:$4 sm:$0xff]  }
 0x334   :  { %6290 = vmatpush2.bf16.msra.mxu1 %v8576_v5  ;;  %v8644_v5 = vld [vmem:[#allocation5 + $0x1884] ss:$8 sps:$4 sm:$0xff]  }
 0x335   :  { %6291 = vmatprep.subr.bf16.mxu1 %v8584_v44  ;;  %v8642_v44 = vld [vmem:[#allocation5 + $0x1880] ss:$8 sps:$4 sm:$0xff]  }
 0x336   :  { %6239 = vmatpush2.bf16.msra.mxu0 %v8579_v56  ;;  %v132_v56 = vld [vmem:[#allocation2 + $0x180] sm:$0xff] }
 0x337   :  { %6240 = vmatprep.subr.bf16.mxu0 %v8587_v59  ;;  %v182_v59 = vunpack.c.l.s8.bf16 %v132_v56 }
 0x338   :  { %6292 = vmatpush2.bf16.msra.mxu1 %v8582_v58  ;;  %v233_v58 = vunpack.c.h.s8.bf16 %v9163_v36 }
 0x339   :  { %6293 = vmatprep.subr.bf16.mxu1 %v8590_v2  ;;  %v232_v2 = vunpack.c.h.s8.bf16 %v132_v56 }
 0x33a   :  { %6241 = vmatpush2.bf16.msra.mxu0 %v8585_v16  ;;  %v8645_v16 = vld [vmem:[#allocation8 + $0x78] sm:$0xff]  }
 0x33b   :  { %6242 = vmatprep.subr.bf16.mxu0 %v8593_v62  ;;  %v8646_v62 = vld [vmem:[#allocation8 + $0x38] sm:$0xff]  }
 0x33c   :  { %6294 = vmatpush2.bf16.msra.mxu1 %v8588_v8  ;;  %v8647_v8 = vld [vmem:[#allocation8 + $0x70] sm:$0xff]  }
 0x33d   :  { %6295 = vmatprep.subr.bf16.mxu1 %v8596_v9  ;;  %v8648_v9 = vld [vmem:[#allocation8 + $0x30] sm:$0xff]  }
 0x33e   :  { %6243 = vmatpush2.bf16.msra.mxu0 %v8591_v47  ;;  %v8649_v47 = vld [vmem:[#allocation8 + $0x68] sm:$0xff]  }
 0x33f   :  { %6318 = vmatprep.subr.bf16.mxu0 %v8599_v22  ;;  %v8651_v22 = vld [vmem:[#allocation8 + $0x60] sm:$0xff]  }
 0x340   :  { %6296 = vmatpush2.bf16.msra.mxu1 %v8594_v3  ;;  %v8652_v3 = vld [vmem:[#allocation8 + $0x20] sm:$0xff]  }
 0x341   :  { %6245 = vmatmul.mubr.bf16.vlgmr.msra.gmra.mxu0 %v178_v19  ;;  %7407 = vmatprep.subr.bf16.mxu1 %v8645_v16  ;;  %v8654_v19 = vld [vmem:[#allocation8 + $0x18] sm:$0xff]  }
 0x342   :  { %6319 = vmatpush1.bf16.msra.mxu0 %v8597_v12  ;;  %6254 = vmatprep.mubr.bf16.mxu0 %v229_v26  ;;  %v9167_v12 = vpop.f32.mrf.mxu1 }
 0x343   :  { %6298 = vmatmul.mubr.bf16.vlgmr.msra.gmra.mxu1 %v180_v10  ;;  %6320 = vmatprep.subr.bf16.mxu0 %v8602_v7 }
 0x344   :  { %6307 = vmatprep.mubr.bf16.mxu1 %v231_v25  ;;  %7408 = vmatpush3.bf16.msra.mxu1 %v8646_v62  ;;  %v9169_v26 = vpop.f32.mrf.mxu1 }
 0x345   :  { %7409 = vmatprep.subr.bf16.mxu1 %v8647_v8 }
 0x346   :  { %6321 = vmatpush1.bf16.msra.mxu0 %v8600_v27  ;;  %v9171_v10 = vpop.f32.mrf.mxu1  ;;  %v8655_v27 = vld [vmem:[#allocation8 + $0x50] sm:$0xff]  }
 0x347   :  { %6322 = vmatprep.subr.bf16.mxu0 %v8605_v43  ;;  %v8656_v43 = vld [vmem:[#allocation8 + $0x10] sm:$0xff]  }
 0x348   :  { %7410 = vmatpush3.bf16.msra.mxu1 %v8648_v9  ;;  %v9173_v7 = vpop.f32.mrf.mxu1 }
 0x349   :  { %6255 = vmatmul.mubr.bf16.gmra.mxu0 %v228_v13  ;;  %7411 = vmatprep.subr.bf16.mxu1 %v8649_v47  ;;  %v9179_v13 = vpop.f32.mrf.mxu0 }
 0x34a   :  { %6323 = vmatpush1.bf16.msra.mxu0 %v8603_v28  ;;  %6350 = vmatprep.mubr.bf16.mxu0 %v183_v55  ;;  %v9175_v25 = vpop.f32.mrf.mxu1  ;;  %v8657_v28 = vld [vmem:[#allocation8 + $0x48] sm:$0xff]  }
 0x34b   :  { %6308 = vmatmul.mubr.bf16.gmra.mxu1 %v230_v37  ;;  %6324 = vmatprep.subr.bf16.mxu0 %v8608_v23  ;;  %v8658_v55 = vld [vmem:[#allocation8 + $0x8] sm:$0xff]   ;;  %v9183_v23 = vpop.f32.mrf.mxu0 }
 0x34c   :  { %7412 = vmatpush3.bf16.msra.mxu1 %v8650_v61  ;;  %v9177_v36 = vpop.f32.mrf.mxu1 }
 0x34d   :  { %7413 = vmatprep.subr.bf16.mxu1 %v8651_v22 }
 0x34e   :  { %6325 = vmatpush1.bf16.msra.mxu0 %v8606_v49  ;;  %v9181_v37 = vpop.f32.mrf.mxu1  ;;  %v9185_v49 = vpop.f32.mrf.mxu0 }
 0x34f   :  { %6326 = vmatprep.subr.bf16.mxu0 %v8611_v20  ;;  %v8659_v20 = vld [vmem:[#allocation8 + $0x40] sm:$0xff]  }
 0x350   :  { %7414 = vmatpush3.bf16.msra.mxu1 %v8652_v3 }
 0x351   :  { %7415 = vmatprep.subr.bf16.mxu1 %v8653_v1 }
 0x352   :  { %6327 = vmatpush1.bf16.msra.mxu0 %v8609_v31  ;;  %v8660_v31 = vld [vmem:[#allocation8] sm:$0xff]  }
 0x353   :  { %6328 = vmatprep.subr.bf16.mxu0 %v8614_v40  ;;  %v9187_v40 = vpop.f32.mrf.mxu1 }
 0x354   :  { %7416 = vmatpush3.bf16.msra.mxu1 %v8654_v19 }
 0x355   :  { %7417 = vmatprep.subr.bf16.mxu1 %v8655_v27 }
 0x356   :  { %6329 = vmatpush1.bf16.msra.mxu0 %v8612_v21  ;;  %v5930_v21 = vpop.f32.mrf.mxu0 }
 0x357   :  { %6330 = vmatprep.subr.bf16.mxu0 %v8617_v34  ;;  %v9189_v34 = vpop.f32.mrf.mxu1 }
 0x358   :  { %7418 = vmatpush3.bf16.msra.mxu1 %v8656_v43 }
 0x359   :  { %7419 = vmatprep.subr.bf16.mxu1 %v8657_v28 }
 0x35a   :  { %6331 = vmatpush1.bf16.msra.mxu0 %v8615_v33  ;;  %v5932_v33 = vpop.f32.mrf.mxu0 }
 0x35b   :  { %6332 = vmatprep.subr.bf16.mxu0 %v8620_v24  ;;  %v9191_v24 = vpop.f32.mrf.mxu1 }
 0x35c   :  { %7420 = vmatpush3.bf16.msra.mxu1 %v8658_v55 }
 0x35d   :  { %7421 = vmatprep.subr.bf16.mxu1 %v8659_v20 }
 0x35e   :  { %6333 = vmatpush1.bf16.msra.mxu0 %v8618_v35  ;;  %v9193_v35 = vpop.f32.mrf.mxu1 }
 0x35f   :  { %6334 = vmatprep.subr.bf16.mxu0 %v8623_v39  ;;  %v9195_v39 = vpop.f32.mrf.mxu0 }
 0x360   :  { %7422 = vmatpush3.bf16.msra.mxu1 %v8660_v31 }
 0x362   :  { %6335 = vmatpush2.bf16.msra.mxu0 %v8621_v29  ;;  %v9197_v29 = vpop.f32.mrf.mxu1 }
 0x363   :  { %6336 = vmatprep.subr.bf16.mxu0 %v8626_v32  ;;  %v9199_v32 = vpop.f32.mrf.mxu0 }
 0x366   :  { %6337 = vmatpush2.bf16.msra.mxu0 %v8624_v51  ;;  %v9201_v51 = vpop.f32.mrf.mxu1 }
 0x367   :  { %6338 = vmatprep.subr.bf16.mxu0 %v8629_v41  ;;  %v9203_v41 = vpop.f32.mrf.mxu0 }
 0x36a   :  { %6339 = vmatpush2.bf16.msra.mxu0 %v8627_v53  ;;  %v9205_v53 = vpop.f32.mrf.mxu1 }
 0x36b   :  { %6340 = vmatprep.subr.bf16.mxu0 %v8632_v45  ;;  %v9207_v45 = vpop.f32.mrf.mxu0 }
 0x36e   :  { %6341 = vmatpush2.bf16.msra.mxu0 %v8630_v38  ;;  %v9209_v38 = vpop.f32.mrf.mxu1 }
 0x36f   :  { %6342 = vmatprep.subr.bf16.mxu0 %v8635_v48  ;;  %v9211_v48 = vpop.f32.mrf.mxu0 }
 0x372   :  { %6343 = vmatpush2.bf16.msra.mxu0 %v8633_v42 }
 0x373   :  { %6344 = vmatprep.subr.bf16.mxu0 %v8638_v52  ;;  %v9213_v52 = vpop.f32.mrf.mxu1 }
 0x376   :  { %6345 = vmatpush2.bf16.msra.mxu0 %v8636_v57 }
 0x377   :  { %6346 = vmatprep.subr.bf16.mxu0 %v8641_v4  ;;  %v9217_v4 = vpop.f32.mrf.mxu1 }
 0x37a   :  { %6347 = vmatpush2.bf16.msra.mxu0 %v8639_v11 }
 0x37b   :  { %6348 = vmatprep.subr.bf16.mxu0 %v8644_v5  ;;  %v9221_v5 = vpop.f32.mrf.mxu1 }
 0x37e   :  { %6349 = vmatpush2.bf16.msra.mxu0 %v8642_v44 }
 0x381   :  { %6351 = vmatmul.mubr.bf16.vlgmr.msra.gmra.mxu0 %v182_v59  ;;  %v6034_v42 = vpop.f32.mrf.mxu0 }
 0x382   :  { %6360 = vmatprep.mubr.bf16.mxu0 %v233_v58 }
 0x383   :  { %v9215_v57 = vpop.f32.mrf.mxu0  ;;  %v9223_v44 = vpop.f32.mrf.mxu1 }
 0x385   :  { %v9219_v11 = vpop.f32.mrf.mxu0  ;;  %v9227_v59 = vpop.f32.mrf.mxu1 }
 0x387   :  { %v9225_v56 = vpop.f32.mrf.mxu0 }
 0x389   :  { %6361 = vmatmul.mubr.bf16.gmra.mxu0 %v232_v2  ;;  %v9229_v58 = vpop.f32.mrf.mxu0  ;;  %v9231_v2 = vpop.f32.mrf.mxu1 }
 0x38b   :  { %v9233_v16 = vpop.f32.mrf.mxu0  ;;  %v9235_v62 = vpop.f32.mrf.mxu1 }
 0x38d   :  { %v9237_v8 = vpop.f32.mrf.mxu0  ;;  %v9239_v9 = vpop.f32.mrf.mxu1 }
 0x38e   :  { %9371 = vst [vmem:[#allocation16_spill] sm:$0xff] %v9237_v8  ;;  %9372 = vst [vmem:[#allocation17_spill] sm:$0xff] %v9239_v9 }
 0x38f   :  { %v9241_v47 = vpop.f32.mrf.mxu0  ;;  %v9245_v22 = vpop.f32.mrf.mxu1 }
 0x390   :  { %9373 = vst [vmem:[#allocation18_spill] sm:$0xff] %v9241_v47  ;;  %9374 = vst [vmem:[#allocation19_spill] sm:$0xff] %v9245_v22 }
 0x391   :  { %v9249_v1 = vpop.f32.mrf.mxu1 }
 0x392   :  { %9375 = vst [vmem:[#allocation20_spill] sm:$0xff] %v9249_v1 }
 0x393   :  { %v9253_v27 = vpop.f32.mrf.mxu1 }
 0x394   :  { %9376 = vst [vmem:[#allocation21_spill] sm:$0xff] %v9253_v27 }
 0x3c1   :  { %v9243_v61 = vpop.f32.mrf.mxu0 }
 0x3c3   :  { %v9247_v3 = vpop.f32.mrf.mxu0  ;;  %v9255_v43 = vpop.f32.mrf.mxu1 }
 0x3c4   :  { %9377 = vst [vmem:[#allocation22_spill] sm:$0xff] %v9255_v43 }
 0x3c5   :  { %v9251_v19 = vpop.f32.mrf.mxu0  ;;  %v9259_v55 = vpop.f32.mrf.mxu1 }
 0x3c6   :  { %9378 = vst [vmem:[#allocation23_spill] sm:$0xff] %v9259_v55  ;;  %v5774_v55 = vadd.f32 %v9116_v17, %v9111_v6 }
 0x3c7   :  { %v9257_v28 = vpop.f32.mrf.mxu0  ;;  %v9263_v31 = vpop.f32.mrf.mxu1 }
 0x3c8   :  { %9380 = vst [vmem:[#allocation25_spill] sm:$0xff] %v9263_v31 }
 0x3c9   :  { %v9261_v20 = vpop.f32.mrf.mxu0  ;;  %v9267_v22 = vpop.f32.mrf.mxu1 }
 0x3ca   :  { %9379 = vst [vmem:[#allocation24_spill] sm:$0xff] %v9261_v20  ;;  %9382 = vst [vmem:[#allocation27_spill] sm:$0xff] %v9267_v22  ;;  %v5827_v22 = vadd.f32 %v9147_v63, %v5774_v55  ;;  %v9390_v55 = vld [vmem:[#allocation17_spill] sm:$0xff] }
 0x3cb   :  { %v9265_v47 = vpop.f32.mrf.mxu0  ;;  %v9271_v1 = vpop.f32.mrf.mxu1 }
 0x3cc   :  { %9381 = vst [vmem:[#allocation26_spill] sm:$0xff] %v9265_v47  ;;  %9384 = vst [vmem:[#allocation29_spill] sm:$0xff] %v9271_v1  ;;  %v5776_v47 = vadd.f32 %v9123_v18, %v9120_v14  ;;  %v5876_v1 = vadd.f32 %v9171_v10, %v9140_v30  ;;  %v5880_v6 = vadd.f32 %v9175_v25, %v5827_v22 }
 0x3cd   :  { %v9269_v9 = vpop.f32.mrf.mxu0  ;;  %v9277_v43 = vpop.f32.mrf.mxu1  ;;  %v5784_v14 = vadd.f32 %v9167_v12, %v9130_v50 }
 0x3ce   :  { %9383 = vst [vmem:[#allocation28_spill] sm:$0xff] %v9269_v9  ;;  %9386 = vst [vmem:[#allocation31_spill] sm:$0xff] %v9277_v43  ;;  %v5878_v43 = vadd.f32 %v9173_v7, %v9145_v0  ;;  %v5929_v17 = vadd.f32 %v9185_v49, %v5876_v1  ;;  %v5933_v30 = vadd.f32 %v5932_v33, %v5880_v6  ;;  %v9388_v1 = vld [vmem:[#allocation16_spill] sm:$0xff]  ;;  %v9391_v6 = vld [vmem:[#allocation18_spill] sm:$0xff] }
 0x3cf   :  { %v9273_v8 = vpop.f32.mrf.mxu0  ;;  %v9286_v31 = vpop.f32.mrf.mxu1  ;;  %v5837_v0 = vadd.f32 %v9179_v13, %v5784_v14  ;;  %v5886_v49 = vadd.f32 %v9181_v37, %v9156_v60  ;;  %v9393_v14 = vld [vmem:[#allocation25_spill] sm:$0xff] }
 0x3d0   :  { %9385 = vst [vmem:[#allocation30_spill] sm:$0xff] %v9273_v8  ;;  %v5829_v8 = vadd.f32 %v9152_v54, %v5776_v47  ;;  %v5931_v63 = vadd.f32 %v5930_v21, %v5878_v43  ;;  %v5786_v54 = vadd.f32 %v9169_v26, %v9135_v46  ;;  %v5982_v7 = vadd.f32 %v9193_v35, %v5929_v17  ;;  %v9389_v43 = vld [vmem:[#allocation22_spill] sm:$0xff]  ;;  %v9392_v17 = vld [vmem:[#allocation23_spill] sm:$0xff] }
 0x3d1   :  { %v5888_v46 = vadd.f32 %v9187_v40, %v9159_v15  ;;  %v5939_v26 = vadd.f32 %v9199_v32, %v5886_v49  ;;  %v5890_v35 = vadd.f32 %v9189_v34, %v5837_v0  ;;  %v9397_v49 = vld [vmem:[#allocation27_spill] sm:$0xff] }
 0x3d2   :  { %v5882_v18 = vadd.f32 %v9177_v36, %v5829_v8  ;;  %v5839_v50 = vadd.f32 %v9183_v23, %v5786_v54  ;;  %v5984_v12 = vadd.f32 %v9197_v29, %v5931_v63  ;;  %v5986_v36 = vadd.f32 %v9201_v51, %v5933_v30  ;;  %v9395_v63 = vld [vmem:[#allocation24_spill] sm:$0xff] }
 0x3d3   :  { %v6035_v21 = vadd.f32 %v6034_v42, %v5982_v7  ;;  %v5941_v29 = vadd.f32 %v9203_v41, %v5888_v46  ;;  %v5943_v51 = vadd.f32 %v9207_v45, %v5890_v35  ;;  %v5992_v32 = vadd.f32 %v9209_v38, %v5939_v26  ;;  %v9396_v7 = vld [vmem:[#allocation20_spill] sm:$0xff]  ;;  %v9400_v26 = vld [vmem:[#allocation26_spill] sm:$0xff] }
 0x3d4   :  { %v5935_v25 = vadd.f32 %v9195_v39, %v5882_v18  ;;  %v6037_v60 = vadd.f32 %v9215_v57, %v5984_v12  ;;  %v6039_v37 = vadd.f32 %v9219_v11, %v5986_v36  ;;  %v5892_v23 = vadd.f32 %v9191_v24, %v5839_v50  ;;  %v9394_v18 = vld [vmem:[#allocation19_spill] sm:$0xff] }
 0x3d5   :  { %v6088_v15 = vadd.f32 %v9223_v44, %v6035_v21  ;;  %v5994_v41 = vadd.f32 %v9213_v52, %v5941_v29  ;;  %v6045_v45 = vadd.f32 %v9229_v58, %v5992_v32  ;;  %v5996_v44 = vadd.f32 %v9217_v4, %v5943_v51  ;;  %v9399_v21 = vld [vmem:[#allocation21_spill] sm:$0xff] }
 0x3d6   :  { %v5988_v39 = vadd.f32 %v9205_v53, %v5935_v25  ;;  %v5945_v34 = vadd.f32 %v9211_v48, %v5892_v23  ;;  %v6090_v57 = vadd.f32 %v9227_v59, %v6037_v60  ;;  %v6092_v11 = vadd.f32 %v9231_v2, %v6039_v37  ;;  %v9402_v29 = vld [vmem:[#allocation29_spill] sm:$0xff] }
 0x3d7   :  { %v6141_v24 = vadd.f32 %v9243_v61, %v6088_v15  ;;  %v6047_v59 = vadd.f32 %v9233_v16, %v5994_v41  ;;  %v6049_v61 = vadd.f32 %v9388_v1, %v5996_v44  ;;  %v6098_v4 = vadd.f32 %v9390_v55, %v6045_v45  ;;  %v9403_v15 = vld [vmem:[#allocation30_spill] sm:$0xff]  ;;  %v9404_v41 = vld [vmem:[#allocation31_spill] sm:$0xff] }
 0x3d8   :  { %v6041_v40 = vadd.f32 %v9225_v56, %v5988_v39  ;;  %v6143_v38 = vadd.f32 %v9247_v3, %v6090_v57  ;;  %v6145_v48 = vadd.f32 %v9251_v19, %v6092_v11  ;;  %v5998_v8 = vadd.f32 %v9221_v5, %v5945_v34 }
 0x3d9   :  { %v6194_v52 = vadd.f32 %v9389_v43, %v6141_v24  ;;  %v6100_v16 = vadd.f32 %v9394_v18, %v6047_v59  ;;  %v6151_v30 = vadd.f32 %v9395_v63, %v6098_v4  ;;  %v6102_v25 = vadd.f32 %v9396_v7, %v6049_v61 }
 0x3da   :  { %v6094_v56 = vadd.f32 %v9235_v62, %v6041_v40  ;;  %v6051_v62 = vadd.f32 %v9391_v6, %v5998_v8  ;;  %v6196_v3 = vadd.f32 %v9392_v17, %v6143_v38  ;;  %v6198_v19 = vadd.f32 %v9393_v14, %v6145_v48 }
 0x3db   :  { %v6153_v35 = vadd.f32 %v9400_v26, %v6100_v16  ;;  %v6204_v51 = vadd.f32 %v9402_v29, %v6151_v30 }
 0x3dc   :  { %v6147_v58 = vadd.f32 %v9257_v28, %v6094_v56  ;;  %v6104_v46 = vadd.f32 %v9399_v21, %v6051_v62 }
 0x3de   :  { %v6200_v28 = vadd.f32 %v9397_v49, %v6147_v58  ;;  %v6157_v40 = vadd.f32 %v9403_v15, %v6104_v46  ;;  %v7390_v49 = vld [vmem:[#allocation10] ss:$0 sm:$0xff] }
 0x401   :  { %v9275_v27 = vpop.f32.mrf.mxu0 }
 0x402   :  { %v6247_v5 = vadd.f32 %v9275_v27, %v6194_v52  ;;  %v9401_v27 = vld [vmem:[#allocation28_spill] sm:$0xff] }
 0x403   :  { %v9281_v20 = vpop.f32.mrf.mxu0  ;;  %v6155_v60 = vadd.f32 %v9401_v27, %v6102_v25 }
 0x404   :  { %9387 = vst [vmem:[#allocation32_spill] sm:$0xff] %v9281_v20  ;;  %v9297_v20 = vpop.f32.mrf.mxu1 }
 0x405   :  { %v9291_v9 = vpop.f32.mrf.mxu0  ;;  %v6208_v56 = vadd.f32 %v9286_v31, %v6155_v60 }
 0x406   :  { %v6299_v10 = vpop.f32.mrf.mxu1  ;;  %v6251_v36 = vadd.f32 %v9291_v9, %v6198_v19  ;;  %v6206_v9 = vadd.f32 %v9404_v41, %v6153_v35 }
 0x407   :  { %v6252_v47 = vpop.f32.mrf.mxu0  ;;  %v6300_v37 = vadd.f32 %v6299_v10, %v6247_v5  ;;  %v6210_v10 = vadd.f32 %v9297_v20, %v6157_v40 }
 0x408   :  { %v6301_v13 = vpop.f32.mrf.mxu1  ;;  %v6253_v23 = vadd.f32 %v6252_v47, %v6200_v28 }
 0x409   :  { %v6256_v33 = vpop.f32.mrf.mxu0 }
 0x40a   :  { %v6303_v42 = vpop.f32.mrf.mxu1  ;;  %v6257_v45 = vadd.f32 %v6256_v33, %v6204_v51 }
 0x40b   :  { %v6258_v53 = vpop.f32.mrf.mxu0  ;;  %v9398_v50 = vld [vmem:[#allocation32_spill] sm:$0xff]  ;;  %v6304_v11 = vadd.f32 %v6303_v42, %v6251_v36 }
 0x40c   :  { %v6305_v22 = vpop.f32.mrf.mxu1  ;;  %v6249_v12 = vadd.f32 %v9398_v50, %v6196_v3  ;;  %v6259_v47 = vadd.f32 %v6258_v53, %v6206_v9 }
 0x40d   :  { %v6260_v2 = vpop.f32.mrf.mxu0  ;;  %v6306_v38 = vadd.f32 %v6305_v22, %v6253_v23 }
 0x40e   :  { %v6309_v54 = vpop.f32.mrf.mxu1  ;;  %v6302_v57 = vadd.f32 %v6301_v13, %v6249_v12  ;;  %v6261_v61 = vadd.f32 %v6260_v2, %v6208_v56 }
 0x40f   :  { %v6262_v0 = vpop.f32.mrf.mxu0  ;;  %v6310_v42 = vadd.f32 %v6309_v54, %v6257_v45 }
 0x410   :  { %v6311_v32 = vpop.f32.mrf.mxu1  ;;  %v6263_v55 = vadd.f32 %v6262_v0, %v6210_v10 }
 0x411   :  { %v6312_v22 = vadd.f32 %v6311_v32, %v6259_v47 }
 0x412   :  { %v6313_v59 = vpop.f32.mrf.mxu1 }
 0x413   :  { %v6314_v17 = vadd.f32 %v6313_v59, %v6261_v61 }
 0x414   :  { %v6315_v62 = vpop.f32.mrf.mxu1 }
 0x415   :  { %v6316_v53 = vadd.f32 %v6315_v62, %v6263_v55 }
 0x441   :  { %v6352_v39 = vpop.f32.mrf.mxu0 }
 0x442   :  { %v6353_v24 = vadd.f32 %v6352_v39, %v6300_v37 }
 0x443   :  { %v6354_v34 = vpop.f32.mrf.mxu0 }
 0x444   :  { %v6355_v48 = vadd.f32 %v6354_v34, %v6302_v57  ;;  %v6371_v43 = vmax.f32 %v6353_v24, 0.0 }
 0x445   :  { %v6356_v44 = vpop.f32.mrf.mxu0 }
 0x446   :  { %v6357_v8 = vadd.f32 %v6356_v44, %v6304_v11  ;;  %v6372_v4 = vmax.f32 %v6355_v48, 0.0 }
 0x447   :  { %v6358_v1 = vpop.f32.mrf.mxu0 }
 0x448   :  { %v6373_v52 = vmax.f32 %v6357_v8, 0.0  ;;  %v6359_v13 = vadd.f32 %v6358_v1, %v6306_v38 }
 0x449   :  { %v6362_v58 = vpop.f32.mrf.mxu0 }
 0x44a   :  { %v6379_v33 = vpack.c.bf16 %v6373_v52, %v6371_v43  ;;  %v6374_v6 = vmax.f32 %v6359_v13, 0.0  ;;  %v6363_v14 = vadd.f32 %v6362_v58, %v6310_v42 }
 0x44b   :  { %v6364_v31 = vpop.f32.mrf.mxu0 }
 0x44c   :  { %v6380_v3 = vpack.c.bf16 %v6374_v6, %v6372_v4  ;;  %v6365_v19 = vadd.f32 %v6364_v31, %v6312_v22  ;;  %v6375_v18 = vmax.f32 %v6363_v14, 0.0 }
 0x44d   :  { %v6366_v20 = vpop.f32.mrf.mxu0 }
 0x44e   :  { %v6367_v5 = vadd.f32 %v6366_v20, %v6314_v17  ;;  %6550 = vmatprep.mubr.bf16.mxu1 %v6380_v3  ;;  %v6376_v30 = vmax.f32 %v6365_v19, 0.0 }
 0x44f   :  { %v6368_v2 = vpop.f32.mrf.mxu0  ;;  %6551 = vmatmul.mubr.bf16.vlgmr.msra.gmra.mxu1 %v6379_v33 }
 0x450   :  { %v6377_v16 = vmax.f32 %v6367_v5, 0.0  ;;  %v6369_v63 = vadd.f32 %v6368_v2, %v6316_v53 }
 0x452   :  { %v6381_v54 = vpack.c.bf16 %v6377_v16, %v6375_v18  ;;  %v6378_v0 = vmax.f32 %v6369_v63, 0.0 }
 0x454   :  { %v6382_v7 = vpack.c.bf16 %v6378_v0, %v6376_v30 }
 0x456   :  { %6558 = vmatprep.mubr.bf16.mxu1 %v6382_v7 }
 0x457   :  { %6559 = vmatmul.mubr.bf16.gmra.mxu1 %v6381_v54 }
 0x50f   :  { %v7423_v25 = vpop.f32.mrf.mxu1 }
 0x511   :  { %v7424_v28 = vpop.f32.mrf.mxu1 }
 0x512   :  { %v7425_v50 = vadd.f32 %v7424_v28, %v7423_v25 }
 0x513   :  { %v7426_v12 = vpop.f32.mrf.mxu1 }
 0x514   :  { %v6553_v36 = vadd.f32 %v7425_v50, %v7390_v49 }
 0x515   :  { %v7427_v21 = vpop.f32.mrf.mxu1 }
 0x516   :  { %6567 = vst [vmem:[#allocation11] sm:$0xff] %v6553_v36  ;;  %v7428_v46 = vadd.f32 %v7427_v21, %v7426_v12 }
 0x517   :  { %v7429_v26 = vpop.f32.mrf.mxu1 }
 0x518   :  { %v6556_v35 = vadd.f32 %v7428_v46, %v7390_v49 }
 0x519   :  { %v7430_v39 = vpop.f32.mrf.mxu1 }
 0x51a   :  { %6568 = vst [vmem:[#allocation11 + $0x8] sm:$0xff] %v6556_v35  ;;  %v7431_v27 = vadd.f32 %v7430_v39, %v7429_v26 }
 0x51b   :  { %v7432_v60 = vpop.f32.mrf.mxu1 }
 0x51c   :  { %v6561_v37 = vadd.f32 %v7431_v27, %v7390_v49 }
 0x51d   :  { %v7433_v23 = vpop.f32.mrf.mxu1 }
 0x51e   :  { %6569 = vst [vmem:[#allocation11 + $0x10] sm:$0xff] %v6561_v37  ;;  %v7434_v29 = vadd.f32 %v7433_v23, %v7432_v60 }
 0x520   :  { %v6564_v51 = vadd.f32 %v7434_v29, %v7390_v49 }
 0x522   :  { %6570 = vst [vmem:[#allocation11 + $0x18] sm:$0xff] %v6564_v51 }
 0x523   :  { %8772 = shalt.err (!%p8769_p1)
}
 0x524   :  { %6582 = dma.vmem_to_hbm [thread:$0]  %s6577_s4, 512, %s9370_s5, [#allocation4], %s8790_s21, %s8790_s21, %s8791_s22  }
 0x525   :  { %8787 = dma.done.wait [#allocation4], 512  }
 0x526   :  { %8788 = vsyncadd [#allocation4], 4294966784 }
 0x527   :  { %6586 = vsyncpa [#allocation3], 1 }
 0x528   :  { %6587 = vsyncpa [#allocation6], 1 }
 0x529   :  { %6588 = vsyncpa [#allocation9], 1 }
 0x52a   :  { %6589 = vsyncpa [#allocation4], 1 }

</bundles_post_ra>
